<compile_context>
chip_gen: v6e
topology: v6e:2x2x1
jax: 0.10.0
libtpu: 0.0.40
codegen_flags: <defaults>
</compile_context>

<pallas_src>
import functools
import math

import jax
import jax.numpy as jnp
from jax.experimental import pallas as pl
from jax.experimental.pallas import tpu as pltpu


def _round_up(x, m):
    return (x + m - 1) // m * m


# ----------------------------- fused kernel ---------------------------------
def _fused_gru_fc_kernel(*refs, num_layers, T, BP, HP):
    """Ref layout (positional):
         [0]                      x_flat (T*BP, Dp)      time-major, padded
         [1+4l .. 4+4l] layer l:  w_ih (Din_p, 3*HP), w_hh (HP, 3*HP),
                                  b_ih (1, 3*HP),     b_hh (1, 3*HP)
         [1+4L], [2+4L]           fc_w (HP, OP), fc_b (1, OP)
         [3+4L]                   out  (BP, OP)
         [4+4L], [5+4L], [6+4L]   scratch: seq (T*BP, HP), gi (T*BP, 3*HP), h (BP, HP)
       Gate order along the 3*HP axis is [r | z | n], each padded to HP lanes.
    """
    x_ref = refs[0]
    fc_w_ref = refs[1 + 4 * num_layers]
    fc_b_ref = refs[2 + 4 * num_layers]
    out_ref = refs[3 + 4 * num_layers]
    seq_ref = refs[4 + 4 * num_layers]
    gi_ref = refs[5 + 4 * num_layers]
    h_ref = refs[6 + 4 * num_layers]

    for layer in range(num_layers):
        w_ih_ref, w_hh_ref, b_ih_ref, b_hh_ref = refs[1 + 4 * layer: 5 + 4 * layer]

        # Input projections for all T timesteps in one MXU pass (b_ih folded in).
        src = x_ref[...] if layer == 0 else seq_ref[...]
        gi_ref[...] = (jnp.dot(src, w_ih_ref[...],
                               preferred_element_type=jnp.float32)
                       + b_ih_ref[...])

        # Recurrence over time; hidden state carried in VMEM scratch, h0 = 0.
        h_ref[...] = jnp.zeros_like(h_ref)
        for t in range(T):                                    # static unroll (T is small)
            h_prev = h_ref[...]
            gi = gi_ref[t * BP:(t + 1) * BP, :]               # sublane-tile-aligned slice
            gh = (jnp.dot(h_prev, w_hh_ref[...],
                          preferred_element_type=jnp.float32)
                  + b_hh_ref[...])
            r = jax.nn.sigmoid(gi[:, 0 * HP:1 * HP] + gh[:, 0 * HP:1 * HP])
            z = jax.nn.sigmoid(gi[:, 1 * HP:2 * HP] + gh[:, 1 * HP:2 * HP])
            n = jnp.tanh(gi[:, 2 * HP:3 * HP] + r * gh[:, 2 * HP:3 * HP])
            h_new = (1.0 - z) * n + z * h_prev
            h_ref[...] = h_new
            if layer < num_layers - 1:                        # next layer's input sequence
                seq_ref[t * BP:(t + 1) * BP, :] = h_new

    # Final Linear on the last timestep of the last layer (out[:, -1, :] @ W_fc^T + b).
    out_ref[...] = (jnp.dot(h_ref[...], fc_w_ref[...],
                            preferred_element_type=jnp.float32)
                    + fc_b_ref[...])


# ------------------------------- forward ------------------------------------
@functools.partial(jax.jit, static_argnames=("input_dim", "hidden_dim",
                                             "output_dim", "num_layers"))
def gru_forward(params, x, *, input_dim, hidden_dim, output_dim, num_layers):
    """x: (B, T, input_dim) batch_first, h0 = zeros (as in the PyTorch module)."""
    B, T, D = x.shape
    BP = _round_up(B, 8)                 # sublane-pad batch
    Dp = _round_up(input_dim, 128)       # lane-pad features
    HP = _round_up(hidden_dim, 128)
    OP = _round_up(output_dim, 128)

    # time-major, zero-pad batch/features, flatten to (T*BP, Dp)
    x_tm = jnp.transpose(x, (1, 0, 2)).astype(jnp.float32)
    x_tm = jnp.pad(x_tm, ((0, 0), (0, BP - B), (0, Dp - D)))
    x_flat = x_tm.reshape(T * BP, Dp)

    flat_inputs = [x_flat]
    for lp in params["layers"]:
        flat_inputs += [lp["w_ih"], lp["w_hh"], lp["b_ih"], lp["b_hh"]]
    flat_inputs += [params["fc_w"], params["fc_b"]]

    kernel = functools.partial(_fused_gru_fc_kernel, num_layers=num_layers,
                               T=T, BP=BP, HP=HP)

    out_padded = pl.pallas_call(
        kernel,
        out_shape=jax.ShapeDtypeStruct((BP, OP), jnp.float32),
        scratch_shapes=[
            pltpu.VMEM((T * BP, HP), jnp.float32),        # inter-layer hidden sequence
            pltpu.VMEM((T * BP, 3 * HP), jnp.float32),    # precomputed input projections
            pltpu.VMEM((BP, HP), jnp.float32),            # hidden-state carry
        ],
    )(*flat_inputs)

    return out_padded[:B, :output_dim]


# ------------------------------- params -------------------------------------
def init_params(key, input_dim, hidden_dim, output_dim, num_layers):
    """PyTorch-style uniform(-k, k) init (k = 1/sqrt(H)), stored pre-transposed
    and zero-padded into the lane-aligned kernel layout (gate order r, z, n)."""
    H = hidden_dim
    HP = _round_up(H, 128)
    OP = _round_up(output_dim, 128)
    k = 1.0 / math.sqrt(H)

    def pad_gate_w(w_t, d_in, d_in_p):
        # w_t: (d_in, 3H) with gate blocks [r|z|n] -> (d_in_p, 3*HP), each gate HP-lane padded
        w3 = w_t.reshape(d_in, 3, H)
        w3 = jnp.pad(w3, ((0, d_in_p - d_in), (0, 0), (0, HP - H)))
        return w3.reshape(d_in_p, 3 * HP)

    def pad_gate_b(b):
        b3 = b.reshape(3, H)
        b3 = jnp.pad(b3, ((0, 0), (0, HP - H)))
        return b3.reshape(1, 3 * HP)

    params = {"layers": []}
    for layer in range(num_layers):
        d_in = input_dim if layer == 0 else hidden_dim
        d_in_p = _round_up(d_in, 128) if layer == 0 else HP
        key, k1, k2, k3, k4 = jax.random.split(key, 5)
        w_ih = jax.random.uniform(k1, (3 * H, d_in), jnp.float32, -k, k)   # PyTorch layout
        w_hh = jax.random.uniform(k2, (3 * H, H), jnp.float32, -k, k)
        b_ih = jax.random.uniform(k3, (3 * H,), jnp.float32, -k, k)
        b_hh = jax.random.uniform(k4, (3 * H,), jnp.float32, -k, k)
        params["layers"].append({
            "w_ih": pad_gate_w(w_ih.T, d_in, d_in_p),
            "w_hh": pad_gate_w(w_hh.T, H, HP),
            "b_ih": pad_gate_b(b_ih),
            "b_hh": pad_gate_b(b_hh),
        })
    key, k5, k6 = jax.random.split(key, 3)
    fc_w = jax.random.uniform(k5, (output_dim, H), jnp.float32, -k, k)     # PyTorch (O, H)
    fc_b = jax.random.uniform(k6, (output_dim,), jnp.float32, -k, k)
    params["fc_w"] = jnp.pad(fc_w.T, ((0, HP - H), (0, OP - output_dim)))  # (HP, OP)
    params["fc_b"] = jnp.pad(fc_b, ((0, OP - output_dim),)).reshape(1, OP)
    return params


# --------------------------------- main --------------------------------------
if __name__ == "__main__":
    B, T = 2, 8
    input_dim, hidden_dim, output_dim, num_layers = 4, 32, 8, 2

    key = jax.random.PRNGKey(0)
    key, kx = jax.random.split(key)
    x = jax.random.normal(kx, (B, T, input_dim), jnp.float32)

    params = init_params(key, input_dim, hidden_dim, output_dim, num_layers)

    out = gru_forward(params, x, input_dim=input_dim, hidden_dim=hidden_dim,
                      output_dim=output_dim, num_layers=num_layers)
    jax.block_until_ready(out)
    assert out.shape == (B, output_dim)
    print("KERNEL_OK")
</pallas_src>

<mosaic_0001>
module attributes {stable_mosaic.version = 11 : i64} {
  func.func @_fused_gru_fc_kernel(%arg0: memref<64x128xf32, #tpu.memory_space<vmem>>, %arg1: memref<128x384xf32, #tpu.memory_space<vmem>>, %arg2: memref<128x384xf32, #tpu.memory_space<vmem>>, %arg3: memref<1x384xf32, #tpu.memory_space<vmem>>, %arg4: memref<1x384xf32, #tpu.memory_space<vmem>>, %arg5: memref<128x384xf32, #tpu.memory_space<vmem>>, %arg6: memref<128x384xf32, #tpu.memory_space<vmem>>, %arg7: memref<1x384xf32, #tpu.memory_space<vmem>>, %arg8: memref<1x384xf32, #tpu.memory_space<vmem>>, %arg9: memref<128x128xf32, #tpu.memory_space<vmem>>, %arg10: memref<1x128xf32, #tpu.memory_space<vmem>>, %arg11: memref<8x128xf32, #tpu.memory_space<vmem>>, %arg12: memref<64x128xf32, #tpu.memory_space<vmem>>, %arg13: memref<64x384xf32, #tpu.memory_space<vmem>>, %arg14: memref<8x128xf32, #tpu.memory_space<vmem>>) attributes {dimension_semantics = [], scalar_prefetch = 0 : i64, scratch_operands = 3 : i64, tpu.core_type = #tpu.core_type<tc>} {
    %c0 = arith.constant 0 : index
    %c0_0 = arith.constant 0 : index
    %0 = vector.load %arg0[%c0, %c0_0] : memref<64x128xf32, #tpu.memory_space<vmem>>, vector<64x128xf32>
    %c0_1 = arith.constant 0 : index
    %c0_2 = arith.constant 0 : index
    %1 = vector.load %arg1[%c0_1, %c0_2] : memref<128x384xf32, #tpu.memory_space<vmem>>, vector<128x384xf32>
    %cst = arith.constant dense<0.000000e+00> : vector<64x384xf32>
    %2 = tpu.matmul %0, %1, %cst {dimension_numbers = #tpu.dot_dimension_numbers<[1], [0], [0], [1], [0, 0, 1, 1], [], []>} : vector<64x128xf32>, vector<128x384xf32>, vector<64x384xf32> -> vector<64x384xf32>
    %c0_3 = arith.constant 0 : index
    %c0_4 = arith.constant 0 : index
    %3 = vector.load %arg3[%c0_3, %c0_4] : memref<1x384xf32, #tpu.memory_space<vmem>>, vector<1x384xf32>
    %4 = vector.broadcast %3 : vector<1x384xf32> to vector<64x384xf32>
    %5 = arith.addf %2, %4 : vector<64x384xf32>
    %c0_5 = arith.constant 0 : index
    %c0_6 = arith.constant 0 : index
    %6 = vector.load %arg13[%c0_5, %c0_6] : memref<64x384xf32, #tpu.memory_space<vmem>>, vector<64x384xf32>
    tpu.vector_store %arg13[%c0_5, %c0_6], %5 {strides = array<i32>} : memref<64x384xf32, #tpu.memory_space<vmem>>, vector<64x384xf32>,
    %cst_7 = arith.constant 0.000000e+00 : f32
    %7 = vector.broadcast %cst_7 : f32 to vector<8x128xf32>
    %c0_8 = arith.constant 0 : index
    %c0_9 = arith.constant 0 : index
    %8 = vector.load %arg14[%c0_8, %c0_9] : memref<8x128xf32, #tpu.memory_space<vmem>>, vector<8x128xf32>
    tpu.vector_store %arg14[%c0_8, %c0_9], %7 {strides = array<i32>} : memref<8x128xf32, #tpu.memory_space<vmem>>, vector<8x128xf32>,
    %c0_10 = arith.constant 0 : index
    %c0_11 = arith.constant 0 : index
    %9 = vector.load %arg14[%c0_10, %c0_11] : memref<8x128xf32, #tpu.memory_space<vmem>>, vector<8x128xf32>
    %c0_12 = arith.constant 0 : index
    %c0_13 = arith.constant 0 : index
    %10 = vector.load %arg13[%c0_12, %c0_13] : memref<64x384xf32, #tpu.memory_space<vmem>>, vector<8x384xf32>
    %c0_14 = arith.constant 0 : index
    %c0_15 = arith.constant 0 : index
    %11 = vector.load %arg2[%c0_14, %c0_15] : memref<128x384xf32, #tpu.memory_space<vmem>>, vector<128x384xf32>
    %cst_16 = arith.constant dense<0.000000e+00> : vector<8x384xf32>
    %12 = tpu.matmul %9, %11, %cst_16 {dimension_numbers = #tpu.dot_dimension_numbers<[1], [0], [0], [1], [0, 0, 1, 1], [], []>} : vector<8x128xf32>, vector<128x384xf32>, vector<8x384xf32> -> vector<8x384xf32>
    %c0_17 = arith.constant 0 : index
    %c0_18 = arith.constant 0 : index
    %13 = vector.load %arg4[%c0_17, %c0_18] : memref<1x384xf32, #tpu.memory_space<vmem>>, vector<1x384xf32>
    %14 = vector.broadcast %13 : vector<1x384xf32> to vector<8x384xf32>
    %15 = arith.addf %12, %14 : vector<8x384xf32>
    %16 = vector.extract_strided_slice %10 {offsets = [0, 0], sizes = [8, 128], strides = [1, 1]} : vector<8x384xf32> to vector<8x128xf32>
    %17 = vector.extract_strided_slice %15 {offsets = [0, 0], sizes = [8, 128], strides = [1, 1]} : vector<8x384xf32> to vector<8x128xf32>
    %18 = arith.addf %16, %17 : vector<8x128xf32>
    %19 = arith.negf %18 : vector<8x128xf32>
    %20 = math.exp %19 : vector<8x128xf32>
    %cst_19 = arith.constant 1.000000e+00 : f32
    %21 = vector.broadcast %cst_19 : f32 to vector<8x128xf32>
    %22 = arith.addf %21, %20 : vector<8x128xf32>
    %23 = arith.divf %21, %22 : vector<8x128xf32>
    %24 = vector.extract_strided_slice %10 {offsets = [0, 128], sizes = [8, 128], strides = [1, 1]} : vector<8x384xf32> to vector<8x128xf32>
    %25 = vector.extract_strided_slice %15 {offsets = [0, 128], sizes = [8, 128], strides = [1, 1]} : vector<8x384xf32> to vector<8x128xf32>
    %26 = arith.addf %24, %25 : vector<8x128xf32>
    %27 = arith.negf %26 : vector<8x128xf32>
    %28 = math.exp %27 : vector<8x128xf32>
    %cst_20 = arith.constant 1.000000e+00 : f32
    %29 = vector.broadcast %cst_20 : f32 to vector<8x128xf32>
    %30 = arith.addf %29, %28 : vector<8x128xf32>
    %31 = arith.divf %29, %30 : vector<8x128xf32>
    %32 = vector.extract_strided_slice %10 {offsets = [0, 256], sizes = [8, 128], strides = [1, 1]} : vector<8x384xf32> to vector<8x128xf32>
    %33 = vector.extract_strided_slice %15 {offsets = [0, 256], sizes = [8, 128], strides = [1, 1]} : vector<8x384xf32> to vector<8x128xf32>
    %34 = arith.mulf %23, %33 : vector<8x128xf32>
    %35 = arith.addf %32, %34 : vector<8x128xf32>
    %36 = math.tanh %35 : vector<8x128xf32>
    %cst_21 = arith.constant 1.000000e+00 : f32
    %37 = vector.broadcast %cst_21 : f32 to vector<8x128xf32>
    %38 = arith.subf %37, %31 : vector<8x128xf32>
    %39 = arith.mulf %38, %36 : vector<8x128xf32>
    %40 = arith.mulf %31, %9 : vector<8x128xf32>
    %41 = arith.addf %39, %40 : vector<8x128xf32>
    %c0_22 = arith.constant 0 : index
    %c0_23 = arith.constant 0 : index
    %42 = vector.load %arg14[%c0_22, %c0_23] : memref<8x128xf32, #tpu.memory_space<vmem>>, vector<8x128xf32>
    tpu.vector_store %arg14[%c0_22, %c0_23], %41 {strides = array<i32>} : memref<8x128xf32, #tpu.memory_space<vmem>>, vector<8x128xf32>,
    %c0_24 = arith.constant 0 : index
    %c0_25 = arith.constant 0 : index
    %43 = vector.load %arg12[%c0_24, %c0_25] : memref<64x128xf32, #tpu.memory_space<vmem>>, vector<8x128xf32>
    tpu.vector_store %arg12[%c0_24, %c0_25], %41 {strides = array<i32>} : memref<64x128xf32, #tpu.memory_space<vmem>>, vector<8x128xf32>,
    %c0_26 = arith.constant 0 : index
    %c0_27 = arith.constant 0 : index
    %44 = vector.load %arg14[%c0_26, %c0_27] : memref<8x128xf32, #tpu.memory_space<vmem>>, vector<8x128xf32>
    %c8 = arith.constant 8 : index
    %c0_28 = arith.constant 0 : index
    %45 = vector.load %arg13[%c8, %c0_28] : memref<64x384xf32, #tpu.memory_space<vmem>>, vector<8x384xf32>
    %c0_29 = arith.constant 0 : index
    %c0_30 = arith.constant 0 : index
    %46 = vector.load %arg2[%c0_29, %c0_30] : memref<128x384xf32, #tpu.memory_space<vmem>>, vector<128x384xf32>
    %cst_31 = arith.constant dense<0.000000e+00> : vector<8x384xf32>
    %47 = tpu.matmul %44, %46, %cst_31 {dimension_numbers = #tpu.dot_dimension_numbers<[1], [0], [0], [1], [0, 0, 1, 1], [], []>} : vector<8x128xf32>, vector<128x384xf32>, vector<8x384xf32> -> vector<8x384xf32>
    %c0_32 = arith.constant 0 : index
    %c0_33 = arith.constant 0 : index
    %48 = vector.load %arg4[%c0_32, %c0_33] : memref<1x384xf32, #tpu.memory_space<vmem>>, vector<1x384xf32>
    %49 = vector.broadcast %48 : vector<1x384xf32> to vector<8x384xf32>
    %50 = arith.addf %47, %49 : vector<8x384xf32>
    %51 = vector.extract_strided_slice %45 {offsets = [0, 0], sizes = [8, 128], strides = [1, 1]} : vector<8x384xf32> to vector<8x128xf32>
    %52 = vector.extract_strided_slice %50 {offsets = [0, 0], sizes = [8, 128], strides = [1, 1]} : vector<8x384xf32> to vector<8x128xf32>
    %53 = arith.addf %51, %52 : vector<8x128xf32>
    %54 = arith.negf %53 : vector<8x128xf32>
    %55 = math.exp %54 : vector<8x128xf32>
    %cst_34 = arith.constant 1.000000e+00 : f32
    %56 = vector.broadcast %cst_34 : f32 to vector<8x128xf32>
    %57 = arith.addf %56, %55 : vector<8x128xf32>
    %58 = arith.divf %56, %57 : vector<8x128xf32>
    %59 = vector.extract_strided_slice %45 {offsets = [0, 128], sizes = [8, 128], strides = [1, 1]} : vector<8x384xf32> to vector<8x128xf32>
    %60 = vector.extract_strided_slice %50 {offsets = [0, 128], sizes = [8, 128], strides = [1, 1]} : vector<8x384xf32> to vector<8x128xf32>
    %61 = arith.addf %59, %60 : vector<8x128xf32>
    %62 = arith.negf %61 : vector<8x128xf32>
    %63 = math.exp %62 : vector<8x128xf32>
    %cst_35 = arith.constant 1.000000e+00 : f32
    %64 = vector.broadcast %cst_35 : f32 to vector<8x128xf32>
    %65 = arith.addf %64, %63 : vector<8x128xf32>
    %66 = arith.divf %64, %65 : vector<8x128xf32>
    %67 = vector.extract_strided_slice %45 {offsets = [0, 256], sizes = [8, 128], strides = [1, 1]} : vector<8x384xf32> to vector<8x128xf32>
    %68 = vector.extract_strided_slice %50 {offsets = [0, 256], sizes = [8, 128], strides = [1, 1]} : vector<8x384xf32> to vector<8x128xf32>
    %69 = arith.mulf %58, %68 : vector<8x128xf32>
    %70 = arith.addf %67, %69 : vector<8x128xf32>
    %71 = math.tanh %70 : vector<8x128xf32>
    %cst_36 = arith.constant 1.000000e+00 : f32
    %72 = vector.broadcast %cst_36 : f32 to vector<8x128xf32>
    %73 = arith.subf %72, %66 : vector<8x128xf32>
    %74 = arith.mulf %73, %71 : vector<8x128xf32>
    %75 = arith.mulf %66, %44 : vector<8x128xf32>
    %76 = arith.addf %74, %75 : vector<8x128xf32>
    %c0_37 = arith.constant 0 : index
    %c0_38 = arith.constant 0 : index
    %77 = vector.load %arg14[%c0_37, %c0_38] : memref<8x128xf32, #tpu.memory_space<vmem>>, vector<8x128xf32>
    tpu.vector_store %arg14[%c0_37, %c0_38], %76 {strides = array<i32>} : memref<8x128xf32, #tpu.memory_space<vmem>>, vector<8x128xf32>,
    %c8_39 = arith.constant 8 : index
    %c0_40 = arith.constant 0 : index
    %78 = vector.load %arg12[%c8_39, %c0_40] : memref<64x128xf32, #tpu.memory_space<vmem>>, vector<8x128xf32>
    tpu.vector_store %arg12[%c8_39, %c0_40], %76 {strides = array<i32>} : memref<64x128xf32, #tpu.memory_space<vmem>>, vector<8x128xf32>,
    %c0_41 = arith.constant 0 : index
    %c0_42 = arith.constant 0 : index
    %79 = vector.load %arg14[%c0_41, %c0_42] : memref<8x128xf32, #tpu.memory_space<vmem>>, vector<8x128xf32>
    %c16 = arith.constant 16 : index
    %c0_43 = arith.constant 0 : index
    %80 = vector.load %arg13[%c16, %c0_43] : memref<64x384xf32, #tpu.memory_space<vmem>>, vector<8x384xf32>
    %c0_44 = arith.constant 0 : index
    %c0_45 = arith.constant 0 : index
    %81 = vector.load %arg2[%c0_44, %c0_45] : memref<128x384xf32, #tpu.memory_space<vmem>>, vector<128x384xf32>
    %cst_46 = arith.constant dense<0.000000e+00> : vector<8x384xf32>
    %82 = tpu.matmul %79, %81, %cst_46 {dimension_numbers = #tpu.dot_dimension_numbers<[1], [0], [0], [1], [0, 0, 1, 1], [], []>} : vector<8x128xf32>, vector<128x384xf32>, vector<8x384xf32> -> vector<8x384xf32>
    %c0_47 = arith.constant 0 : index
    %c0_48 = arith.constant 0 : index
    %83 = vector.load %arg4[%c0_47, %c0_48] : memref<1x384xf32, #tpu.memory_space<vmem>>, vector<1x384xf32>
    %84 = vector.broadcast %83 : vector<1x384xf32> to vector<8x384xf32>
    %85 = arith.addf %82, %84 : vector<8x384xf32>
    %86 = vector.extract_strided_slice %80 {offsets = [0, 0], sizes = [8, 128], strides = [1, 1]} : vector<8x384xf32> to vector<8x128xf32>
    %87 = vector.extract_strided_slice %85 {offsets = [0, 0], sizes = [8, 128], strides = [1, 1]} : vector<8x384xf32> to vector<8x128xf32>
    %88 = arith.addf %86, %87 : vector<8x128xf32>
    %89 = arith.negf %88 : vector<8x128xf32>
    %90 = math.exp %89 : vector<8x128xf32>
    %cst_49 = arith.constant 1.000000e+00 : f32
    %91 = vector.broadcast %cst_49 : f32 to vector<8x128xf32>
    %92 = arith.addf %91, %90 : vector<8x128xf32>
    %93 = arith.divf %91, %92 : vector<8x128xf32>
    %94 = vector.extract_strided_slice %80 {offsets = [0, 128], sizes = [8, 128], strides = [1, 1]} : vector<8x384xf32> to vector<8x128xf32>
    %95 = vector.extract_strided_slice %85 {offsets = [0, 128], sizes = [8, 128], strides = [1, 1]} : vector<8x384xf32> to vector<8x128xf32>
    %96 = arith.addf %94, %95 : vector<8x128xf32>
    %97 = arith.negf %96 : vector<8x128xf32>
    %98 = math.exp %97 : vector<8x128xf32>
    %cst_50 = arith.constant 1.000000e+00 : f32
    %99 = vector.broadcast %cst_50 : f32 to vector<8x128xf32>
    %100 = arith.addf %99, %98 : vector<8x128xf32>
    %101 = arith.divf %99, %100 : vector<8x128xf32>
    %102 = vector.extract_strided_slice %80 {offsets = [0, 256], sizes = [8, 128], strides = [1, 1]} : vector<8x384xf32> to vector<8x128xf32>
    %103 = vector.extract_strided_slice %85 {offsets = [0, 256], sizes = [8, 128], strides = [1, 1]} : vector<8x384xf32> to vector<8x128xf32>
    %104 = arith.mulf %93, %103 : vector<8x128xf32>
    %105 = arith.addf %102, %104 : vector<8x128xf32>
    %106 = math.tanh %105 : vector<8x128xf32>
    %cst_51 = arith.constant 1.000000e+00 : f32
    %107 = vector.broadcast %cst_51 : f32 to vector<8x128xf32>
    %108 = arith.subf %107, %101 : vector<8x128xf32>
    %109 = arith.mulf %108, %106 : vector<8x128xf32>
    %110 = arith.mulf %101, %79 : vector<8x128xf32>
    %111 = arith.addf %109, %110 : vector<8x128xf32>
    %c0_52 = arith.constant 0 : index
    %c0_53 = arith.constant 0 : index
    %112 = vector.load %arg14[%c0_52, %c0_53] : memref<8x128xf32, #tpu.memory_space<vmem>>, vector<8x128xf32>
    tpu.vector_store %arg14[%c0_52, %c0_53], %111 {strides = array<i32>} : memref<8x128xf32, #tpu.memory_space<vmem>>, vector<8x128xf32>,
    %c16_54 = arith.constant 16 : index
    %c0_55 = arith.constant 0 : index
    %113 = vector.load %arg12[%c16_54, %c0_55] : memref<64x128xf32, #tpu.memory_space<vmem>>, vector<8x128xf32>
    tpu.vector_store %arg12[%c16_54, %c0_55], %111 {strides = array<i32>} : memref<64x128xf32, #tpu.memory_space<vmem>>, vector<8x128xf32>,
    %c0_56 = arith.constant 0 : index
    %c0_57 = arith.constant 0 : index
    %114 = vector.load %arg14[%c0_56, %c0_57] : memref<8x128xf32, #tpu.memory_space<vmem>>, vector<8x128xf32>
    %c24 = arith.constant 24 : index
    %c0_58 = arith.constant 0 : index
    %115 = vector.load %arg13[%c24, %c0_58] : memref<64x384xf32, #tpu.memory_space<vmem>>, vector<8x384xf32>
    %c0_59 = arith.constant 0 : index
    %c0_60 = arith.constant 0 : index
    %116 = vector.load %arg2[%c0_59, %c0_60] : memref<128x384xf32, #tpu.memory_space<vmem>>, vector<128x384xf32>
    %cst_61 = arith.constant dense<0.000000e+00> : vector<8x384xf32>
    %117 = tpu.matmul %114, %116, %cst_61 {dimension_numbers = #tpu.dot_dimension_numbers<[1], [0], [0], [1], [0, 0, 1, 1], [], []>} : vector<8x128xf32>, vector<128x384xf32>, vector<8x384xf32> -> vector<8x384xf32>
    %c0_62 = arith.constant 0 : index
    %c0_63 = arith.constant 0 : index
    %118 = vector.load %arg4[%c0_62, %c0_63] : memref<1x384xf32, #tpu.memory_space<vmem>>, vector<1x384xf32>
    %119 = vector.broadcast %118 : vector<1x384xf32> to vector<8x384xf32>
    %120 = arith.addf %117, %119 : vector<8x384xf32>
    %121 = vector.extract_strided_slice %115 {offsets = [0, 0], sizes = [8, 128], strides = [1, 1]} : vector<8x384xf32> to vector<8x128xf32>
    %122 = vector.extract_strided_slice %120 {offsets = [0, 0], sizes = [8, 128], strides = [1, 1]} : vector<8x384xf32> to vector<8x128xf32>
    %123 = arith.addf %121, %122 : vector<8x128xf32>
    %124 = arith.negf %123 : vector<8x128xf32>
    %125 = math.exp %124 : vector<8x128xf32>
    %cst_64 = arith.constant 1.000000e+00 : f32
    %126 = vector.broadcast %cst_64 : f32 to vector<8x128xf32>
    %127 = arith.addf %126, %125 : vector<8x128xf32>
    %128 = arith.divf %126, %127 : vector<8x128xf32>
    %129 = vector.extract_strided_slice %115 {offsets = [0, 128], sizes = [8, 128], strides = [1, 1]} : vector<8x384xf32> to vector<8x128xf32>
    %130 = vector.extract_strided_slice %120 {offsets = [0, 128], sizes = [8, 128], strides = [1, 1]} : vector<8x384xf32> to vector<8x128xf32>
    %131 = arith.addf %129, %130 : vector<8x128xf32>
    %132 = arith.negf %131 : vector<8x128xf32>
    %133 = math.exp %132 : vector<8x128xf32>
    %cst_65 = arith.constant 1.000000e+00 : f32
    %134 = vector.broadcast %cst_65 : f32 to vector<8x128xf32>
    %135 = arith.addf %134, %133 : vector<8x128xf32>
    %136 = arith.divf %134, %135 : vector<8x128xf32>
    %137 = vector.extract_strided_slice %115 {offsets = [0, 256], sizes = [8, 128], strides = [1, 1]} : vector<8x384xf32> to vector<8x128xf32>
    %138 = vector.extract_strided_slice %120 {offsets = [0, 256], sizes = [8, 128], strides = [1, 1]} : vector<8x384xf32> to vector<8x128xf32>
    %139 = arith.mulf %128, %138 : vector<8x128xf32>
    %140 = arith.addf %137, %139 : vector<8x128xf32>
    %141 = math.tanh %140 : vector<8x128xf32>
    %cst_66 = arith.constant 1.000000e+00 : f32
    %142 = vector.broadcast %cst_66 : f32 to vector<8x128xf32>
    %143 = arith.subf %142, %136 : vector<8x128xf32>
    %144 = arith.mulf %143, %141 : vector<8x128xf32>
    %145 = arith.mulf %136, %114 : vector<8x128xf32>
    %146 = arith.addf %144, %145 : vector<8x128xf32>
    %c0_67 = arith.constant 0 : index
    %c0_68 = arith.constant 0 : index
    %147 = vector.load %arg14[%c0_67, %c0_68] : memref<8x128xf32, #tpu.memory_space<vmem>>, vector<8x128xf32>
    tpu.vector_store %arg14[%c0_67, %c0_68], %146 {strides = array<i32>} : memref<8x128xf32, #tpu.memory_space<vmem>>, vector<8x128xf32>,
    %c24_69 = arith.constant 24 : index
    %c0_70 = arith.constant 0 : index
    %148 = vector.load %arg12[%c24_69, %c0_70] : memref<64x128xf32, #tpu.memory_space<vmem>>, vector<8x128xf32>
    tpu.vector_store %arg12[%c24_69, %c0_70], %146 {strides = array<i32>} : memref<64x128xf32, #tpu.memory_space<vmem>>, vector<8x128xf32>,
    %c0_71 = arith.constant 0 : index
    %c0_72 = arith.constant 0 : index
    %149 = vector.load %arg14[%c0_71, %c0_72] : memref<8x128xf32, #tpu.memory_space<vmem>>, vector<8x128xf32>
    %c32 = arith.constant 32 : index
    %c0_73 = arith.constant 0 : index
    %150 = vector.load %arg13[%c32, %c0_73] : memref<64x384xf32, #tpu.memory_space<vmem>>, vector<8x384xf32>
    %c0_74 = arith.constant 0 : index
    %c0_75 = arith.constant 0 : index
    %151 = vector.load %arg2[%c0_74, %c0_75] : memref<128x384xf32, #tpu.memory_space<vmem>>, vector<128x384xf32>
    %cst_76 = arith.constant dense<0.000000e+00> : vector<8x384xf32>
    %152 = tpu.matmul %149, %151, %cst_76 {dimension_numbers = #tpu.dot_dimension_numbers<[1], [0], [0], [1], [0, 0, 1, 1], [], []>} : vector<8x128xf32>, vector<128x384xf32>, vector<8x384xf32> -> vector<8x384xf32>
    %c0_77 = arith.constant 0 : index
    %c0_78 = arith.constant 0 : index
    %153 = vector.load %arg4[%c0_77, %c0_78] : memref<1x384xf32, #tpu.memory_space<vmem>>, vector<1x384xf32>
    %154 = vector.broadcast %153 : vector<1x384xf32> to vector<8x384xf32>
    %155 = arith.addf %152, %154 : vector<8x384xf32>
    %156 = vector.extract_strided_slice %150 {offsets = [0, 0], sizes = [8, 128], strides = [1, 1]} : vector<8x384xf32> to vector<8x128xf32>
    %157 = vector.extract_strided_slice %155 {offsets = [0, 0], sizes = [8, 128], strides = [1, 1]} : vector<8x384xf32> to vector<8x128xf32>
    %158 = arith.addf %156, %157 : vector<8x128xf32>
    %159 = arith.negf %158 : vector<8x128xf32>
    %160 = math.exp %159 : vector<8x128xf32>
    %cst_79 = arith.constant 1.000000e+00 : f32
    %161 = vector.broadcast %cst_79 : f32 to vector<8x128xf32>
    %162 = arith.addf %161, %160 : vector<8x128xf32>
    %163 = arith.divf %161, %162 : vector<8x128xf32>
    %164 = vector.extract_strided_slice %150 {offsets = [0, 128], sizes = [8, 128], strides = [1, 1]} : vector<8x384xf32> to vector<8x128xf32>
    %165 = vector.extract_strided_slice %155 {offsets = [0, 128], sizes = [8, 128], strides = [1, 1]} : vector<8x384xf32> to vector<8x128xf32>
    %166 = arith.addf %164, %165 : vector<8x128xf32>
    %167 = arith.negf %166 : vector<8x128xf32>
    %168 = math.exp %167 : vector<8x128xf32>
    %cst_80 = arith.constant 1.000000e+00 : f32
    %169 = vector.broadcast %cst_80 : f32 to vector<8x128xf32>
    %170 = arith.addf %169, %168 : vector<8x128xf32>
    %171 = arith.divf %169, %170 : vector<8x128xf32>
    %172 = vector.extract_strided_slice %150 {offsets = [0, 256], sizes = [8, 128], strides = [1, 1]} : vector<8x384xf32> to vector<8x128xf32>
    %173 = vector.extract_strided_slice %155 {offsets = [0, 256], sizes = [8, 128], strides = [1, 1]} : vector<8x384xf32> to vector<8x128xf32>
    %174 = arith.mulf %163, %173 : vector<8x128xf32>
    %175 = arith.addf %172, %174 : vector<8x128xf32>
    %176 = math.tanh %175 : vector<8x128xf32>
    %cst_81 = arith.constant 1.000000e+00 : f32
    %177 = vector.broadcast %cst_81 : f32 to vector<8x128xf32>
    %178 = arith.subf %177, %171 : vector<8x128xf32>
    %179 = arith.mulf %178, %176 : vector<8x128xf32>
    %180 = arith.mulf %171, %149 : vector<8x128xf32>
    %181 = arith.addf %179, %180 : vector<8x128xf32>
    %c0_82 = arith.constant 0 : index
    %c0_83 = arith.constant 0 : index
    %182 = vector.load %arg14[%c0_82, %c0_83] : memref<8x128xf32, #tpu.memory_space<vmem>>, vector<8x128xf32>
    tpu.vector_store %arg14[%c0_82, %c0_83], %181 {strides = array<i32>} : memref<8x128xf32, #tpu.memory_space<vmem>>, vector<8x128xf32>,
    %c32_84 = arith.constant 32 : index
    %c0_85 = arith.constant 0 : index
    %183 = vector.load %arg12[%c32_84, %c0_85] : memref<64x128xf32, #tpu.memory_space<vmem>>, vector<8x128xf32>
    tpu.vector_store %arg12[%c32_84, %c0_85], %181 {strides = array<i32>} : memref<64x128xf32, #tpu.memory_space<vmem>>, vector<8x128xf32>,
    %c0_86 = arith.constant 0 : index
    %c0_87 = arith.constant 0 : index
    %184 = vector.load %arg14[%c0_86, %c0_87] : memref<8x128xf32, #tpu.memory_space<vmem>>, vector<8x128xf32>
    %c40 = arith.constant 40 : index
    %c0_88 = arith.constant 0 : index
    %185 = vector.load %arg13[%c40, %c0_88] : memref<64x384xf32, #tpu.memory_space<vmem>>, vector<8x384xf32>
    %c0_89 = arith.constant 0 : index
    %c0_90 = arith.constant 0 : index
    %186 = vector.load %arg2[%c0_89, %c0_90] : memref<128x384xf32, #tpu.memory_space<vmem>>, vector<128x384xf32>
    %cst_91 = arith.constant dense<0.000000e+00> : vector<8x384xf32>
    %187 = tpu.matmul %184, %186, %cst_91 {dimension_numbers = #tpu.dot_dimension_numbers<[1], [0], [0], [1], [0, 0, 1, 1], [], []>} : vector<8x128xf32>, vector<128x384xf32>, vector<8x384xf32> -> vector<8x384xf32>
    %c0_92 = arith.constant 0 : index
    %c0_93 = arith.constant 0 : index
    %188 = vector.load %arg4[%c0_92, %c0_93] : memref<1x384xf32, #tpu.memory_space<vmem>>, vector<1x384xf32>
    %189 = vector.broadcast %188 : vector<1x384xf32> to vector<8x384xf32>
    %190 = arith.addf %187, %189 : vector<8x384xf32>
    %191 = vector.extract_strided_slice %185 {offsets = [0, 0], sizes = [8, 128], strides = [1, 1]} : vector<8x384xf32> to vector<8x128xf32>
    %192 = vector.extract_strided_slice %190 {offsets = [0, 0], sizes = [8, 128], strides = [1, 1]} : vector<8x384xf32> to vector<8x128xf32>
    %193 = arith.addf %191, %192 : vector<8x128xf32>
    %194 = arith.negf %193 : vector<8x128xf32>
    %195 = math.exp %194 : vector<8x128xf32>
    %cst_94 = arith.constant 1.000000e+00 : f32
    %196 = vector.broadcast %cst_94 : f32 to vector<8x128xf32>
    %197 = arith.addf %196, %195 : vector<8x128xf32>
    %198 = arith.divf %196, %197 : vector<8x128xf32>
    %199 = vector.extract_strided_slice %185 {offsets = [0, 128], sizes = [8, 128], strides = [1, 1]} : vector<8x384xf32> to vector<8x128xf32>
    %200 = vector.extract_strided_slice %190 {offsets = [0, 128], sizes = [8, 128], strides = [1, 1]} : vector<8x384xf32> to vector<8x128xf32>
    %201 = arith.addf %199, %200 : vector<8x128xf32>
    %202 = arith.negf %201 : vector<8x128xf32>
    %203 = math.exp %202 : vector<8x128xf32>
    %cst_95 = arith.constant 1.000000e+00 : f32
    %204 = vector.broadcast %cst_95 : f32 to vector<8x128xf32>
    %205 = arith.addf %204, %203 : vector<8x128xf32>
    %206 = arith.divf %204, %205 : vector<8x128xf32>
    %207 = vector.extract_strided_slice %185 {offsets = [0, 256], sizes = [8, 128], strides = [1, 1]} : vector<8x384xf32> to vector<8x128xf32>
    %208 = vector.extract_strided_slice %190 {offsets = [0, 256], sizes = [8, 128], strides = [1, 1]} : vector<8x384xf32> to vector<8x128xf32>
    %209 = arith.mulf %198, %208 : vector<8x128xf32>
    %210 = arith.addf %207, %209 : vector<8x128xf32>
    %211 = math.tanh %210 : vector<8x128xf32>
    %cst_96 = arith.constant 1.000000e+00 : f32
    %212 = vector.broadcast %cst_96 : f32 to vector<8x128xf32>
    %213 = arith.subf %212, %206 : vector<8x128xf32>
    %214 = arith.mulf %213, %211 : vector<8x128xf32>
    %215 = arith.mulf %206, %184 : vector<8x128xf32>
    %216 = arith.addf %214, %215 : vector<8x128xf32>
    %c0_97 = arith.constant 0 : index
    %c0_98 = arith.constant 0 : index
    %217 = vector.load %arg14[%c0_97, %c0_98] : memref<8x128xf32, #tpu.memory_space<vmem>>, vector<8x128xf32>
    tpu.vector_store %arg14[%c0_97, %c0_98], %216 {strides = array<i32>} : memref<8x128xf32, #tpu.memory_space<vmem>>, vector<8x128xf32>,
    %c40_99 = arith.constant 40 : index
    %c0_100 = arith.constant 0 : index
    %218 = vector.load %arg12[%c40_99, %c0_100] : memref<64x128xf32, #tpu.memory_space<vmem>>, vector<8x128xf32>
    tpu.vector_store %arg12[%c40_99, %c0_100], %216 {strides = array<i32>} : memref<64x128xf32, #tpu.memory_space<vmem>>, vector<8x128xf32>,
    %c0_101 = arith.constant 0 : index
    %c0_102 = arith.constant 0 : index
    %219 = vector.load %arg14[%c0_101, %c0_102] : memref<8x128xf32, #tpu.memory_space<vmem>>, vector<8x128xf32>
    %c48 = arith.constant 48 : index
    %c0_103 = arith.constant 0 : index
    %220 = vector.load %arg13[%c48, %c0_103] : memref<64x384xf32, #tpu.memory_space<vmem>>, vector<8x384xf32>
    %c0_104 = arith.constant 0 : index
    %c0_105 = arith.constant 0 : index
    %221 = vector.load %arg2[%c0_104, %c0_105] : memref<128x384xf32, #tpu.memory_space<vmem>>, vector<128x384xf32>
    %cst_106 = arith.constant dense<0.000000e+00> : vector<8x384xf32>
    %222 = tpu.matmul %219, %221, %cst_106 {dimension_numbers = #tpu.dot_dimension_numbers<[1], [0], [0], [1], [0, 0, 1, 1], [], []>} : vector<8x128xf32>, vector<128x384xf32>, vector<8x384xf32> -> vector<8x384xf32>
    %c0_107 = arith.constant 0 : index
    %c0_108 = arith.constant 0 : index
    %223 = vector.load %arg4[%c0_107, %c0_108] : memref<1x384xf32, #tpu.memory_space<vmem>>, vector<1x384xf32>
    %224 = vector.broadcast %223 : vector<1x384xf32> to vector<8x384xf32>
    %225 = arith.addf %222, %224 : vector<8x384xf32>
    %226 = vector.extract_strided_slice %220 {offsets = [0, 0], sizes = [8, 128], strides = [1, 1]} : vector<8x384xf32> to vector<8x128xf32>
    %227 = vector.extract_strided_slice %225 {offsets = [0, 0], sizes = [8, 128], strides = [1, 1]} : vector<8x384xf32> to vector<8x128xf32>
    %228 = arith.addf %226, %227 : vector<8x128xf32>
    %229 = arith.negf %228 : vector<8x128xf32>
    %230 = math.exp %229 : vector<8x128xf32>
    %cst_109 = arith.constant 1.000000e+00 : f32
    %231 = vector.broadcast %cst_109 : f32 to vector<8x128xf32>
    %232 = arith.addf %231, %230 : vector<8x128xf32>
    %233 = arith.divf %231, %232 : vector<8x128xf32>
    %234 = vector.extract_strided_slice %220 {offsets = [0, 128], sizes = [8, 128], strides = [1, 1]} : vector<8x384xf32> to vector<8x128xf32>
    %235 = vector.extract_strided_slice %225 {offsets = [0, 128], sizes = [8, 128], strides = [1, 1]} : vector<8x384xf32> to vector<8x128xf32>
    %236 = arith.addf %234, %235 : vector<8x128xf32>
    %237 = arith.negf %236 : vector<8x128xf32>
    %238 = math.exp %237 : vector<8x128xf32>
    %cst_110 = arith.constant 1.000000e+00 : f32
    %239 = vector.broadcast %cst_110 : f32 to vector<8x128xf32>
    %240 = arith.addf %239, %238 : vector<8x128xf32>
    %241 = arith.divf %239, %240 : vector<8x128xf32>
    %242 = vector.extract_strided_slice %220 {offsets = [0, 256], sizes = [8, 128], strides = [1, 1]} : vector<8x384xf32> to vector<8x128xf32>
    %243 = vector.extract_strided_slice %225 {offsets = [0, 256], sizes = [8, 128], strides = [1, 1]} : vector<8x384xf32> to vector<8x128xf32>
    %244 = arith.mulf %233, %243 : vector<8x128xf32>
    %245 = arith.addf %242, %244 : vector<8x128xf32>
    %246 = math.tanh %245 : vector<8x128xf32>
    %cst_111 = arith.constant 1.000000e+00 : f32
    %247 = vector.broadcast %cst_111 : f32 to vector<8x128xf32>
    %248 = arith.subf %247, %241 : vector<8x128xf32>
    %249 = arith.mulf %248, %246 : vector<8x128xf32>
    %250 = arith.mulf %241, %219 : vector<8x128xf32>
    %251 = arith.addf %249, %250 : vector<8x128xf32>
    %c0_112 = arith.constant 0 : index
    %c0_113 = arith.constant 0 : index
    %252 = vector.load %arg14[%c0_112, %c0_113] : memref<8x128xf32, #tpu.memory_space<vmem>>, vector<8x128xf32>
    tpu.vector_store %arg14[%c0_112, %c0_113], %251 {strides = array<i32>} : memref<8x128xf32, #tpu.memory_space<vmem>>, vector<8x128xf32>,
    %c48_114 = arith.constant 48 : index
    %c0_115 = arith.constant 0 : index
    %253 = vector.load %arg12[%c48_114, %c0_115] : memref<64x128xf32, #tpu.memory_space<vmem>>, vector<8x128xf32>
    tpu.vector_store %arg12[%c48_114, %c0_115], %251 {strides = array<i32>} : memref<64x128xf32, #tpu.memory_space<vmem>>, vector<8x128xf32>,
    %c0_116 = arith.constant 0 : index
    %c0_117 = arith.constant 0 : index
    %254 = vector.load %arg14[%c0_116, %c0_117] : memref<8x128xf32, #tpu.memory_space<vmem>>, vector<8x128xf32>
    %c56 = arith.constant 56 : index
    %c0_118 = arith.constant 0 : index
    %255 = vector.load %arg13[%c56, %c0_118] : memref<64x384xf32, #tpu.memory_space<vmem>>, vector<8x384xf32>
    %c0_119 = arith.constant 0 : index
    %c0_120 = arith.constant 0 : index
    %256 = vector.load %arg2[%c0_119, %c0_120] : memref<128x384xf32, #tpu.memory_space<vmem>>, vector<128x384xf32>
    %cst_121 = arith.constant dense<0.000000e+00> : vector<8x384xf32>
    %257 = tpu.matmul %254, %256, %cst_121 {dimension_numbers = #tpu.dot_dimension_numbers<[1], [0], [0], [1], [0, 0, 1, 1], [], []>} : vector<8x128xf32>, vector<128x384xf32>, vector<8x384xf32> -> vector<8x384xf32>
    %c0_122 = arith.constant 0 : index
    %c0_123 = arith.constant 0 : index
    %258 = vector.load %arg4[%c0_122, %c0_123] : memref<1x384xf32, #tpu.memory_space<vmem>>, vector<1x384xf32>
    %259 = vector.broadcast %258 : vector<1x384xf32> to vector<8x384xf32>
    %260 = arith.addf %257, %259 : vector<8x384xf32>
    %261 = vector.extract_strided_slice %255 {offsets = [0, 0], sizes = [8, 128], strides = [1, 1]} : vector<8x384xf32> to vector<8x128xf32>
    %262 = vector.extract_strided_slice %260 {offsets = [0, 0], sizes = [8, 128], strides = [1, 1]} : vector<8x384xf32> to vector<8x128xf32>
    %263 = arith.addf %261, %262 : vector<8x128xf32>
    %264 = arith.negf %263 : vector<8x128xf32>
    %265 = math.exp %264 : vector<8x128xf32>
    %cst_124 = arith.constant 1.000000e+00 : f32
    %266 = vector.broadcast %cst_124 : f32 to vector<8x128xf32>
    %267 = arith.addf %266, %265 : vector<8x128xf32>
    %268 = arith.divf %266, %267 : vector<8x128xf32>
    %269 = vector.extract_strided_slice %255 {offsets = [0, 128], sizes = [8, 128], strides = [1, 1]} : vector<8x384xf32> to vector<8x128xf32>
    %270 = vector.extract_strided_slice %260 {offsets = [0, 128], sizes = [8, 128], strides = [1, 1]} : vector<8x384xf32> to vector<8x128xf32>
    %271 = arith.addf %269, %270 : vector<8x128xf32>
    %272 = arith.negf %271 : vector<8x128xf32>
    %273 = math.exp %272 : vector<8x128xf32>
    %cst_125 = arith.constant 1.000000e+00 : f32
    %274 = vector.broadcast %cst_125 : f32 to vector<8x128xf32>
    %275 = arith.addf %274, %273 : vector<8x128xf32>
    %276 = arith.divf %274, %275 : vector<8x128xf32>
    %277 = vector.extract_strided_slice %255 {offsets = [0, 256], sizes = [8, 128], strides = [1, 1]} : vector<8x384xf32> to vector<8x128xf32>
    %278 = vector.extract_strided_slice %260 {offsets = [0, 256], sizes = [8, 128], strides = [1, 1]} : vector<8x384xf32> to vector<8x128xf32>
    %279 = arith.mulf %268, %278 : vector<8x128xf32>
    %280 = arith.addf %277, %279 : vector<8x128xf32>
    %281 = math.tanh %280 : vector<8x128xf32>
    %cst_126 = arith.constant 1.000000e+00 : f32
    %282 = vector.broadcast %cst_126 : f32 to vector<8x128xf32>
    %283 = arith.subf %282, %276 : vector<8x128xf32>
    %284 = arith.mulf %283, %281 : vector<8x128xf32>
    %285 = arith.mulf %276, %254 : vector<8x128xf32>
    %286 = arith.addf %284, %285 : vector<8x128xf32>
    %c0_127 = arith.constant 0 : index
    %c0_128 = arith.constant 0 : index
    %287 = vector.load %arg14[%c0_127, %c0_128] : memref<8x128xf32, #tpu.memory_space<vmem>>, vector<8x128xf32>
    tpu.vector_store %arg14[%c0_127, %c0_128], %286 {strides = array<i32>} : memref<8x128xf32, #tpu.memory_space<vmem>>, vector<8x128xf32>,
    %c56_129 = arith.constant 56 : index
    %c0_130 = arith.constant 0 : index
    %288 = vector.load %arg12[%c56_129, %c0_130] : memref<64x128xf32, #tpu.memory_space<vmem>>, vector<8x128xf32>
    tpu.vector_store %arg12[%c56_129, %c0_130], %286 {strides = array<i32>} : memref<64x128xf32, #tpu.memory_space<vmem>>, vector<8x128xf32>,
    %c0_131 = arith.constant 0 : index
    %c0_132 = arith.constant 0 : index
    %289 = vector.load %arg12[%c0_131, %c0_132] : memref<64x128xf32, #tpu.memory_space<vmem>>, vector<64x128xf32>
    %c0_133 = arith.constant 0 : index
    %c0_134 = arith.constant 0 : index
    %290 = vector.load %arg5[%c0_133, %c0_134] : memref<128x384xf32, #tpu.memory_space<vmem>>, vector<128x384xf32>
    %cst_135 = arith.constant dense<0.000000e+00> : vector<64x384xf32>
    %291 = tpu.matmul %289, %290, %cst_135 {dimension_numbers = #tpu.dot_dimension_numbers<[1], [0], [0], [1], [0, 0, 1, 1], [], []>} : vector<64x128xf32>, vector<128x384xf32>, vector<64x384xf32> -> vector<64x384xf32>
    %c0_136 = arith.constant 0 : index
    %c0_137 = arith.constant 0 : index
    %292 = vector.load %arg7[%c0_136, %c0_137] : memref<1x384xf32, #tpu.memory_space<vmem>>, vector<1x384xf32>
    %293 = vector.broadcast %292 : vector<1x384xf32> to vector<64x384xf32>
    %294 = arith.addf %291, %293 : vector<64x384xf32>
    %c0_138 = arith.constant 0 : index
    %c0_139 = arith.constant 0 : index
    %295 = vector.load %arg13[%c0_138, %c0_139] : memref<64x384xf32, #tpu.memory_space<vmem>>, vector<64x384xf32>
    tpu.vector_store %arg13[%c0_138, %c0_139], %294 {strides = array<i32>} : memref<64x384xf32, #tpu.memory_space<vmem>>, vector<64x384xf32>,
    %cst_140 = arith.constant 0.000000e+00 : f32
    %296 = vector.broadcast %cst_140 : f32 to vector<8x128xf32>
    %c0_141 = arith.constant 0 : index
    %c0_142 = arith.constant 0 : index
    %297 = vector.load %arg14[%c0_141, %c0_142] : memref<8x128xf32, #tpu.memory_space<vmem>>, vector<8x128xf32>
    tpu.vector_store %arg14[%c0_141, %c0_142], %296 {strides = array<i32>} : memref<8x128xf32, #tpu.memory_space<vmem>>, vector<8x128xf32>,
    %c0_143 = arith.constant 0 : index
    %c0_144 = arith.constant 0 : index
    %298 = vector.load %arg14[%c0_143, %c0_144] : memref<8x128xf32, #tpu.memory_space<vmem>>, vector<8x128xf32>
    %c0_145 = arith.constant 0 : index
    %c0_146 = arith.constant 0 : index
    %299 = vector.load %arg13[%c0_145, %c0_146] : memref<64x384xf32, #tpu.memory_space<vmem>>, vector<8x384xf32>
    %c0_147 = arith.constant 0 : index
    %c0_148 = arith.constant 0 : index
    %300 = vector.load %arg6[%c0_147, %c0_148] : memref<128x384xf32, #tpu.memory_space<vmem>>, vector<128x384xf32>
    %cst_149 = arith.constant dense<0.000000e+00> : vector<8x384xf32>
    %301 = tpu.matmul %298, %300, %cst_149 {dimension_numbers = #tpu.dot_dimension_numbers<[1], [0], [0], [1], [0, 0, 1, 1], [], []>} : vector<8x128xf32>, vector<128x384xf32>, vector<8x384xf32> -> vector<8x384xf32>
    %c0_150 = arith.constant 0 : index
    %c0_151 = arith.constant 0 : index
    %302 = vector.load %arg8[%c0_150, %c0_151] : memref<1x384xf32, #tpu.memory_space<vmem>>, vector<1x384xf32>
    %303 = vector.broadcast %302 : vector<1x384xf32> to vector<8x384xf32>
    %304 = arith.addf %301, %303 : vector<8x384xf32>
    %305 = vector.extract_strided_slice %299 {offsets = [0, 0], sizes = [8, 128], strides = [1, 1]} : vector<8x384xf32> to vector<8x128xf32>
    %306 = vector.extract_strided_slice %304 {offsets = [0, 0], sizes = [8, 128], strides = [1, 1]} : vector<8x384xf32> to vector<8x128xf32>
    %307 = arith.addf %305, %306 : vector<8x128xf32>
    %308 = arith.negf %307 : vector<8x128xf32>
    %309 = math.exp %308 : vector<8x128xf32>
    %cst_152 = arith.constant 1.000000e+00 : f32
    %310 = vector.broadcast %cst_152 : f32 to vector<8x128xf32>
    %311 = arith.addf %310, %309 : vector<8x128xf32>
    %312 = arith.divf %310, %311 : vector<8x128xf32>
    %313 = vector.extract_strided_slice %299 {offsets = [0, 128], sizes = [8, 128], strides = [1, 1]} : vector<8x384xf32> to vector<8x128xf32>
    %314 = vector.extract_strided_slice %304 {offsets = [0, 128], sizes = [8, 128], strides = [1, 1]} : vector<8x384xf32> to vector<8x128xf32>
    %315 = arith.addf %313, %314 : vector<8x128xf32>
    %316 = arith.negf %315 : vector<8x128xf32>
    %317 = math.exp %316 : vector<8x128xf32>
    %cst_153 = arith.constant 1.000000e+00 : f32
    %318 = vector.broadcast %cst_153 : f32 to vector<8x128xf32>
    %319 = arith.addf %318, %317 : vector<8x128xf32>
    %320 = arith.divf %318, %319 : vector<8x128xf32>
    %321 = vector.extract_strided_slice %299 {offsets = [0, 256], sizes = [8, 128], strides = [1, 1]} : vector<8x384xf32> to vector<8x128xf32>
    %322 = vector.extract_strided_slice %304 {offsets = [0, 256], sizes = [8, 128], strides = [1, 1]} : vector<8x384xf32> to vector<8x128xf32>
    %323 = arith.mulf %312, %322 : vector<8x128xf32>
    %324 = arith.addf %321, %323 : vector<8x128xf32>
    %325 = math.tanh %324 : vector<8x128xf32>
    %cst_154 = arith.constant 1.000000e+00 : f32
    %326 = vector.broadcast %cst_154 : f32 to vector<8x128xf32>
    %327 = arith.subf %326, %320 : vector<8x128xf32>
    %328 = arith.mulf %327, %325 : vector<8x128xf32>
    %329 = arith.mulf %320, %298 : vector<8x128xf32>
    %330 = arith.addf %328, %329 : vector<8x128xf32>
    %c0_155 = arith.constant 0 : index
    %c0_156 = arith.constant 0 : index
    %331 = vector.load %arg14[%c0_155, %c0_156] : memref<8x128xf32, #tpu.memory_space<vmem>>, vector<8x128xf32>
    tpu.vector_store %arg14[%c0_155, %c0_156], %330 {strides = array<i32>} : memref<8x128xf32, #tpu.memory_space<vmem>>, vector<8x128xf32>,
    %c0_157 = arith.constant 0 : index
    %c0_158 = arith.constant 0 : index
    %332 = vector.load %arg14[%c0_157, %c0_158] : memref<8x128xf32, #tpu.memory_space<vmem>>, vector<8x128xf32>
    %c8_159 = arith.constant 8 : index
    %c0_160 = arith.constant 0 : index
    %333 = vector.load %arg13[%c8_159, %c0_160] : memref<64x384xf32, #tpu.memory_space<vmem>>, vector<8x384xf32>
    %c0_161 = arith.constant 0 : index
    %c0_162 = arith.constant 0 : index
    %334 = vector.load %arg6[%c0_161, %c0_162] : memref<128x384xf32, #tpu.memory_space<vmem>>, vector<128x384xf32>
    %cst_163 = arith.constant dense<0.000000e+00> : vector<8x384xf32>
    %335 = tpu.matmul %332, %334, %cst_163 {dimension_numbers = #tpu.dot_dimension_numbers<[1], [0], [0], [1], [0, 0, 1, 1], [], []>} : vector<8x128xf32>, vector<128x384xf32>, vector<8x384xf32> -> vector<8x384xf32>
    %c0_164 = arith.constant 0 : index
    %c0_165 = arith.constant 0 : index
    %336 = vector.load %arg8[%c0_164, %c0_165] : memref<1x384xf32, #tpu.memory_space<vmem>>, vector<1x384xf32>
    %337 = vector.broadcast %336 : vector<1x384xf32> to vector<8x384xf32>
    %338 = arith.addf %335, %337 : vector<8x384xf32>
    %339 = vector.extract_strided_slice %333 {offsets = [0, 0], sizes = [8, 128], strides = [1, 1]} : vector<8x384xf32> to vector<8x128xf32>
    %340 = vector.extract_strided_slice %338 {offsets = [0, 0], sizes = [8, 128], strides = [1, 1]} : vector<8x384xf32> to vector<8x128xf32>
    %341 = arith.addf %339, %340 : vector<8x128xf32>
    %342 = arith.negf %341 : vector<8x128xf32>
    %343 = math.exp %342 : vector<8x128xf32>
    %cst_166 = arith.constant 1.000000e+00 : f32
    %344 = vector.broadcast %cst_166 : f32 to vector<8x128xf32>
    %345 = arith.addf %344, %343 : vector<8x128xf32>
    %346 = arith.divf %344, %345 : vector<8x128xf32>
    %347 = vector.extract_strided_slice %333 {offsets = [0, 128], sizes = [8, 128], strides = [1, 1]} : vector<8x384xf32> to vector<8x128xf32>
    %348 = vector.extract_strided_slice %338 {offsets = [0, 128], sizes = [8, 128], strides = [1, 1]} : vector<8x384xf32> to vector<8x128xf32>
    %349 = arith.addf %347, %348 : vector<8x128xf32>
    %350 = arith.negf %349 : vector<8x128xf32>
    %351 = math.exp %350 : vector<8x128xf32>
    %cst_167 = arith.constant 1.000000e+00 : f32
    %352 = vector.broadcast %cst_167 : f32 to vector<8x128xf32>
    %353 = arith.addf %352, %351 : vector<8x128xf32>
    %354 = arith.divf %352, %353 : vector<8x128xf32>
    %355 = vector.extract_strided_slice %333 {offsets = [0, 256], sizes = [8, 128], strides = [1, 1]} : vector<8x384xf32> to vector<8x128xf32>
    %356 = vector.extract_strided_slice %338 {offsets = [0, 256], sizes = [8, 128], strides = [1, 1]} : vector<8x384xf32> to vector<8x128xf32>
    %357 = arith.mulf %346, %356 : vector<8x128xf32>
    %358 = arith.addf %355, %357 : vector<8x128xf32>
    %359 = math.tanh %358 : vector<8x128xf32>
    %cst_168 = arith.constant 1.000000e+00 : f32
    %360 = vector.broadcast %cst_168 : f32 to vector<8x128xf32>
    %361 = arith.subf %360, %354 : vector<8x128xf32>
    %362 = arith.mulf %361, %359 : vector<8x128xf32>
    %363 = arith.mulf %354, %332 : vector<8x128xf32>
    %364 = arith.addf %362, %363 : vector<8x128xf32>
    %c0_169 = arith.constant 0 : index
    %c0_170 = arith.constant 0 : index
    %365 = vector.load %arg14[%c0_169, %c0_170] : memref<8x128xf32, #tpu.memory_space<vmem>>, vector<8x128xf32>
    tpu.vector_store %arg14[%c0_169, %c0_170], %364 {strides = array<i32>} : memref<8x128xf32, #tpu.memory_space<vmem>>, vector<8x128xf32>,
    %c0_171 = arith.constant 0 : index
    %c0_172 = arith.constant 0 : index
    %366 = vector.load %arg14[%c0_171, %c0_172] : memref<8x128xf32, #tpu.memory_space<vmem>>, vector<8x128xf32>
    %c16_173 = arith.constant 16 : index
    %c0_174 = arith.constant 0 : index
    %367 = vector.load %arg13[%c16_173, %c0_174] : memref<64x384xf32, #tpu.memory_space<vmem>>, vector<8x384xf32>
    %c0_175 = arith.constant 0 : index
    %c0_176 = arith.constant 0 : index
    %368 = vector.load %arg6[%c0_175, %c0_176] : memref<128x384xf32, #tpu.memory_space<vmem>>, vector<128x384xf32>
    %cst_177 = arith.constant dense<0.000000e+00> : vector<8x384xf32>
    %369 = tpu.matmul %366, %368, %cst_177 {dimension_numbers = #tpu.dot_dimension_numbers<[1], [0], [0], [1], [0, 0, 1, 1], [], []>} : vector<8x128xf32>, vector<128x384xf32>, vector<8x384xf32> -> vector<8x384xf32>
    %c0_178 = arith.constant 0 : index
    %c0_179 = arith.constant 0 : index
    %370 = vector.load %arg8[%c0_178, %c0_179] : memref<1x384xf32, #tpu.memory_space<vmem>>, vector<1x384xf32>
    %371 = vector.broadcast %370 : vector<1x384xf32> to vector<8x384xf32>
    %372 = arith.addf %369, %371 : vector<8x384xf32>
    %373 = vector.extract_strided_slice %367 {offsets = [0, 0], sizes = [8, 128], strides = [1, 1]} : vector<8x384xf32> to vector<8x128xf32>
    %374 = vector.extract_strided_slice %372 {offsets = [0, 0], sizes = [8, 128], strides = [1, 1]} : vector<8x384xf32> to vector<8x128xf32>
    %375 = arith.addf %373, %374 : vector<8x128xf32>
    %376 = arith.negf %375 : vector<8x128xf32>
    %377 = math.exp %376 : vector<8x128xf32>
    %cst_180 = arith.constant 1.000000e+00 : f32
    %378 = vector.broadcast %cst_180 : f32 to vector<8x128xf32>
    %379 = arith.addf %378, %377 : vector<8x128xf32>
    %380 = arith.divf %378, %379 : vector<8x128xf32>
    %381 = vector.extract_strided_slice %367 {offsets = [0, 128], sizes = [8, 128], strides = [1, 1]} : vector<8x384xf32> to vector<8x128xf32>
    %382 = vector.extract_strided_slice %372 {offsets = [0, 128], sizes = [8, 128], strides = [1, 1]} : vector<8x384xf32> to vector<8x128xf32>
    %383 = arith.addf %381, %382 : vector<8x128xf32>
    %384 = arith.negf %383 : vector<8x128xf32>
    %385 = math.exp %384 : vector<8x128xf32>
    %cst_181 = arith.constant 1.000000e+00 : f32
    %386 = vector.broadcast %cst_181 : f32 to vector<8x128xf32>
    %387 = arith.addf %386, %385 : vector<8x128xf32>
    %388 = arith.divf %386, %387 : vector<8x128xf32>
    %389 = vector.extract_strided_slice %367 {offsets = [0, 256], sizes = [8, 128], strides = [1, 1]} : vector<8x384xf32> to vector<8x128xf32>
    %390 = vector.extract_strided_slice %372 {offsets = [0, 256], sizes = [8, 128], strides = [1, 1]} : vector<8x384xf32> to vector<8x128xf32>
    %391 = arith.mulf %380, %390 : vector<8x128xf32>
    %392 = arith.addf %389, %391 : vector<8x128xf32>
    %393 = math.tanh %392 : vector<8x128xf32>
    %cst_182 = arith.constant 1.000000e+00 : f32
    %394 = vector.broadcast %cst_182 : f32 to vector<8x128xf32>
    %395 = arith.subf %394, %388 : vector<8x128xf32>
    %396 = arith.mulf %395, %393 : vector<8x128xf32>
    %397 = arith.mulf %388, %366 : vector<8x128xf32>
    %398 = arith.addf %396, %397 : vector<8x128xf32>
    %c0_183 = arith.constant 0 : index
    %c0_184 = arith.constant 0 : index
    %399 = vector.load %arg14[%c0_183, %c0_184] : memref<8x128xf32, #tpu.memory_space<vmem>>, vector<8x128xf32>
    tpu.vector_store %arg14[%c0_183, %c0_184], %398 {strides = array<i32>} : memref<8x128xf32, #tpu.memory_space<vmem>>, vector<8x128xf32>,
    %c0_185 = arith.constant 0 : index
    %c0_186 = arith.constant 0 : index
    %400 = vector.load %arg14[%c0_185, %c0_186] : memref<8x128xf32, #tpu.memory_space<vmem>>, vector<8x128xf32>
    %c24_187 = arith.constant 24 : index
    %c0_188 = arith.constant 0 : index
    %401 = vector.load %arg13[%c24_187, %c0_188] : memref<64x384xf32, #tpu.memory_space<vmem>>, vector<8x384xf32>
    %c0_189 = arith.constant 0 : index
    %c0_190 = arith.constant 0 : index
    %402 = vector.load %arg6[%c0_189, %c0_190] : memref<128x384xf32, #tpu.memory_space<vmem>>, vector<128x384xf32>
    %cst_191 = arith.constant dense<0.000000e+00> : vector<8x384xf32>
    %403 = tpu.matmul %400, %402, %cst_191 {dimension_numbers = #tpu.dot_dimension_numbers<[1], [0], [0], [1], [0, 0, 1, 1], [], []>} : vector<8x128xf32>, vector<128x384xf32>, vector<8x384xf32> -> vector<8x384xf32>
    %c0_192 = arith.constant 0 : index
    %c0_193 = arith.constant 0 : index
    %404 = vector.load %arg8[%c0_192, %c0_193] : memref<1x384xf32, #tpu.memory_space<vmem>>, vector<1x384xf32>
    %405 = vector.broadcast %404 : vector<1x384xf32> to vector<8x384xf32>
    %406 = arith.addf %403, %405 : vector<8x384xf32>
    %407 = vector.extract_strided_slice %401 {offsets = [0, 0], sizes = [8, 128], strides = [1, 1]} : vector<8x384xf32> to vector<8x128xf32>
    %408 = vector.extract_strided_slice %406 {offsets = [0, 0], sizes = [8, 128], strides = [1, 1]} : vector<8x384xf32> to vector<8x128xf32>
    %409 = arith.addf %407, %408 : vector<8x128xf32>
    %410 = arith.negf %409 : vector<8x128xf32>
    %411 = math.exp %410 : vector<8x128xf32>
    %cst_194 = arith.constant 1.000000e+00 : f32
    %412 = vector.broadcast %cst_194 : f32 to vector<8x128xf32>
    %413 = arith.addf %412, %411 : vector<8x128xf32>
    %414 = arith.divf %412, %413 : vector<8x128xf32>
    %415 = vector.extract_strided_slice %401 {offsets = [0, 128], sizes = [8, 128], strides = [1, 1]} : vector<8x384xf32> to vector<8x128xf32>
    %416 = vector.extract_strided_slice %406 {offsets = [0, 128], sizes = [8, 128], strides = [1, 1]} : vector<8x384xf32> to vector<8x128xf32>
    %417 = arith.addf %415, %416 : vector<8x128xf32>
    %418 = arith.negf %417 : vector<8x128xf32>
    %419 = math.exp %418 : vector<8x128xf32>
    %cst_195 = arith.constant 1.000000e+00 : f32
    %420 = vector.broadcast %cst_195 : f32 to vector<8x128xf32>
    %421 = arith.addf %420, %419 : vector<8x128xf32>
    %422 = arith.divf %420, %421 : vector<8x128xf32>
    %423 = vector.extract_strided_slice %401 {offsets = [0, 256], sizes = [8, 128], strides = [1, 1]} : vector<8x384xf32> to vector<8x128xf32>
    %424 = vector.extract_strided_slice %406 {offsets = [0, 256], sizes = [8, 128], strides = [1, 1]} : vector<8x384xf32> to vector<8x128xf32>
    %425 = arith.mulf %414, %424 : vector<8x128xf32>
    %426 = arith.addf %423, %425 : vector<8x128xf32>
    %427 = math.tanh %426 : vector<8x128xf32>
    %cst_196 = arith.constant 1.000000e+00 : f32
    %428 = vector.broadcast %cst_196 : f32 to vector<8x128xf32>
    %429 = arith.subf %428, %422 : vector<8x128xf32>
    %430 = arith.mulf %429, %427 : vector<8x128xf32>
    %431 = arith.mulf %422, %400 : vector<8x128xf32>
    %432 = arith.addf %430, %431 : vector<8x128xf32>
    %c0_197 = arith.constant 0 : index
    %c0_198 = arith.constant 0 : index
    %433 = vector.load %arg14[%c0_197, %c0_198] : memref<8x128xf32, #tpu.memory_space<vmem>>, vector<8x128xf32>
    tpu.vector_store %arg14[%c0_197, %c0_198], %432 {strides = array<i32>} : memref<8x128xf32, #tpu.memory_space<vmem>>, vector<8x128xf32>,
    %c0_199 = arith.constant 0 : index
    %c0_200 = arith.constant 0 : index
    %434 = vector.load %arg14[%c0_199, %c0_200] : memref<8x128xf32, #tpu.memory_space<vmem>>, vector<8x128xf32>
    %c32_201 = arith.constant 32 : index
    %c0_202 = arith.constant 0 : index
    %435 = vector.load %arg13[%c32_201, %c0_202] : memref<64x384xf32, #tpu.memory_space<vmem>>, vector<8x384xf32>
    %c0_203 = arith.constant 0 : index
    %c0_204 = arith.constant 0 : index
    %436 = vector.load %arg6[%c0_203, %c0_204] : memref<128x384xf32, #tpu.memory_space<vmem>>, vector<128x384xf32>
    %cst_205 = arith.constant dense<0.000000e+00> : vector<8x384xf32>
    %437 = tpu.matmul %434, %436, %cst_205 {dimension_numbers = #tpu.dot_dimension_numbers<[1], [0], [0], [1], [0, 0, 1, 1], [], []>} : vector<8x128xf32>, vector<128x384xf32>, vector<8x384xf32> -> vector<8x384xf32>
    %c0_206 = arith.constant 0 : index
    %c0_207 = arith.constant 0 : index
    %438 = vector.load %arg8[%c0_206, %c0_207] : memref<1x384xf32, #tpu.memory_space<vmem>>, vector<1x384xf32>
    %439 = vector.broadcast %438 : vector<1x384xf32> to vector<8x384xf32>
    %440 = arith.addf %437, %439 : vector<8x384xf32>
    %441 = vector.extract_strided_slice %435 {offsets = [0, 0], sizes = [8, 128], strides = [1, 1]} : vector<8x384xf32> to vector<8x128xf32>
    %442 = vector.extract_strided_slice %440 {offsets = [0, 0], sizes = [8, 128], strides = [1, 1]} : vector<8x384xf32> to vector<8x128xf32>
    %443 = arith.addf %441, %442 : vector<8x128xf32>
    %444 = arith.negf %443 : vector<8x128xf32>
    %445 = math.exp %444 : vector<8x128xf32>
    %cst_208 = arith.constant 1.000000e+00 : f32
    %446 = vector.broadcast %cst_208 : f32 to vector<8x128xf32>
    %447 = arith.addf %446, %445 : vector<8x128xf32>
    %448 = arith.divf %446, %447 : vector<8x128xf32>
    %449 = vector.extract_strided_slice %435 {offsets = [0, 128], sizes = [8, 128], strides = [1, 1]} : vector<8x384xf32> to vector<8x128xf32>
    %450 = vector.extract_strided_slice %440 {offsets = [0, 128], sizes = [8, 128], strides = [1, 1]} : vector<8x384xf32> to vector<8x128xf32>
    %451 = arith.addf %449, %450 : vector<8x128xf32>
    %452 = arith.negf %451 : vector<8x128xf32>
    %453 = math.exp %452 : vector<8x128xf32>
    %cst_209 = arith.constant 1.000000e+00 : f32
    %454 = vector.broadcast %cst_209 : f32 to vector<8x128xf32>
    %455 = arith.addf %454, %453 : vector<8x128xf32>
    %456 = arith.divf %454, %455 : vector<8x128xf32>
    %457 = vector.extract_strided_slice %435 {offsets = [0, 256], sizes = [8, 128], strides = [1, 1]} : vector<8x384xf32> to vector<8x128xf32>
    %458 = vector.extract_strided_slice %440 {offsets = [0, 256], sizes = [8, 128], strides = [1, 1]} : vector<8x384xf32> to vector<8x128xf32>
    %459 = arith.mulf %448, %458 : vector<8x128xf32>
    %460 = arith.addf %457, %459 : vector<8x128xf32>
    %461 = math.tanh %460 : vector<8x128xf32>
    %cst_210 = arith.constant 1.000000e+00 : f32
    %462 = vector.broadcast %cst_210 : f32 to vector<8x128xf32>
    %463 = arith.subf %462, %456 : vector<8x128xf32>
    %464 = arith.mulf %463, %461 : vector<8x128xf32>
    %465 = arith.mulf %456, %434 : vector<8x128xf32>
    %466 = arith.addf %464, %465 : vector<8x128xf32>
    %c0_211 = arith.constant 0 : index
    %c0_212 = arith.constant 0 : index
    %467 = vector.load %arg14[%c0_211, %c0_212] : memref<8x128xf32, #tpu.memory_space<vmem>>, vector<8x128xf32>
    tpu.vector_store %arg14[%c0_211, %c0_212], %466 {strides = array<i32>} : memref<8x128xf32, #tpu.memory_space<vmem>>, vector<8x128xf32>,
    %c0_213 = arith.constant 0 : index
    %c0_214 = arith.constant 0 : index
    %468 = vector.load %arg14[%c0_213, %c0_214] : memref<8x128xf32, #tpu.memory_space<vmem>>, vector<8x128xf32>
    %c40_215 = arith.constant 40 : index
    %c0_216 = arith.constant 0 : index
    %469 = vector.load %arg13[%c40_215, %c0_216] : memref<64x384xf32, #tpu.memory_space<vmem>>, vector<8x384xf32>
    %c0_217 = arith.constant 0 : index
    %c0_218 = arith.constant 0 : index
    %470 = vector.load %arg6[%c0_217, %c0_218] : memref<128x384xf32, #tpu.memory_space<vmem>>, vector<128x384xf32>
    %cst_219 = arith.constant dense<0.000000e+00> : vector<8x384xf32>
    %471 = tpu.matmul %468, %470, %cst_219 {dimension_numbers = #tpu.dot_dimension_numbers<[1], [0], [0], [1], [0, 0, 1, 1], [], []>} : vector<8x128xf32>, vector<128x384xf32>, vector<8x384xf32> -> vector<8x384xf32>
    %c0_220 = arith.constant 0 : index
    %c0_221 = arith.constant 0 : index
    %472 = vector.load %arg8[%c0_220, %c0_221] : memref<1x384xf32, #tpu.memory_space<vmem>>, vector<1x384xf32>
    %473 = vector.broadcast %472 : vector<1x384xf32> to vector<8x384xf32>
    %474 = arith.addf %471, %473 : vector<8x384xf32>
    %475 = vector.extract_strided_slice %469 {offsets = [0, 0], sizes = [8, 128], strides = [1, 1]} : vector<8x384xf32> to vector<8x128xf32>
    %476 = vector.extract_strided_slice %474 {offsets = [0, 0], sizes = [8, 128], strides = [1, 1]} : vector<8x384xf32> to vector<8x128xf32>
    %477 = arith.addf %475, %476 : vector<8x128xf32>
    %478 = arith.negf %477 : vector<8x128xf32>
    %479 = math.exp %478 : vector<8x128xf32>
    %cst_222 = arith.constant 1.000000e+00 : f32
    %480 = vector.broadcast %cst_222 : f32 to vector<8x128xf32>
    %481 = arith.addf %480, %479 : vector<8x128xf32>
    %482 = arith.divf %480, %481 : vector<8x128xf32>
    %483 = vector.extract_strided_slice %469 {offsets = [0, 128], sizes = [8, 128], strides = [1, 1]} : vector<8x384xf32> to vector<8x128xf32>
    %484 = vector.extract_strided_slice %474 {offsets = [0, 128], sizes = [8, 128], strides = [1, 1]} : vector<8x384xf32> to vector<8x128xf32>
    %485 = arith.addf %483, %484 : vector<8x128xf32>
    %486 = arith.negf %485 : vector<8x128xf32>
    %487 = math.exp %486 : vector<8x128xf32>
    %cst_223 = arith.constant 1.000000e+00 : f32
    %488 = vector.broadcast %cst_223 : f32 to vector<8x128xf32>
    %489 = arith.addf %488, %487 : vector<8x128xf32>
    %490 = arith.divf %488, %489 : vector<8x128xf32>
    %491 = vector.extract_strided_slice %469 {offsets = [0, 256], sizes = [8, 128], strides = [1, 1]} : vector<8x384xf32> to vector<8x128xf32>
    %492 = vector.extract_strided_slice %474 {offsets = [0, 256], sizes = [8, 128], strides = [1, 1]} : vector<8x384xf32> to vector<8x128xf32>
    %493 = arith.mulf %482, %492 : vector<8x128xf32>
    %494 = arith.addf %491, %493 : vector<8x128xf32>
    %495 = math.tanh %494 : vector<8x128xf32>
    %cst_224 = arith.constant 1.000000e+00 : f32
    %496 = vector.broadcast %cst_224 : f32 to vector<8x128xf32>
    %497 = arith.subf %496, %490 : vector<8x128xf32>
    %498 = arith.mulf %497, %495 : vector<8x128xf32>
    %499 = arith.mulf %490, %468 : vector<8x128xf32>
    %500 = arith.addf %498, %499 : vector<8x128xf32>
    %c0_225 = arith.constant 0 : index
    %c0_226 = arith.constant 0 : index
    %501 = vector.load %arg14[%c0_225, %c0_226] : memref<8x128xf32, #tpu.memory_space<vmem>>, vector<8x128xf32>
    tpu.vector_store %arg14[%c0_225, %c0_226], %500 {strides = array<i32>} : memref<8x128xf32, #tpu.memory_space<vmem>>, vector<8x128xf32>,
    %c0_227 = arith.constant 0 : index
    %c0_228 = arith.constant 0 : index
    %502 = vector.load %arg14[%c0_227, %c0_228] : memref<8x128xf32, #tpu.memory_space<vmem>>, vector<8x128xf32>
    %c48_229 = arith.constant 48 : index
    %c0_230 = arith.constant 0 : index
    %503 = vector.load %arg13[%c48_229, %c0_230] : memref<64x384xf32, #tpu.memory_space<vmem>>, vector<8x384xf32>
    %c0_231 = arith.constant 0 : index
    %c0_232 = arith.constant 0 : index
    %504 = vector.load %arg6[%c0_231, %c0_232] : memref<128x384xf32, #tpu.memory_space<vmem>>, vector<128x384xf32>
    %cst_233 = arith.constant dense<0.000000e+00> : vector<8x384xf32>
    %505 = tpu.matmul %502, %504, %cst_233 {dimension_numbers = #tpu.dot_dimension_numbers<[1], [0], [0], [1], [0, 0, 1, 1], [], []>} : vector<8x128xf32>, vector<128x384xf32>, vector<8x384xf32> -> vector<8x384xf32>
    %c0_234 = arith.constant 0 : index
    %c0_235 = arith.constant 0 : index
    %506 = vector.load %arg8[%c0_234, %c0_235] : memref<1x384xf32, #tpu.memory_space<vmem>>, vector<1x384xf32>
    %507 = vector.broadcast %506 : vector<1x384xf32> to vector<8x384xf32>
    %508 = arith.addf %505, %507 : vector<8x384xf32>
    %509 = vector.extract_strided_slice %503 {offsets = [0, 0], sizes = [8, 128], strides = [1, 1]} : vector<8x384xf32> to vector<8x128xf32>
    %510 = vector.extract_strided_slice %508 {offsets = [0, 0], sizes = [8, 128], strides = [1, 1]} : vector<8x384xf32> to vector<8x128xf32>
    %511 = arith.addf %509, %510 : vector<8x128xf32>
    %512 = arith.negf %511 : vector<8x128xf32>
    %513 = math.exp %512 : vector<8x128xf32>
    %cst_236 = arith.constant 1.000000e+00 : f32
    %514 = vector.broadcast %cst_236 : f32 to vector<8x128xf32>
    %515 = arith.addf %514, %513 : vector<8x128xf32>
    %516 = arith.divf %514, %515 : vector<8x128xf32>
    %517 = vector.extract_strided_slice %503 {offsets = [0, 128], sizes = [8, 128], strides = [1, 1]} : vector<8x384xf32> to vector<8x128xf32>
    %518 = vector.extract_strided_slice %508 {offsets = [0, 128], sizes = [8, 128], strides = [1, 1]} : vector<8x384xf32> to vector<8x128xf32>
    %519 = arith.addf %517, %518 : vector<8x128xf32>
    %520 = arith.negf %519 : vector<8x128xf32>
    %521 = math.exp %520 : vector<8x128xf32>
    %cst_237 = arith.constant 1.000000e+00 : f32
    %522 = vector.broadcast %cst_237 : f32 to vector<8x128xf32>
    %523 = arith.addf %522, %521 : vector<8x128xf32>
    %524 = arith.divf %522, %523 : vector<8x128xf32>
    %525 = vector.extract_strided_slice %503 {offsets = [0, 256], sizes = [8, 128], strides = [1, 1]} : vector<8x384xf32> to vector<8x128xf32>
    %526 = vector.extract_strided_slice %508 {offsets = [0, 256], sizes = [8, 128], strides = [1, 1]} : vector<8x384xf32> to vector<8x128xf32>
    %527 = arith.mulf %516, %526 : vector<8x128xf32>
    %528 = arith.addf %525, %527 : vector<8x128xf32>
    %529 = math.tanh %528 : vector<8x128xf32>
    %cst_238 = arith.constant 1.000000e+00 : f32
    %530 = vector.broadcast %cst_238 : f32 to vector<8x128xf32>
    %531 = arith.subf %530, %524 : vector<8x128xf32>
    %532 = arith.mulf %531, %529 : vector<8x128xf32>
    %533 = arith.mulf %524, %502 : vector<8x128xf32>
    %534 = arith.addf %532, %533 : vector<8x128xf32>
    %c0_239 = arith.constant 0 : index
    %c0_240 = arith.constant 0 : index
    %535 = vector.load %arg14[%c0_239, %c0_240] : memref<8x128xf32, #tpu.memory_space<vmem>>, vector<8x128xf32>
    tpu.vector_store %arg14[%c0_239, %c0_240], %534 {strides = array<i32>} : memref<8x128xf32, #tpu.memory_space<vmem>>, vector<8x128xf32>,
    %c0_241 = arith.constant 0 : index
    %c0_242 = arith.constant 0 : index
    %536 = vector.load %arg14[%c0_241, %c0_242] : memref<8x128xf32, #tpu.memory_space<vmem>>, vector<8x128xf32>
    %c56_243 = arith.constant 56 : index
    %c0_244 = arith.constant 0 : index
    %537 = vector.load %arg13[%c56_243, %c0_244] : memref<64x384xf32, #tpu.memory_space<vmem>>, vector<8x384xf32>
    %c0_245 = arith.constant 0 : index
    %c0_246 = arith.constant 0 : index
    %538 = vector.load %arg6[%c0_245, %c0_246] : memref<128x384xf32, #tpu.memory_space<vmem>>, vector<128x384xf32>
    %cst_247 = arith.constant dense<0.000000e+00> : vector<8x384xf32>
    %539 = tpu.matmul %536, %538, %cst_247 {dimension_numbers = #tpu.dot_dimension_numbers<[1], [0], [0], [1], [0, 0, 1, 1], [], []>} : vector<8x128xf32>, vector<128x384xf32>, vector<8x384xf32> -> vector<8x384xf32>
    %c0_248 = arith.constant 0 : index
    %c0_249 = arith.constant 0 : index
    %540 = vector.load %arg8[%c0_248, %c0_249] : memref<1x384xf32, #tpu.memory_space<vmem>>, vector<1x384xf32>
    %541 = vector.broadcast %540 : vector<1x384xf32> to vector<8x384xf32>
    %542 = arith.addf %539, %541 : vector<8x384xf32>
    %543 = vector.extract_strided_slice %537 {offsets = [0, 0], sizes = [8, 128], strides = [1, 1]} : vector<8x384xf32> to vector<8x128xf32>
    %544 = vector.extract_strided_slice %542 {offsets = [0, 0], sizes = [8, 128], strides = [1, 1]} : vector<8x384xf32> to vector<8x128xf32>
    %545 = arith.addf %543, %544 : vector<8x128xf32>
    %546 = arith.negf %545 : vector<8x128xf32>
    %547 = math.exp %546 : vector<8x128xf32>
    %cst_250 = arith.constant 1.000000e+00 : f32
    %548 = vector.broadcast %cst_250 : f32 to vector<8x128xf32>
    %549 = arith.addf %548, %547 : vector<8x128xf32>
    %550 = arith.divf %548, %549 : vector<8x128xf32>
    %551 = vector.extract_strided_slice %537 {offsets = [0, 128], sizes = [8, 128], strides = [1, 1]} : vector<8x384xf32> to vector<8x128xf32>
    %552 = vector.extract_strided_slice %542 {offsets = [0, 128], sizes = [8, 128], strides = [1, 1]} : vector<8x384xf32> to vector<8x128xf32>
    %553 = arith.addf %551, %552 : vector<8x128xf32>
    %554 = arith.negf %553 : vector<8x128xf32>
    %555 = math.exp %554 : vector<8x128xf32>
    %cst_251 = arith.constant 1.000000e+00 : f32
    %556 = vector.broadcast %cst_251 : f32 to vector<8x128xf32>
    %557 = arith.addf %556, %555 : vector<8x128xf32>
    %558 = arith.divf %556, %557 : vector<8x128xf32>
    %559 = vector.extract_strided_slice %537 {offsets = [0, 256], sizes = [8, 128], strides = [1, 1]} : vector<8x384xf32> to vector<8x128xf32>
    %560 = vector.extract_strided_slice %542 {offsets = [0, 256], sizes = [8, 128], strides = [1, 1]} : vector<8x384xf32> to vector<8x128xf32>
    %561 = arith.mulf %550, %560 : vector<8x128xf32>
    %562 = arith.addf %559, %561 : vector<8x128xf32>
    %563 = math.tanh %562 : vector<8x128xf32>
    %cst_252 = arith.constant 1.000000e+00 : f32
    %564 = vector.broadcast %cst_252 : f32 to vector<8x128xf32>
    %565 = arith.subf %564, %558 : vector<8x128xf32>
    %566 = arith.mulf %565, %563 : vector<8x128xf32>
    %567 = arith.mulf %558, %536 : vector<8x128xf32>
    %568 = arith.addf %566, %567 : vector<8x128xf32>
    %c0_253 = arith.constant 0 : index
    %c0_254 = arith.constant 0 : index
    %569 = vector.load %arg14[%c0_253, %c0_254] : memref<8x128xf32, #tpu.memory_space<vmem>>, vector<8x128xf32>
    tpu.vector_store %arg14[%c0_253, %c0_254], %568 {strides = array<i32>} : memref<8x128xf32, #tpu.memory_space<vmem>>, vector<8x128xf32>,
    %c0_255 = arith.constant 0 : index
    %c0_256 = arith.constant 0 : index
    %570 = vector.load %arg14[%c0_255, %c0_256] : memref<8x128xf32, #tpu.memory_space<vmem>>, vector<8x128xf32>
    %c0_257 = arith.constant 0 : index
    %c0_258 = arith.constant 0 : index
    %571 = vector.load %arg9[%c0_257, %c0_258] : memref<128x128xf32, #tpu.memory_space<vmem>>, vector<128x128xf32>
    %cst_259 = arith.constant dense<0.000000e+00> : vector<8x128xf32>
    %572 = tpu.matmul %570, %571, %cst_259 {dimension_numbers = #tpu.dot_dimension_numbers<[1], [0], [0], [1], [0, 0, 1, 1], [], []>} : vector<8x128xf32>, vector<128x128xf32>, vector<8x128xf32> -> vector<8x128xf32>
    %c0_260 = arith.constant 0 : index
    %c0_261 = arith.constant 0 : index
    %573 = vector.load %arg10[%c0_260, %c0_261] : memref<1x128xf32, #tpu.memory_space<vmem>>, vector<1x128xf32>
    %574 = vector.broadcast %573 : vector<1x128xf32> to vector<8x128xf32>
    %575 = arith.addf %572, %574 : vector<8x128xf32>
    %c0_262 = arith.constant 0 : index
    %c0_263 = arith.constant 0 : index
    %576 = vector.load %arg11[%c0_262, %c0_263] : memref<8x128xf32, #tpu.memory_space<vmem>>, vector<8x128xf32>
    tpu.vector_store %arg11[%c0_262, %c0_263], %575 {strides = array<i32>} : memref<8x128xf32, #tpu.memory_space<vmem>>, vector<8x128xf32>,
    return
  }
}

</mosaic_0001>

<bundles_post_ra>
// kernel: gru_forward.1
= control target key start
LH: loop header
LB: loop body
LE: loop exit
PB: predicated region body
PF: predicated region fallthrough
CT: control target
= control target key end

     0   :  { %16 = vsyncpa [#allocation6], 0  ;;  %s7854_s0 = inlined_call_operand.vmem [shape: f32[64,128], index: 0, kind: input, shape index: {}]   ;;  %s7855_s1 = inlined_call_operand.hbm [shape: f32[128,384], index: 1, kind: input, shape index: {}]   ;;  %s7856_s2 = inlined_call_operand.hbm [shape: f32[128,384], index: 2, kind: input, shape index: {}]   ;;  %s7857_s3 = inlined_call_operand.vmem [shape: f32[1,384], index: 3, kind: input, shape index: {}]   ;;  %s7858_s4 = inlined_call_operand.vmem [shape: f32[1,384], index: 4, kind: input, shape index: {}]   ;;  %s7859_s5 = inlined_call_operand.hbm [shape: f32[128,384], index: 5, kind: input, shape index: {}]   ;;  %s7860_s6 = inlined_call_operand.hbm [shape: f32[128,384], index: 6, kind: input, shape index: {}]   ;;  %s7861_s7 = inlined_call_operand.vmem [shape: f32[1,384], index: 7, kind: input, shape index: {}]   ;;  %s7862_s8 = inlined_call_operand.vmem [shape: f32[1,384], index: 8, kind: input, shape index: {}]   ;;  %s7863_s9 = inlined_call_operand.hbm [shape: f32[128,128], index: 9, kind: input, shape index: {}]   ;;  %s7864_s10 = inlined_call_operand.vmem [shape: f32[1,128], index: 10, kind: input, shape index: {}]   ;;  %s7865_s11 = inlined_call_operand.vmem [shape: f32[8,128], index: 11, kind: output, shape index: {}]  }
   0x1   :  { %17 = vsyncpa [#allocation8], 0 }
   0x2   :  { %18 = vsyncpa [#allocation11], 0  ;;  %s5890_s17 = smov [#allocation7]   ;;  %s5891_s19 = smov [#allocation10]  }
   0x3   :  { %s38_s18 = sshll.u32 %s5890_s17, 4  ;;  %s66_s20 = sshll.u32 %s5891_s19, 4  ;;  %s39_s18 = int_to_ptr.vmem [resolvable:$true] %s38_s18  ;;  %s67_s20 = int_to_ptr.vmem [resolvable:$true] %s66_s20 }
   0x4   :  { %s5792_s21 = scalar_lea.vmem %s39_s18, 6144  ;;  %p5797_p1 = scmp.lt.s32.totalorder %s39_s18, %s39_s18 }
   0x5   :  { %p5793_p0 = scmp.ne.s32.totalorder %s39_s18, %s5792_s21  ;;  %p5798_p2 = scmp.lt.s32.totalorder %s5792_s21, %s5792_s21 }
   0x7   :  { %p5799_p3 = por %p5798_p2, %p5797_p1 }
   0x9   :  { %p5800_p4 = pnand %p5799_p3, %p5793_p0 }
   0xb   :  { %5803 = shalt.err (!%p5800_p4)
}
   0xc   :  { %s5892_s22 = smov 384   ;;  %s5893_s23 = smov 24  }
   0xd   :  { %44 = dma.hbm_to_vmem [thread:$0]  %s7856_s2, 6144, %s39_s18, [#allocation8], %s5892_s22, %s5892_s22, %s5893_s23  }
   0xe   :  { %s5812_s26 = scalar_lea.vmem %s67_s20, 6144  ;;  %p5817_p6 = scmp.lt.s32.totalorder %s67_s20, %s67_s20 }
   0xf   :  { %p5813_p5 = scmp.ne.s32.totalorder %s67_s20, %s5812_s26  ;;  %p5818_p7 = scmp.lt.s32.totalorder %s5812_s26, %s5812_s26 }
  0x11   :  { %p5819_p8 = por %p5818_p7, %p5817_p6 }
  0x13   :  { %p5820_p9 = pnand %p5819_p8, %p5813_p5 }
  0x15   :  { %5823 = shalt.err (!%p5820_p9)
}
  0x16   :  { %72 = dma.hbm_to_vmem [thread:$0]  %s7860_s6, 6144, %s67_s20, [#allocation11], %s5892_s22, %s5892_s22, %s5893_s23  }
  0x17   :  { %s5894_s29 = smov [#allocation5]   ;;  %s5895_s12 = smov [#allocation9]  }
  0x18   :  { %s26_s30 = sshll.u32 %s5894_s29, 4  ;;  %s54_s13 = sshll.u32 %s5895_s12, 4  ;;  %s27_s30 = int_to_ptr.vmem [resolvable:$true] %s26_s30  ;;  %s55_s13 = int_to_ptr.vmem [resolvable:$true] %s54_s13 }
  0x19   :  { %s5832_s2 = scalar_lea.vmem %s27_s30, 6144  ;;  %p5837_p11 = scmp.lt.s32.totalorder %s27_s30, %s27_s30 }
  0x1a   :  { %p5833_p10 = scmp.ne.s32.totalorder %s27_s30, %s5832_s2  ;;  %p5838_p12 = scmp.lt.s32.totalorder %s5832_s2, %s5832_s2 }
  0x1c   :  { %p5839_p13 = por %p5838_p12, %p5837_p11 }
  0x1e   :  { %p5840_p0 = pnand %p5839_p13, %p5833_p10 }
  0x20   :  { %5843 = shalt.err (!%p5840_p0)
}
  0x21   :  { %32 = dma.hbm_to_vmem [thread:$0]  %s7855_s1, 6144, %s27_s30, [#allocation6], %s5892_s22, %s5892_s22, %s5893_s23  }
  0x22   :  { %s5852_s6 = scalar_lea.vmem %s55_s13, 6144  ;;  %p5857_p2 = scmp.lt.s32.totalorder %s55_s13, %s55_s13 }
  0x23   :  { %p5853_p1 = scmp.ne.s32.totalorder %s55_s13, %s5852_s6  ;;  %p5858_p3 = scmp.lt.s32.totalorder %s5852_s6, %s5852_s6 }
  0x25   :  { %p5859_p4 = por %p5858_p3, %p5857_p2 }
  0x27   :  { %p5860_p5 = pnand %p5859_p4, %p5853_p1 }
  0x29   :  { %5863 = shalt.err (!%p5860_p5)
}
  0x2a   :  { %60 = dma.hbm_to_vmem [thread:$0]  %s7859_s5, 6144, %s55_s13, [#allocation8], %s5892_s22, %s5892_s22, %s5893_s23  }
  0x2b   :  { %s5896_s18 = smov [#allocation12]  }
  0x2c   :  { %s82_s19 = sshll.u32 %s5896_s18, 4  ;;  %s83_s19 = int_to_ptr.vmem [resolvable:$true] %s82_s19 }
  0x2d   :  { %s5872_s20 = scalar_lea.vmem %s83_s19, 2048  ;;  %p5877_p7 = scmp.lt.s32.totalorder %s83_s19, %s83_s19 }
  0x2e   :  { %p5873_p6 = scmp.ne.s32.totalorder %s83_s19, %s5872_s20  ;;  %p5878_p8 = scmp.lt.s32.totalorder %s5872_s20, %s5872_s20 }
  0x30   :  { %p5879_p9 = por %p5878_p8, %p5877_p7 }
  0x32   :  { %p5880_p10 = pnand %p5879_p9, %p5873_p6 }
  0x34   :  { %5883 = shalt.err (!%p5880_p10)
}
  0x35   :  { %s5897_s1 = smov 128   ;;  %s5898_s21 = smov 8  }
  0x36   :  { %88 = dma.hbm_to_vmem [thread:$0]  %s7863_s9, 2048, %s83_s19, [#allocation11], %s5897_s1, %s5897_s1, %s5898_s21  }
  0x37   :  { %5884 = dma.done.wait [#allocation6], 6144  }
  0x38   :  { %5885 = vsyncadd [#allocation6], 4294961152 }
  0x39   :  { %5886 = dma.done.wait [#allocation8], 12288  }
  0x3a   :  { %5887 = vsyncadd [#allocation8], 4294955008 }
  0x3b   :  { %5888 = dma.done.wait [#allocation11], 8192  }
  0x3c   :  { %5889 = vsyncadd [#allocation11], 4294959104  ;;  %v7866_v0 = vmov 0.0   ;;  %v160_v1 = vld [vmem:[#allocation5 + $0x170] sm:$0xff]  ;;  %v159_v2 = vld [vmem:[#allocation5 + $0x168] sm:$0xff]  ;;  %vm5900_vm0 = vmmov 0  }
  0x3d   :  { %243 = vmatprep.mubr.f32.mxu0 %v7866_v0  ;;  %v157_v3 = vld [vmem:[#allocation5 + $0x158] sm:$0xff]  ;;  %179 = vmatprep.subr.mxu0 %v160_v1  ;;  %v156_v4 = vld [vmem:[#allocation5 + $0x150] sm:$0xff]  ;;  %v154_v5 = vld [vmem:[#allocation5 + $0x140] sm:$0xff] }
  0x3e   :  { %180 = vmatpush1.msra.mxu0 %v159_v2  ;;  %v153_v6 = vld [vmem:[#allocation5 + $0x138] sm:$0xff]  ;;  %v151_v7 = vld [vmem:[#allocation5 + $0x128] sm:$0xff]  ;;  %v150_v8 = vld [vmem:[#allocation5 + $0x120] sm:$0xff] }
  0x3f   :  { %181 = vmatprep.subr.mxu0 %v157_v3  ;;  %v148_v9 = vld [vmem:[#allocation5 + $0x110] sm:$0xff]  ;;  %v147_v10 = vld [vmem:[#allocation5 + $0x108] sm:$0xff]  ;;  %v145_v11 = vld [vmem:[#allocation5 + $0xf8] sm:$0xff] }
  0x40   :  { %182 = vmatpush1.msra.mxu0 %v156_v4  ;;  %v144_v12 = vld [vmem:[#allocation5 + $0xf0] sm:$0xff]  ;;  %v142_v13 = vld [vmem:[#allocation5 + $0xe0] sm:$0xff]  ;;  %v141_v15 = vld [vmem:[#allocation5 + $0xd8] sm:$0xff] }
  0x41   :  { %183 = vmatprep.subr.mxu0 %v154_v5  ;;  %v5992_v14 = vld [vmem:[%s7854_s0] sm:$0xff]  ;;  %v161_v16 = vld [vmem:[#allocation5 + $0x178] sm:$0xff]  ;;  %v139_v17 = vld [vmem:[#allocation5 + $0xc8] sm:$0xff] }
  0x42   :  { %184 = vmatpush1.msra.mxu0 %v153_v6  ;;  %4962 = vmatprep.mubr.f32.mxu1 %v5992_v14  ;;  %v158_v18 = vld [vmem:[#allocation5 + $0x160] sm:$0xff]  ;;  %v155_v20 = vld [vmem:[#allocation5 + $0x148] sm:$0xff]  ;;  %v136_v21 = vld [vmem:[#allocation5 + $0xb0] sm:$0xff] }
  0x43   :  { %185 = vmatprep.subr.mxu0 %v151_v7  ;;  %4930 = vmatprep.subr.mxu1 %v161_v16  ;;  %v138_v19 = vld [vmem:[#allocation5 + $0xc0] sm:$0xff]  ;;  %v135_v22 = vld [vmem:[#allocation5 + $0xa8] sm:$0xff]  ;;  %v152_v23 = vld [vmem:[#allocation5 + $0x130] sm:$0xff] }
  0x44   :  { %186 = vmatpush1.msra.mxu0 %v150_v8  ;;  %4931 = vmatpush3.msra.mxu1 %v161_v16  ;;  %v133_v24 = vld [vmem:[#allocation5 + $0x98] sm:$0xff]  ;;  %v132_v25 = vld [vmem:[#allocation5 + $0x90] sm:$0xff]  ;;  %v130_v27 = vld [vmem:[#allocation5 + $0x80] sm:$0xff] }
  0x45   :  { %187 = vmatprep.subr.mxu0 %v148_v9  ;;  %4932 = vmatprep.subr.mxu1 %v158_v18  ;;  %v149_v26 = vld [vmem:[#allocation5 + $0x118] sm:$0xff]  ;;  %v146_v29 = vld [vmem:[#allocation5 + $0x100] sm:$0xff]  ;;  %v127_v30 = vld [vmem:[#allocation5 + $0x68] sm:$0xff] }
  0x46   :  { %188 = vmatpush1.msra.mxu0 %v147_v10  ;;  %4933 = vmatpush3.msra.mxu1 %v158_v18  ;;  %v129_v28 = vld [vmem:[#allocation5 + $0x78] sm:$0xff]  ;;  %v126_v31 = vld [vmem:[#allocation5 + $0x60] sm:$0xff]  ;;  %v143_v32 = vld [vmem:[#allocation5 + $0xe8] sm:$0xff] }
  0x47   :  { %189 = vmatprep.subr.mxu0 %v145_v11  ;;  %4934 = vmatprep.subr.mxu1 %v155_v20  ;;  %v124_v33 = vld [vmem:[#allocation5 + $0x50] sm:$0xff]  ;;  %v123_v34 = vld [vmem:[#allocation5 + $0x48] sm:$0xff]  ;;  %v121_v36 = vld [vmem:[#allocation5 + $0x38] sm:$0xff] }
  0x48   :  { %190 = vmatpush1.msra.mxu0 %v144_v12  ;;  %4935 = vmatpush3.msra.mxu1 %v155_v20  ;;  %v140_v35 = vld [vmem:[#allocation5 + $0xd0] sm:$0xff]  ;;  %v137_v38 = vld [vmem:[#allocation5 + $0xb8] sm:$0xff]  ;;  %v118_v39 = vld [vmem:[#allocation5 + $0x20] sm:$0xff] }
  0x49   :  { %191 = vmatprep.subr.mxu0 %v142_v13  ;;  %4936 = vmatprep.subr.mxu1 %v152_v23  ;;  %v120_v37 = vld [vmem:[#allocation5 + $0x30] sm:$0xff]  ;;  %v117_v40 = vld [vmem:[#allocation5 + $0x18] sm:$0xff]  ;;  %v134_v41 = vld [vmem:[#allocation5 + $0xa0] sm:$0xff] }
  0x4a   :  { %192 = vmatpush1.msra.mxu0 %v141_v15  ;;  %4937 = vmatpush3.msra.mxu1 %v152_v23  ;;  %v115_v42 = vld [vmem:[#allocation5 + $0x8] sm:$0xff]  ;;  %v114_v43 = vld [vmem:[#allocation5] sm:$0xff]  ;;  %v5995_v45 = vld [vmem:[#allocation7 + $0x170] sm:$0xff] }
  0x4b   :  { %193 = vmatprep.subr.mxu0 %v139_v17  ;;  %4938 = vmatprep.subr.mxu1 %v149_v26  ;;  %v131_v44 = vld [vmem:[#allocation5 + $0x88] sm:$0xff]  ;;  %v5999_v47 = vld [vmem:[#allocation7 + $0x158] sm:$0xff]  ;;  %v6003_v48 = vld [vmem:[#allocation7 + $0x150] sm:$0xff] }
  0x4c   :  { %194 = vmatpush1.msra.mxu0 %v138_v19  ;;  %4939 = vmatpush3.msra.mxu1 %v149_v26  ;;  %v5997_v46 = vld [vmem:[#allocation7 + $0x168] sm:$0xff]  ;;  %v128_v49 = vld [vmem:[#allocation5 + $0x70] sm:$0xff]  ;;  %v6012_v51 = vld [vmem:[#allocation7 + $0x140] sm:$0xff] }
  0x4d   :  { %195 = vmatprep.subr.mxu0 %v136_v21  ;;  %4940 = vmatprep.subr.mxu1 %v146_v29  ;;  %v6010_v50 = vld [vmem:[%s7854_s0 + $0x8] sm:$0xff]  ;;  %v6015_v52 = vld [vmem:[#allocation7 + $0x138] sm:$0xff]  ;;  %v6022_v54 = vld [vmem:[#allocation7 + $0x120] sm:$0xff] }
  0x4e   :  { %196 = vmatpush1.msra.mxu0 %v135_v22  ;;  %4941 = vmatpush3.msra.mxu1 %v146_v29  ;;  %v6018_v53 = vld [vmem:[#allocation7 + $0x128] sm:$0xff]  ;;  %v125_v55 = vld [vmem:[#allocation5 + $0x58] sm:$0xff]  ;;  %v6029_v56 = vld [vmem:[%s7854_s0 + $0x10] sm:$0xff] }
  0x4f   :  { %197 = vmatprep.subr.mxu0 %v133_v24  ;;  %4942 = vmatprep.subr.mxu1 %v143_v32  ;;  %v6031_v57 = vld [vmem:[#allocation7 + $0x110] sm:$0xff]  ;;  %v6034_v58 = vld [vmem:[#allocation7 + $0x108] sm:$0xff]  ;;  %v6037_v59 = vld [vmem:[#allocation7 + $0xf8] sm:$0xff] }
  0x50   :  { %198 = vmatpush1.msra.mxu0 %v132_v25  ;;  %4943 = vmatpush3.msra.mxu1 %v143_v32  ;;  %v6041_v60 = vld [vmem:[#allocation7 + $0xf0] sm:$0xff]  ;;  %v122_v61 = vld [vmem:[#allocation5 + $0x40] sm:$0xff]  ;;  %v6048_v62 = vld [vmem:[%s7854_s0 + $0x18] sm:$0xff] }
  0x51   :  { %199 = vmatprep.subr.mxu0 %v130_v27  ;;  %4944 = vmatprep.subr.mxu1 %v140_v35  ;;  %v6050_v63 = vld [vmem:[#allocation7 + $0xe0] sm:$0xff]  ;;  %v6053_v1 = vld [vmem:[#allocation7 + $0xd8] sm:$0xff]  ;;  %v6056_v2 = vld [vmem:[#allocation7 + $0xc8] sm:$0xff] }
  0x52   :  { %200 = vmatpush1.msra.mxu0 %v129_v28  ;;  %4945 = vmatpush3.msra.mxu1 %v140_v35  ;;  %v6060_v3 = vld [vmem:[#allocation7 + $0xc0] sm:$0xff]  ;;  %v119_v4 = vld [vmem:[#allocation5 + $0x28] sm:$0xff]  ;;  %v6069_v6 = vld [vmem:[#allocation7 + $0xb0] sm:$0xff] }
  0x53   :  { %201 = vmatprep.subr.mxu0 %v127_v30  ;;  %4946 = vmatprep.subr.mxu1 %v137_v38  ;;  %v6067_v5 = vld [vmem:[%s7854_s0 + $0x20] sm:$0xff]  ;;  %v6072_v7 = vld [vmem:[#allocation7 + $0xa8] sm:$0xff]  ;;  %v6075_v8 = vld [vmem:[#allocation7 + $0x98] sm:$0xff] }
  0x54   :  { %202 = vmatpush1.msra.mxu0 %v126_v31  ;;  %4947 = vmatpush3.msra.mxu1 %v137_v38  ;;  %v6079_v9 = vld [vmem:[#allocation7 + $0x90] sm:$0xff]  ;;  %v111_v11 = vld [vmem:[%s7854_s0 + $0x28] sm:$0xff]  ;;  %v6086_v12 = vld [vmem:[#allocation7 + $0x80] sm:$0xff] }
  0x55   :  { %203 = vmatprep.subr.mxu0 %v124_v33  ;;  %4948 = vmatprep.subr.mxu1 %v134_v41  ;;  %v116_v10 = vld [vmem:[#allocation5 + $0x10] sm:$0xff]  ;;  %v6089_v13 = vld [vmem:[#allocation7 + $0x78] sm:$0xff]  ;;  %v6095_v15 = vld [vmem:[#allocation7 + $0x60] sm:$0xff] }
  0x56   :  { %204 = vmatpush1.msra.mxu0 %v123_v34  ;;  %4949 = vmatpush3.msra.mxu1 %v134_v41  ;;  %v112_v16 = vld [vmem:[%s7854_s0 + $0x30] sm:$0xff]  ;;  %v6105_v18 = vld [vmem:[#allocation7 + $0x48] sm:$0xff]  ;;  %v6108_v19 = vld [vmem:[#allocation7 + $0x38] sm:$0xff] }
  0x57   :  { %205 = vmatprep.subr.mxu0 %v121_v36  ;;  %4950 = vmatprep.subr.mxu1 %v131_v44  ;;  %v6102_v17 = vld [vmem:[#allocation7 + $0x50] sm:$0xff]  ;;  %7957 = vst [vmem:[#allocation16_spill] sm:$0xff] %v6108_v19  ;;  %v6114_v21 = vld [vmem:[#allocation7 + $0x178] sm:$0xff]  ;;  %v6121_v23 = vld [vmem:[#allocation7 + $0x20] sm:$0xff] }
  0x58   :  { %206 = vmatpush1.msra.mxu0 %v120_v37  ;;  %4951 = vmatpush3.msra.mxu1 %v131_v44  ;;  %v6112_v20 = vld [vmem:[#allocation7 + $0x30] sm:$0xff]  ;;  %v113_v22 = vld [vmem:[%s7854_s0 + $0x38] sm:$0xff]  ;;  %7959 = vst [vmem:[#allocation18_spill] sm:$0xff] %v6121_v23  ;;  %v6128_v25 = vld [vmem:[#allocation7 + $0x8] sm:$0xff] }
  0x59   :  { %207 = vmatprep.subr.mxu0 %v118_v39  ;;  %4952 = vmatprep.subr.mxu1 %v128_v49  ;;  %7958 = vst [vmem:[#allocation17_spill] sm:$0xff] %v6112_v20  ;;  %v6124_v24 = vld [vmem:[#allocation7 + $0x18] sm:$0xff]  ;;  %7961 = vst [vmem:[#allocation20_spill] sm:$0xff] %v6128_v25  ;;  %v6132_v26 = vld [vmem:[#allocation7] sm:$0xff] }
  0x5a   :  { %208 = vmatpush1.msra.mxu0 %v117_v40  ;;  %4953 = vmatpush3.msra.mxu1 %v128_v49  ;;  %7960 = vst [vmem:[#allocation19_spill] sm:$0xff] %v6124_v24  ;;  %7962 = vst [vmem:[#allocation21_spill] sm:$0xff] %v6132_v26  ;;  %v6134_v27 = vld [vmem:[#allocation7 + $0x160] sm:$0xff]  ;;  %v6140_v28 = vld [vmem:[#allocation7 + $0x148] sm:$0xff] }
  0x5b   :  { %209 = vmatprep.subr.mxu0 %v115_v42  ;;  %4954 = vmatprep.subr.mxu1 %v125_v55  ;;  %v6146_v29 = vld [vmem:[#allocation7 + $0x130] sm:$0xff]  ;;  %v6151_v30 = vld [vmem:[#allocation7 + $0x118] sm:$0xff]  ;;  %v6157_v31 = vld [vmem:[#allocation7 + $0x100] sm:$0xff]  ;;  %v164_v42 = vlaneseq }
  0x5c   :  { %210 = vmatpush1.msra.mxu0 %v114_v43  ;;  %4955 = vmatpush3.msra.mxu1 %v125_v55  ;;  %v6163_v32 = vld [vmem:[#allocation7 + $0xe8] sm:$0xff]  ;;  %v6167_v33 = vld [vmem:[#allocation7 + $0xd0] sm:$0xff]  ;;  %v6173_v34 = vld [vmem:[#allocation7 + $0xb8] sm:$0xff] }
  0x5d   :  { %244 = vmatmul.mubr.f32.vlgmr.msra.gmra.mxu0 %v5992_v14  ;;  %491 = vmatprep.subr.mxu0 %v5995_v45  ;;  %v6092_v14 = vld [vmem:[#allocation7 + $0x68] sm:$0xff]  ;;  %v6179_v35 = vld [vmem:[#allocation7 + $0xa0] sm:$0xff]  ;;  %v6191_v37 = vld [vmem:[#allocation7 + $0x70] sm:$0xff]  ;;  %v165_v43 = vshrl.u32 %v164_v42, 7 }
  0x5e   :  { %492 = vmatpush1.msra.mxu0 %v5997_v46  ;;  %249 = vmatprep.mubr.f32.mxu0 %v7866_v0  ;;  %v6185_v36 = vld [vmem:[#allocation7 + $0x88] sm:$0xff]  ;;  %v6197_v38 = vld [vmem:[#allocation7 + $0x58] sm:$0xff]  ;;  %v6203_v39 = vld [vmem:[#allocation7 + $0x40] sm:$0xff] }
  0x5f   :  { %493 = vmatprep.subr.mxu0 %v5999_v47  ;;  %4956 = vmatprep.subr.mxu1 %v122_v61  ;;  %7963 = vst [vmem:[#allocation22_spill] sm:$0xff] %v6203_v39  ;;  %v6209_v40 = vld [vmem:[#allocation7 + $0x28] sm:$0xff]  ;;  %v6215_v41 = vld [vmem:[#allocation7 + $0x10] sm:$0xff]  ;;  %v6274_v44 = vsub.s32 0, %v165_v43 }
  0x60   :  { %494 = vmatpush1.msra.mxu0 %v6003_v48  ;;  %4957 = vmatpush3.msra.mxu1 %v122_v61  ;;  %7964 = vst [vmem:[#allocation23_spill] sm:$0xff] %v6209_v40  ;;  %7965 = vst [vmem:[#allocation24_spill] sm:$0xff] %v6215_v41 }
  0x61   :  { %250 = vmatmul.mubr.f32.gmra.mxu0 %v6010_v50  ;;  %495 = vmatprep.subr.mxu0 %v6012_v51  ;;  %7966 = vst [vmem:[#allocation25_spill] sm:$0xff] %v6274_v44 }
  0x62   :  { %496 = vmatpush1.msra.mxu0 %v6015_v52  ;;  %255 = vmatprep.mubr.f32.mxu0 %v7866_v0 }
  0x63   :  { %497 = vmatprep.subr.mxu0 %v6018_v53  ;;  %4958 = vmatprep.subr.mxu1 %v119_v4 }
  0x64   :  { %498 = vmatpush1.msra.mxu0 %v6022_v54  ;;  %4959 = vmatpush3.msra.mxu1 %v119_v4 }
  0x65   :  { %256 = vmatmul.mubr.f32.gmra.mxu0 %v6029_v56  ;;  %499 = vmatprep.subr.mxu0 %v6031_v57 }
  0x66   :  { %500 = vmatpush1.msra.mxu0 %v6034_v58  ;;  %261 = vmatprep.mubr.f32.mxu0 %v7866_v0 }
  0x67   :  { %501 = vmatprep.subr.mxu0 %v6037_v59  ;;  %4960 = vmatprep.subr.mxu1 %v116_v10 }
  0x68   :  { %502 = vmatpush1.msra.mxu0 %v6041_v60  ;;  %4961 = vmatpush3.msra.mxu1 %v116_v10 }
  0x69   :  { %262 = vmatmul.mubr.f32.gmra.mxu0 %v6048_v62  ;;  %503 = vmatprep.subr.mxu0 %v6050_v63 }
  0x6a   :  { %504 = vmatpush1.msra.mxu0 %v6053_v1  ;;  %267 = vmatprep.mubr.f32.mxu0 %v7866_v0 }
  0x6b   :  { %505 = vmatprep.subr.mxu0 %v6056_v2  ;;  %4974 = vmatprep.subr.mxu1 %v7866_v0 }
  0x6c   :  { %506 = vmatpush1.msra.mxu0 %v6060_v3  ;;  %4963 = vmatmul.mubr.f32.vlgmr.msra.gmra.mxu1 %v6010_v50  ;;  %v6279_v50 = vsub.s32 1, %v165_v43 }
  0x6d   :  { %268 = vmatmul.mubr.f32.gmra.mxu0 %v6067_v5  ;;  %507 = vmatprep.subr.mxu0 %v6069_v6 }
  0x6e   :  { %508 = vmatpush1.msra.mxu0 %v6072_v7  ;;  %273 = vmatprep.mubr.f32.mxu0 %v7866_v0  ;;  %7967 = vst [vmem:[#allocation26_spill] sm:$0xff] %v6279_v50 }
  0x6f   :  { %509 = vmatprep.subr.mxu0 %v6075_v8  ;;  %4975 = vmatpush3.msra.mxu1 %v6114_v21 }
  0x70   :  { %510 = vmatpush1.msra.mxu0 %v6079_v9  ;;  %4976 = vmatprep.subr.mxu1 %v7866_v0 }
  0x71   :  { %274 = vmatmul.mubr.f32.gmra.mxu0 %v111_v11  ;;  %511 = vmatprep.subr.mxu0 %v6086_v12 }
  0x72   :  { %512 = vmatpush1.msra.mxu0 %v6089_v13  ;;  %279 = vmatprep.mubr.f32.mxu0 %v7866_v0 }
  0x73   :  { %513 = vmatprep.subr.mxu0 %v6092_v14  ;;  %4977 = vmatpush3.msra.mxu1 %v6134_v27 }
  0x74   :  { %514 = vmatpush1.msra.mxu0 %v6095_v15  ;;  %4978 = vmatprep.subr.mxu1 %v7866_v0 }
  0x75   :  { %280 = vmatmul.mubr.f32.gmra.mxu0 %v112_v16  ;;  %515 = vmatprep.subr.mxu0 %v6102_v17 }
  0x76   :  { %516 = vmatpush1.msra.mxu0 %v6105_v18  ;;  %285 = vmatprep.mubr.f32.mxu0 %v7866_v0 }
  0x77   :  { %517 = vmatprep.subr.mxu0 %v6108_v19  ;;  %4979 = vmatpush3.msra.mxu1 %v6140_v28 }
  0x78   :  { %518 = vmatpush1.msra.mxu0 %v6112_v20  ;;  %4965 = vmatprep.mubr.f32.mxu1 %v6029_v56 }
  0x79   :  { %286 = vmatmul.mubr.f32.gmra.mxu0 %v113_v22  ;;  %519 = vmatprep.subr.mxu0 %v6121_v23 }
  0x7a   :  { %520 = vmatpush1.msra.mxu0 %v6124_v24  ;;  %555 = vmatprep.mubr.f32.mxu0 %v7866_v0 }
  0x7b   :  { %521 = vmatprep.subr.mxu0 %v6128_v25  ;;  %4980 = vmatprep.subr.mxu1 %v7866_v0 }
  0x7c   :  { %522 = vmatpush1.msra.mxu0 %v6132_v26  ;;  %4966 = vmatmul.mubr.f32.gmra.mxu1 %v6048_v62 }
  0x7d   :  { %556 = vmatmul.mubr.f32.vlgmr.msra.gmra.mxu0 %v7866_v0  ;;  %4981 = vmatpush3.msra.mxu1 %v6146_v29 }
  0x7e   :  { %4968 = vmatprep.mubr.f32.mxu1 %v6067_v5  ;;  %4982 = vmatprep.subr.mxu1 %v7866_v0 }
  0x7f   :  { %724 = vmatprep.subr.mxu0 %v5995_v45  ;;  %4983 = vmatpush3.msra.mxu1 %v6151_v30 }
  0x80   :  { %725 = vmatpush1.msra.mxu0 %v5997_v46  ;;  %4984 = vmatprep.subr.mxu1 %v7866_v0 }
  0x81   :  { %4969 = vmatmul.mubr.f32.gmra.mxu1 %v111_v11  ;;  %726 = vmatprep.subr.mxu0 %v5999_v47 }
  0x82   :  { %4985 = vmatpush3.msra.mxu1 %v6157_v31  ;;  %4971 = vmatprep.mubr.f32.mxu1 %v112_v16 }
  0x83   :  { %4986 = vmatprep.subr.mxu1 %v7866_v0  ;;  %727 = vmatpush1.msra.mxu0 %v6003_v48 }
  0x84   :  { %4987 = vmatpush3.msra.mxu1 %v6163_v32  ;;  %728 = vmatprep.subr.mxu0 %v6012_v51 }
  0x85   :  { %4988 = vmatprep.subr.mxu1 %v7866_v0  ;;  %4972 = vmatmul.mubr.f32.gmra.mxu1 %v113_v22 }
  0x86   :  { %4989 = vmatpush3.msra.mxu1 %v6167_v33  ;;  %5006 = vmatprep.mubr.msk.f32.mxu1 %vm5900_vm0, %v7866_v0 }
  0x87   :  { %4990 = vmatprep.subr.mxu1 %v7866_v0  ;;  %729 = vmatpush1.msra.mxu0 %v6015_v52 }
  0x88   :  { %4991 = vmatpush3.msra.mxu1 %v6173_v34  ;;  %730 = vmatprep.subr.mxu0 %v6018_v53 }
  0x89   :  { %4992 = vmatprep.subr.mxu1 %v7866_v0  ;;  %731 = vmatpush1.msra.mxu0 %v6022_v54 }
  0x8a   :  { %4993 = vmatpush3.msra.mxu1 %v6179_v35  ;;  %732 = vmatprep.subr.mxu0 %v6031_v57 }
  0x8b   :  { %4994 = vmatprep.subr.mxu1 %v7866_v0  ;;  %733 = vmatpush1.msra.mxu0 %v6034_v58 }
  0x8c   :  { %4995 = vmatpush3.msra.mxu1 %v6185_v36  ;;  %734 = vmatprep.subr.mxu0 %v6037_v59 }
  0x8d   :  { %4996 = vmatprep.subr.mxu1 %v7866_v0  ;;  %735 = vmatpush1.msra.mxu0 %v6041_v60 }
  0x8e   :  { %4997 = vmatpush3.msra.mxu1 %v6191_v37  ;;  %736 = vmatprep.subr.mxu0 %v6050_v63 }
  0x8f   :  { %4998 = vmatprep.subr.mxu1 %v7866_v0  ;;  %737 = vmatpush1.msra.mxu0 %v6053_v1 }
  0x90   :  { %4999 = vmatpush3.msra.mxu1 %v6197_v38  ;;  %738 = vmatprep.subr.mxu0 %v6056_v2 }
  0x91   :  { %5000 = vmatprep.subr.mxu1 %v7866_v0  ;;  %739 = vmatpush1.msra.mxu0 %v6060_v3 }
  0x92   :  { %5001 = vmatpush3.msra.mxu1 %v6203_v39  ;;  %740 = vmatprep.subr.mxu0 %v6069_v6 }
  0x93   :  { %5002 = vmatprep.subr.mxu1 %v7866_v0  ;;  %741 = vmatpush1.msra.mxu0 %v6072_v7 }
  0x94   :  { %5003 = vmatpush3.msra.mxu1 %v6209_v40  ;;  %742 = vmatprep.subr.mxu0 %v6075_v8 }
  0x95   :  { %5004 = vmatprep.subr.mxu1 %v7866_v0  ;;  %743 = vmatpush1.msra.mxu0 %v6079_v9 }
  0x96   :  { %5005 = vmatpush3.msra.mxu1 %v6215_v41  ;;  %744 = vmatprep.subr.mxu0 %v6086_v12 }
  0x97   :  { %5007 = vmatmul.mubr.f32.vlgmr.msra.gmra.mxu1 %v7866_v0  ;;  %5009 = vmatprep.subr.mxu1 %v7866_v0 }
  0x98   :  { %5010 = vmatpush3.msra.mxu1 %v6114_v21  ;;  %745 = vmatpush1.msra.mxu0 %v6089_v13 }
  0x99   :  { %5011 = vmatprep.subr.mxu1 %v7866_v0  ;;  %746 = vmatprep.subr.mxu0 %v6092_v14 }
  0x9a   :  { %5012 = vmatpush3.msra.mxu1 %v6134_v27  ;;  %747 = vmatpush1.msra.mxu0 %v6095_v15 }
  0x9b   :  { %5013 = vmatprep.subr.mxu1 %v7866_v0  ;;  %748 = vmatprep.subr.mxu0 %v6102_v17 }
  0x9c   :  { %5014 = vmatpush3.msra.mxu1 %v6140_v28  ;;  %749 = vmatpush1.msra.mxu0 %v6105_v18 }
  0x9d   :  { %5015 = vmatprep.subr.mxu1 %v7866_v0  ;;  %750 = vmatprep.subr.mxu0 %v6108_v19 }
  0x9e   :  { %5016 = vmatpush3.msra.mxu1 %v6146_v29  ;;  %751 = vmatpush1.msra.mxu0 %v6112_v20 }
  0x9f   :  { %5017 = vmatprep.subr.mxu1 %v7866_v0  ;;  %752 = vmatprep.subr.mxu0 %v6121_v23 }
  0xa0   :  { %5018 = vmatpush3.msra.mxu1 %v6151_v30  ;;  %753 = vmatpush1.msra.mxu0 %v6124_v24 }
  0xa1   :  { %5019 = vmatprep.subr.mxu1 %v7866_v0  ;;  %754 = vmatprep.subr.mxu0 %v6128_v25 }
  0xa2   :  { %5020 = vmatpush3.msra.mxu1 %v6157_v31  ;;  %755 = vmatpush1.msra.mxu0 %v6132_v26 }
  0xa3   :  { %5021 = vmatprep.subr.mxu1 %v7866_v0  ;;  %788 = vmatprep.mubr.f32.mxu0 %v7866_v0 }
  0xa4   :  { %5022 = vmatpush3.msra.mxu1 %v6163_v32  ;;  %5041 = vmatprep.mubr.msk.f32.mxu1 %vm5900_vm0, %v7866_v0 }
  0xa5   :  { %5023 = vmatprep.subr.mxu1 %v7866_v0  ;;  %957 = vmatprep.subr.mxu0 %v5995_v45  ;;  %v162_v45 = vld [vmem:[%s7857_s3] sm:$0x7] }
  0xa6   :  { %5024 = vmatpush3.msra.mxu1 %v6167_v33  ;;  %v167_v56 = vrot.slane %v162_v45, %v6274_v44  ;;  %v171_v62 = vrot.slane %v162_v45, %v6279_v50 }
  0xa7   :  { %5025 = vmatprep.subr.mxu1 %v7866_v0 }
  0xa8   :  { %5026 = vmatpush3.msra.mxu1 %v6173_v34 }
  0xa9   :  { %5027 = vmatprep.subr.mxu1 %v7866_v0 }
  0xaa   :  { %5028 = vmatpush3.msra.mxu1 %v6179_v35 }
  0xab   :  { %5029 = vmatprep.subr.mxu1 %v7866_v0 }
  0xac   :  { %5030 = vmatpush3.msra.mxu1 %v6185_v36 }
  0xad   :  { %5031 = vmatprep.subr.mxu1 %v7866_v0 }
  0xae   :  { %5032 = vmatpush3.msra.mxu1 %v6191_v37 }
  0xaf   :  { %5033 = vmatprep.subr.mxu1 %v7866_v0 }
  0xb0   :  { %5034 = vmatpush3.msra.mxu1 %v6197_v38 }
  0xb1   :  { %5035 = vmatprep.subr.mxu1 %v7866_v0 }
  0xb2   :  { %5036 = vmatpush3.msra.mxu1 %v6203_v39 }
  0xb3   :  { %5037 = vmatprep.subr.mxu1 %v7866_v0 }
  0xb4   :  { %5038 = vmatpush3.msra.mxu1 %v6209_v40 }
  0xb5   :  { %5039 = vmatprep.subr.mxu1 %v7866_v0 }
  0xb6   :  { %5040 = vmatpush3.msra.mxu1 %v6215_v41 }
  0xb7   :  { %5044 = vmatprep.subr.mxu1 %v7866_v0 }
 0x11d   :  { %v245_v49 = vpop.f32.mrf.mxu0 }
 0x11f   :  { %v247_v55 = vpop.f32.mrf.mxu0 }
 0x120   :  { %v248_v19 = vadd.f32 %v247_v55, %v171_v62 }
 0x121   :  { %v251_v61 = vpop.f32.mrf.mxu0 }
 0x122   :  { %v6283_v4 = vadd.f32 %v251_v61, %v167_v56 }
 0x123   :  { %v253_v5 = vpop.f32.mrf.mxu0 }
 0x124   :  { %7968 = vst [vmem:[#allocation27_spill] sm:$0xff] %v6283_v4  ;;  %v6285_v10 = vadd.f32 %v253_v5, %v171_v62  ;;  %v6299_v5 = vsub.s32 2, %v165_v43 }
 0x125   :  { %v257_v11 = vpop.f32.mrf.mxu0 }
 0x126   :  { %7969 = vst [vmem:[#allocation28_spill] sm:$0xff] %v6285_v10  ;;  %v6287_v16 = vadd.f32 %v257_v11, %v167_v56 }
 0x127   :  { %v259_v22 = vpop.f32.mrf.mxu0 }
 0x128   :  { %7970 = vst [vmem:[#allocation29_spill] sm:$0xff] %v6287_v16  ;;  %v6289_v42 = vadd.f32 %v259_v22, %v171_v62 }
 0x129   :  { %v263_v0 = vpop.f32.mrf.mxu0 }
 0x12a   :  { %7971 = vst [vmem:[#allocation30_spill] sm:$0xff] %v6289_v42  ;;  %v6291_v41 = vadd.f32 %v263_v0, %v167_v56  ;;  %v175_v0 = vrot.slane %v162_v45, %v6299_v5 }
 0x12b   :  { %v265_v26 = vpop.f32.mrf.mxu0 }
 0x12c   :  { %7972 = vst [vmem:[#allocation31_spill] sm:$0xff] %v6291_v41  ;;  %v6293_v25 = vadd.f32 %v265_v26, %v171_v62 }
 0x12d   :  { %v269_v40 = vpop.f32.mrf.mxu0 }
 0x12e   :  { %7973 = vst [vmem:[#allocation32_spill] sm:$0xff] %v6293_v25  ;;  %v6295_v24 = vadd.f32 %v269_v40, %v167_v56  ;;  %v474_v40 = vld [vmem:[%s7858_s4] sm:$0x7] }
 0x12f   :  { %v271_v61 = vpop.f32.mrf.mxu0  ;;  %v483_v23 = vrot.slane %v474_v40, %v6279_v50  ;;  %v487_v55 = vrot.slane %v474_v40, %v6299_v5 }
 0x130   :  { %7974 = vst [vmem:[#allocation33_spill] sm:$0xff] %v6295_v24  ;;  %v6297_v4 = vadd.f32 %v271_v61, %v171_v62  ;;  %v4964_v61 = vpop.f32.mrf.mxu1  ;;  %v246_v24 = vadd.f32 %v245_v49, %v167_v56 }
 0x131   :  { %v275_v10 = vpop.f32.mrf.mxu0  ;;  %v6313_v43 = vadd.f32 %v4964_v61, %v175_v0 }
 0x132   :  { %7975 = vst [vmem:[#allocation34_spill] sm:$0xff] %v6297_v4  ;;  %v6301_v11 = vadd.f32 %v275_v10, %v167_v56 }
 0x133   :  { %v277_v16 = vpop.f32.mrf.mxu0  ;;  %7980 = vst [vmem:[#allocation39_spill] sm:$0xff] %v6313_v43 }
 0x134   :  { %7976 = vst [vmem:[#allocation35_spill] sm:$0xff] %v6301_v11  ;;  %v6303_v22 = vadd.f32 %v277_v16, %v171_v62  ;;  %v479_v16 = vrot.slane %v474_v40, %v6274_v44 }
 0x135   :  { %v281_v41 = vpop.f32.mrf.mxu0 }
 0x136   :  { %7977 = vst [vmem:[#allocation36_spill] sm:$0xff] %v6303_v22  ;;  %v6306_v42 = vadd.f32 %v281_v41, %v167_v56 }
 0x137   :  { %v283_v26 = vpop.f32.mrf.mxu0 }
 0x138   :  { %7978 = vst [vmem:[#allocation37_spill] sm:$0xff] %v6306_v42  ;;  %v6311_v4 = vadd.f32 %v283_v26, %v171_v62  ;;  %v358_v42 = vpop.f32.mrf.mxu1 }
 0x139   :  { %v287_v10 = vpop.f32.mrf.mxu0 }
 0x13a   :  { %7979 = vst [vmem:[#allocation38_spill] sm:$0xff] %v6311_v4  ;;  %v6315_v11 = vadd.f32 %v287_v10, %v167_v56 }
 0x13b   :  { %v289_v22 = vpop.f32.mrf.mxu0 }
 0x13c   :  { %7981 = vst [vmem:[#allocation40_spill] sm:$0xff] %v6315_v11  ;;  %v6318_v45 = vadd.f32 %v289_v22, %v171_v62  ;;  %v4967_v20 = vpop.f32.mrf.mxu1 }
 0x13d   :  { %v557_v41 = vpop.f32.mrf.mxu0  ;;  %v6321_v4 = vadd.f32 %v4967_v20, %v175_v0 }
 0x13e   :  { %7982 = vst [vmem:[#allocation41_spill] sm:$0xff] %v6318_v45  ;;  %v558_v25 = vadd.f32 %v557_v41, %v479_v16  ;;  %v368_v61 = vpop.f32.mrf.mxu1 }
 0x13f   :  { %v559_v39 = vpop.f32.mrf.mxu0  ;;  %v6323_v11 = vadd.f32 %v368_v61, %v175_v0  ;;  %v359_v61 = vadd.f32 %v358_v42, %v175_v0  ;;  %v7988_v42 = vmov 0.0  }
 0x140   :  { %v632_v26 = vadd.f32 %v558_v25, %v246_v24  ;;  %v560_v10 = vadd.f32 %v559_v39, %v483_v23 }
 0x141   :  { %v4970_v44 = vpop.f32.mrf.mxu1 }
 0x142   :  { %v4560_v43 = vmul.f32 -1.442695, %v632_v26  ;;  %v6325_v22 = vadd.f32 %v4970_v44, %v175_v0  ;;  %v639_v49 = vadd.f32 %v560_v10, %v248_v19 }
 0x143   :  { %v378_v45 = vpop.f32.mrf.mxu1 }
 0x144   :  { %5624 = vpow2.f32 %v4560_v43  ;;  %7983 = vst [vmem:[#allocation42_spill] sm:$0xff] %v6325_v22  ;;  %v6327_v56 = vadd.f32 %v378_v45, %v175_v0  ;;  %v4561_v20 = vmul.f32 -1.442695, %v639_v49  ;;  %v8015_v22 = vld [vmem:[#allocation31_spill] sm:$0xff] }
 0x145   :  { %v4973_v16 = vpop.f32.mrf.mxu1 }
 0x146   :  { %7984 = vst [vmem:[#allocation43_spill] sm:$0xff] %v6327_v56  ;;  %v6329_v41 = vadd.f32 %v4973_v16, %v175_v0  ;;  %5626 = vpow2.f32 %v4561_v20 }
 0x147   :  { %v388_v24 = vpop.f32.mrf.mxu1 }
 0x148   :  { %7985 = vst [vmem:[#allocation44_spill] sm:$0xff] %v6329_v41  ;;  %v6331_v25 = vadd.f32 %v388_v24, %v175_v0 }
 0x14a   :  { %7986 = vst [vmem:[#allocation45_spill] sm:$0xff] %v6331_v25 }
 0x151   :  { %v5625_v23 = vpop.eup %5624 }
 0x152   :  { %v636_v39 = vadd.f32 1.0, %v5625_v23 }
 0x153   :  { %v5627_v44 = vpop.eup %5626 }
 0x154   :  { %5628 = vrcp.f32 %v636_v39  ;;  %v643_v43 = vadd.f32 1.0, %v5627_v44 }
 0x156   :  { %5630 = vrcp.f32 %v643_v43 }
 0x157   :  { %v628_v26 = vpop.f32.mrf.mxu1 }
 0x158   :  { %v629_v19 = vadd.f32 %v628_v26, %v487_v55 }
 0x159   :  { %v5008_v62 = vpop.f32.mrf.mxu1 }
 0x15a   :  { %v8001_v62 = vld [vmem:[#allocation39_spill] sm:$0xff] }
 0x161   :  { %v5629_v45 = vpop.eup %5628 }
 0x162   :  { %v646_v10 = vmul.f32 %v5629_v45, %v629_v19 }
 0x163   :  { %v5631_v49 = vpop.eup %5630 }
 0x164   :  { %v647_v16 = vadd.f32 %v646_v10, %v359_v61  ;;  %v649_v24 = vsub.f32 1.0, %v5631_v49  ;;  %v651_v25 = vmul.f32 0.0, %v5631_v49 }
 0x166   :  { %5632 = vtanh.f32 %v647_v16 }
 0x173   :  { %v5633_v41 = vpop.eup %5632 }
 0x174   :  { %v650_v20 = vmul.f32 %v5633_v41, %v649_v24  ;;  %v6492_v24 = vld [vmem:[#allocation7 + $0xd8] sm:$0xff] }
 0x176   :  { %v6334_v23 = vadd.f32 %v651_v25, %v650_v20  ;;  %v6495_v20 = vld [vmem:[#allocation7 + $0xc8] sm:$0xff] }
 0x178   :  { %7987 = vst [vmem:[#allocation46_spill] sm:$0xff] %v6334_v23  ;;  %789 = vmatmul.mubr.f32.vlgmr.msra.gmra.mxu0 %v6334_v23  ;;  %5042 = vmatmul.mubr.f32.vlgmr.msra.gmra.mxu1 %v6334_v23 }
 0x179   :  { %958 = vmatpush1.msra.mxu0 %v5997_v46  ;;  %5045 = vmatpush3.msra.mxu1 %v6114_v21  ;;  %v7989_v46 = vld [vmem:[#allocation16_spill] sm:$0xff] }
 0x17a   :  { %959 = vmatprep.subr.mxu0 %v5999_v47  ;;  %5046 = vmatprep.subr.mxu1 %v7988_v42  ;;  %v7990_v47 = vld [vmem:[#allocation17_spill] sm:$0xff] }
 0x17b   :  { %960 = vmatpush1.msra.mxu0 %v6003_v48  ;;  %5047 = vmatpush3.msra.mxu1 %v6134_v27  ;;  %v7991_v48 = vld [vmem:[#allocation22_spill] sm:$0xff] }
 0x17c   :  { %961 = vmatprep.subr.mxu0 %v6012_v51  ;;  %5048 = vmatprep.subr.mxu1 %v7988_v42  ;;  %v7992_v51 = vld [vmem:[#allocation18_spill] sm:$0xff] }
 0x17d   :  { %962 = vmatpush1.msra.mxu0 %v6015_v52  ;;  %5049 = vmatpush3.msra.mxu1 %v6140_v28  ;;  %v7993_v52 = vld [vmem:[#allocation19_spill] sm:$0xff] }
 0x17e   :  { %963 = vmatprep.subr.mxu0 %v6018_v53  ;;  %5050 = vmatprep.subr.mxu1 %v7988_v42  ;;  %v7994_v53 = vld [vmem:[#allocation23_spill] sm:$0xff] }
 0x17f   :  { %964 = vmatpush1.msra.mxu0 %v6022_v54  ;;  %5051 = vmatpush3.msra.mxu1 %v6146_v29  ;;  %v7995_v54 = vld [vmem:[#allocation20_spill] sm:$0xff] }
 0x180   :  { %965 = vmatprep.subr.mxu0 %v6031_v57  ;;  %5052 = vmatprep.subr.mxu1 %v7988_v42  ;;  %v7996_v57 = vld [vmem:[#allocation21_spill] sm:$0xff] }
 0x181   :  { %966 = vmatpush1.msra.mxu0 %v6034_v58  ;;  %5053 = vmatpush3.msra.mxu1 %v6151_v30  ;;  %v7997_v58 = vld [vmem:[#allocation24_spill] sm:$0xff] }
 0x182   :  { %967 = vmatprep.subr.mxu0 %v6037_v59  ;;  %5054 = vmatprep.subr.mxu1 %v7988_v42  ;;  %v707_v59 = vld [vmem:[%s7858_s4] sm:$0x7] }
 0x183   :  { %968 = vmatpush1.msra.mxu0 %v6041_v60  ;;  %5055 = vmatpush3.msra.mxu1 %v6157_v31  ;;  %v7998_v60 = vld [vmem:[#allocation25_spill] sm:$0xff]  ;;  %v720_v25 = vrot.slane %v707_v59, %v6299_v5 }
 0x184   :  { %969 = vmatprep.subr.mxu0 %v6050_v63  ;;  %5056 = vmatprep.subr.mxu1 %v7988_v42  ;;  %v712_v63 = vrot.slane %v707_v59, %v7998_v60 }
 0x185   :  { %970 = vmatpush1.msra.mxu0 %v6053_v1  ;;  %5057 = vmatpush3.msra.mxu1 %v6163_v32 }
 0x186   :  { %971 = vmatprep.subr.mxu0 %v6056_v2  ;;  %5058 = vmatprep.subr.mxu1 %v7988_v42 }
 0x187   :  { %972 = vmatpush1.msra.mxu0 %v6060_v3  ;;  %5059 = vmatpush3.msra.mxu1 %v6167_v33 }
 0x188   :  { %973 = vmatprep.subr.mxu0 %v6069_v6  ;;  %5060 = vmatprep.subr.mxu1 %v7988_v42  ;;  %v716_v6 = vrot.slane %v707_v59, %v6279_v50  ;;  %v6523_v59 = vld [vmem:[#allocation7 + $0x50] sm:$0xff] }
 0x189   :  { %974 = vmatpush1.msra.mxu0 %v6072_v7  ;;  %5061 = vmatpush3.msra.mxu1 %v6173_v34 }
 0x18a   :  { %975 = vmatprep.subr.mxu0 %v6075_v8  ;;  %5062 = vmatprep.subr.mxu1 %v7988_v42 }
 0x18b   :  { %976 = vmatpush1.msra.mxu0 %v6079_v9  ;;  %5063 = vmatpush3.msra.mxu1 %v6179_v35  ;;  %v7999_v9 = vld [vmem:[#allocation27_spill] sm:$0xff] }
 0x18c   :  { %977 = vmatprep.subr.mxu0 %v6086_v12  ;;  %5064 = vmatprep.subr.mxu1 %v7988_v42 }
 0x18d   :  { %978 = vmatpush1.msra.mxu0 %v6089_v13  ;;  %5065 = vmatpush3.msra.mxu1 %v6185_v36 }
 0x18e   :  { %979 = vmatprep.subr.mxu0 %v6092_v14  ;;  %5066 = vmatprep.subr.mxu1 %v7988_v42 }
 0x18f   :  { %980 = vmatpush1.msra.mxu0 %v6095_v15  ;;  %5067 = vmatpush3.msra.mxu1 %v6191_v37  ;;  %v8000_v15 = vld [vmem:[#allocation28_spill] sm:$0xff] }
 0x190   :  { %981 = vmatprep.subr.mxu0 %v6102_v17  ;;  %5068 = vmatprep.subr.mxu1 %v7988_v42 }
 0x191   :  { %982 = vmatpush1.msra.mxu0 %v6105_v18  ;;  %5069 = vmatpush3.msra.mxu1 %v6197_v38 }
 0x192   :  { %983 = vmatprep.subr.mxu0 %v7989_v46  ;;  %5070 = vmatprep.subr.mxu1 %v7988_v42  ;;  %v6498_v46 = vld [vmem:[#allocation7 + $0xc0] sm:$0xff] }
 0x193   :  { %984 = vmatpush1.msra.mxu0 %v7990_v47  ;;  %5071 = vmatpush3.msra.mxu1 %v7991_v48  ;;  %v6500_v47 = vld [vmem:[#allocation7 + $0xb0] sm:$0xff] }
 0x194   :  { %985 = vmatprep.subr.mxu0 %v7992_v51  ;;  %5072 = vmatprep.subr.mxu1 %v7988_v42  ;;  %v6505_v51 = vld [vmem:[#allocation7 + $0x98] sm:$0xff] }
 0x195   :  { %986 = vmatpush1.msra.mxu0 %v7993_v52  ;;  %5073 = vmatpush3.msra.mxu1 %v7994_v53  ;;  %v6508_v52 = vld [vmem:[#allocation7 + $0x90] sm:$0xff] }
 0x196   :  { %987 = vmatprep.subr.mxu0 %v7995_v54  ;;  %5074 = vmatprep.subr.mxu1 %v7988_v42  ;;  %v6514_v54 = vld [vmem:[#allocation7 + $0x78] sm:$0xff] }
 0x197   :  { %988 = vmatpush1.msra.mxu0 %v7996_v57  ;;  %1021 = vmatprep.mubr.f32.mxu0 %v7988_v42  ;;  %v6517_v57 = vld [vmem:[#allocation7 + $0x68] sm:$0xff] }
 0x198   :  { %5075 = vmatpush3.msra.mxu1 %v7997_v58  ;;  %5076 = vmatprep.mubr.msk.f32.mxu1 %vm5900_vm0, %v7988_v42 }
 0x199   :  { %5079 = vmatprep.subr.mxu1 %v7988_v42 }
 0x238   :  { %v790_v1 = vpop.f32.mrf.mxu0  ;;  %v861_v2 = vpop.f32.mrf.mxu1 }
 0x239   :  { %v791_v3 = vadd.f32 %v790_v1, %v712_v63  ;;  %v862_v26 = vadd.f32 %v861_v2, %v720_v25  ;;  %v6526_v63 = vld [vmem:[#allocation7 + $0x48] sm:$0xff]  ;;  %v6529_v1 = vld [vmem:[#allocation7 + $0x38] sm:$0xff]  ;;  %v6532_v2 = vld [vmem:[#allocation7 + $0x30] sm:$0xff] }
 0x23a   :  { %v792_v7 = vpop.f32.mrf.mxu0  ;;  %v5043_v8 = vpop.f32.mrf.mxu1  ;;  %8004 = vst [vmem:[#allocation22_spill] sm:$0xff] %v6532_v2 }
 0x23b   :  { %v865_v12 = vadd.f32 %v791_v3, %v7999_v9  ;;  %v793_v14 = vadd.f32 %v792_v7, %v716_v6  ;;  %v6535_v3 = vld [vmem:[#allocation7 + $0x20] sm:$0xff]  ;;  %v6538_v6 = vld [vmem:[#allocation7 + $0x18] sm:$0xff]  ;;  %v6541_v7 = vld [vmem:[#allocation7 + $0x8] sm:$0xff] }
 0x23c   :  { %8005 = vst [vmem:[#allocation18_spill] sm:$0xff] %v6535_v3  ;;  %8006 = vst [vmem:[#allocation19_spill] sm:$0xff] %v6538_v6  ;;  %v6544_v8 = vld [vmem:[#allocation7] sm:$0xff] }
 0x23d   :  { %v4562_v13 = vmul.f32 -1.442695, %v865_v12  ;;  %v872_v17 = vadd.f32 %v793_v14, %v8000_v15  ;;  %8007 = vst [vmem:[#allocation23_spill] sm:$0xff] %v6541_v7  ;;  %8008 = vst [vmem:[#allocation20_spill] sm:$0xff] %v6544_v8  ;;  %v940_v9 = vld [vmem:[%s7858_s4] sm:$0x7] }
 0x23e   :  { %v945_v12 = vrot.slane %v940_v9, %v7998_v60 }
 0x23f   :  { %5634 = vpow2.f32 %v4562_v13  ;;  %v4563_v18 = vmul.f32 -1.442695, %v872_v17  ;;  %v949_v17 = vrot.slane %v940_v9, %v6279_v50 }
 0x241   :  { %5636 = vpow2.f32 %v4563_v18 }
 0x24c   :  { %v5635_v0 = vpop.eup %5634 }
 0x24d   :  { %v869_v40 = vadd.f32 1.0, %v5635_v0 }
 0x24e   :  { %v5637_v41 = vpop.eup %5636 }
 0x24f   :  { %5638 = vrcp.f32 %v869_v40  ;;  %v876_v39 = vadd.f32 1.0, %v5637_v41  ;;  %v8009_v40 = vld [vmem:[#allocation29_spill] sm:$0xff] }
 0x251   :  { %5640 = vrcp.f32 %v876_v39 }
 0x25c   :  { %v5639_v55 = vpop.eup %5638 }
 0x25d   :  { %v879_v44 = vmul.f32 %v5639_v55, %v862_v26  ;;  %v8010_v26 = vld [vmem:[#allocation30_spill] sm:$0xff] }
 0x25e   :  { %v5641_v19 = vpop.eup %5640 }
 0x25f   :  { %v880_v43 = vadd.f32 %v879_v44, %v8001_v62  ;;  %v882_v45 = vsub.f32 1.0, %v5641_v19  ;;  %v884_v16 = vmul.f32 %v5641_v19, %v6334_v23 }
 0x261   :  { %5642 = vtanh.f32 %v880_v43 }
 0x26e   :  { %v5643_v61 = vpop.eup %5642 }
 0x26f   :  { %v883_v10 = vmul.f32 %v5643_v61, %v882_v45  ;;  %v953_v45 = vrot.slane %v940_v9, %v6299_v5  ;;  %v6603_v9 = vld [vmem:[#allocation7 + $0x160] sm:$0xff] }
 0x271   :  { %v6414_v49 = vadd.f32 %v884_v16, %v883_v10 }
 0x273   :  { %8002 = vst [vmem:[#allocation16_spill] sm:$0xff] %v6414_v49  ;;  %1022 = vmatmul.mubr.f32.vlgmr.msra.gmra.mxu0 %v6414_v49  ;;  %5077 = vmatmul.mubr.f32.vlgmr.msra.gmra.mxu1 %v6414_v49 }
 0x274   :  { %5080 = vmatpush3.msra.mxu1 %v6114_v21  ;;  %1254 = vmatprep.mubr.f32.mxu0 %v7988_v42  ;;  %v6453_v21 = vld [vmem:[#allocation7 + $0x170] sm:$0xff] }
 0x275   :  { %5081 = vmatprep.subr.mxu1 %v7988_v42  ;;  %5111 = vmatprep.mubr.msk.f32.mxu1 %vm5900_vm0, %v7988_v42  ;;  %8003 = vst [vmem:[#allocation17_spill] sm:$0xff] %v6453_v21 }
 0x276   :  { %5082 = vmatpush3.msra.mxu1 %v6134_v27  ;;  %1190 = vmatprep.subr.mxu0 %v6453_v21  ;;  %v6456_v27 = vld [vmem:[#allocation7 + $0x168] sm:$0xff] }
 0x277   :  { %5083 = vmatprep.subr.mxu1 %v7988_v42  ;;  %1191 = vmatpush1.msra.mxu0 %v6456_v27 }
 0x278   :  { %5084 = vmatpush3.msra.mxu1 %v6140_v28  ;;  %v6459_v28 = vld [vmem:[#allocation7 + $0x158] sm:$0xff] }
 0x279   :  { %5085 = vmatprep.subr.mxu1 %v7988_v42  ;;  %1192 = vmatprep.subr.mxu0 %v6459_v28 }
 0x27a   :  { %5086 = vmatpush3.msra.mxu1 %v6146_v29  ;;  %v6462_v29 = vld [vmem:[#allocation7 + $0x150] sm:$0xff] }
 0x27b   :  { %5087 = vmatprep.subr.mxu1 %v7988_v42  ;;  %1193 = vmatpush1.msra.mxu0 %v6462_v29 }
 0x27c   :  { %5088 = vmatpush3.msra.mxu1 %v6151_v30  ;;  %v6465_v30 = vld [vmem:[#allocation7 + $0x140] sm:$0xff] }
 0x27d   :  { %5089 = vmatprep.subr.mxu1 %v7988_v42  ;;  %1194 = vmatprep.subr.mxu0 %v6465_v30 }
 0x27e   :  { %5090 = vmatpush3.msra.mxu1 %v6157_v31  ;;  %v6468_v31 = vld [vmem:[#allocation7 + $0x138] sm:$0xff] }
 0x27f   :  { %5091 = vmatprep.subr.mxu1 %v7988_v42  ;;  %1195 = vmatpush1.msra.mxu0 %v6468_v31 }
 0x280   :  { %5092 = vmatpush3.msra.mxu1 %v6163_v32  ;;  %v6471_v32 = vld [vmem:[#allocation7 + $0x128] sm:$0xff] }
 0x281   :  { %5093 = vmatprep.subr.mxu1 %v7988_v42  ;;  %1196 = vmatprep.subr.mxu0 %v6471_v32 }
 0x282   :  { %5094 = vmatpush3.msra.mxu1 %v6167_v33  ;;  %v6474_v33 = vld [vmem:[#allocation7 + $0x120] sm:$0xff] }
 0x283   :  { %5095 = vmatprep.subr.mxu1 %v7988_v42  ;;  %1197 = vmatpush1.msra.mxu0 %v6474_v33 }
 0x284   :  { %5096 = vmatpush3.msra.mxu1 %v6173_v34  ;;  %v6477_v34 = vld [vmem:[#allocation7 + $0x110] sm:$0xff] }
 0x285   :  { %5097 = vmatprep.subr.mxu1 %v7988_v42  ;;  %1198 = vmatprep.subr.mxu0 %v6477_v34 }
 0x286   :  { %5098 = vmatpush3.msra.mxu1 %v6179_v35  ;;  %v6480_v35 = vld [vmem:[#allocation7 + $0x108] sm:$0xff] }
 0x287   :  { %5099 = vmatprep.subr.mxu1 %v7988_v42  ;;  %1199 = vmatpush1.msra.mxu0 %v6480_v35 }
 0x288   :  { %5100 = vmatpush3.msra.mxu1 %v6185_v36  ;;  %v6483_v36 = vld [vmem:[#allocation7 + $0xf8] sm:$0xff] }
 0x289   :  { %5101 = vmatprep.subr.mxu1 %v7988_v42  ;;  %1200 = vmatprep.subr.mxu0 %v6483_v36 }
 0x28a   :  { %5102 = vmatpush3.msra.mxu1 %v6191_v37  ;;  %v6486_v37 = vld [vmem:[#allocation7 + $0xf0] sm:$0xff] }
 0x28b   :  { %5103 = vmatprep.subr.mxu1 %v7988_v42  ;;  %1201 = vmatpush1.msra.mxu0 %v6486_v37 }
 0x28c   :  { %5104 = vmatpush3.msra.mxu1 %v6197_v38  ;;  %v6489_v38 = vld [vmem:[#allocation7 + $0xe0] sm:$0xff] }
 0x28d   :  { %5105 = vmatprep.subr.mxu1 %v7988_v42  ;;  %1202 = vmatprep.subr.mxu0 %v6489_v38 }
 0x28e   :  { %5106 = vmatpush3.msra.mxu1 %v7991_v48  ;;  %1203 = vmatpush1.msra.mxu0 %v6492_v24  ;;  %v6502_v48 = vld [vmem:[#allocation7 + $0xa8] sm:$0xff] }
 0x28f   :  { %5107 = vmatprep.subr.mxu1 %v7988_v42  ;;  %1204 = vmatprep.subr.mxu0 %v6495_v20 }
 0x290   :  { %5108 = vmatpush3.msra.mxu1 %v7994_v53  ;;  %1205 = vmatpush1.msra.mxu0 %v6498_v46  ;;  %v6511_v53 = vld [vmem:[#allocation7 + $0x80] sm:$0xff] }
 0x291   :  { %5109 = vmatprep.subr.mxu1 %v7988_v42  ;;  %1206 = vmatprep.subr.mxu0 %v6500_v47 }
 0x292   :  { %5110 = vmatpush3.msra.mxu1 %v7997_v58  ;;  %1207 = vmatpush1.msra.mxu0 %v6502_v48  ;;  %v6520_v58 = vld [vmem:[#allocation7 + $0x60] sm:$0xff] }
 0x293   :  { %5114 = vmatprep.subr.mxu1 %v7988_v42  ;;  %1208 = vmatprep.subr.mxu0 %v6505_v51 }
 0x294   :  { %1209 = vmatpush1.msra.mxu0 %v6508_v52 }
 0x295   :  { %1210 = vmatprep.subr.mxu0 %v6511_v53 }
 0x296   :  { %1211 = vmatpush1.msra.mxu0 %v6514_v54 }
 0x297   :  { %1212 = vmatprep.subr.mxu0 %v6517_v57 }
 0x298   :  { %1213 = vmatpush1.msra.mxu0 %v6520_v58 }
 0x299   :  { %1214 = vmatprep.subr.mxu0 %v6523_v59 }
 0x29a   :  { %1215 = vmatpush1.msra.mxu0 %v6526_v63 }
 0x29b   :  { %1216 = vmatprep.subr.mxu0 %v6529_v1 }
 0x29c   :  { %1217 = vmatpush1.msra.mxu0 %v6532_v2 }
 0x29d   :  { %1218 = vmatprep.subr.mxu0 %v6535_v3 }
 0x29e   :  { %1219 = vmatpush1.msra.mxu0 %v6538_v6 }
 0x29f   :  { %1220 = vmatprep.subr.mxu0 %v6541_v7 }
 0x2a0   :  { %1221 = vmatpush1.msra.mxu0 %v6544_v8 }
 0x2a1   :  { %1423 = vmatprep.subr.mxu0 %v6453_v21 }
 0x333   :  { %v1023_v13 = vpop.f32.mrf.mxu0  ;;  %v1094_v14 = vpop.f32.mrf.mxu1 }
 0x334   :  { %v1024_v15 = vadd.f32 %v1023_v13, %v945_v12  ;;  %v1095_v10 = vadd.f32 %v1094_v14, %v953_v45  ;;  %v6607_v14 = vld [vmem:[#allocation7 + $0x148] sm:$0xff]  ;;  %v6641_v45 = vld [vmem:[#allocation7 + $0x70] sm:$0xff] }
 0x335   :  { %v1025_v18 = vpop.f32.mrf.mxu0  ;;  %v5078_v0 = vpop.f32.mrf.mxu1 }
 0x336   :  { %v1098_v41 = vadd.f32 %v1024_v15, %v8009_v40  ;;  %v1026_v39 = vadd.f32 %v1025_v18, %v949_v17 }
 0x338   :  { %v4564_v25 = vmul.f32 -1.442695, %v1098_v41  ;;  %v1105_v55 = vadd.f32 %v1026_v39, %v8010_v26  ;;  %v6615_v39 = vld [vmem:[#allocation7 + $0x118] sm:$0xff]  ;;  %v6619_v26 = vld [vmem:[#allocation7 + $0x100] sm:$0xff] }
 0x33a   :  { %5644 = vpow2.f32 %v4564_v25  ;;  %v4565_v44 = vmul.f32 -1.442695, %v1105_v55  ;;  %v6611_v25 = vld [vmem:[#allocation7 + $0x130] sm:$0xff]  ;;  %v6623_v55 = vld [vmem:[#allocation7 + $0xe8] sm:$0xff] }
 0x33c   :  { %5646 = vpow2.f32 %v4565_v44  ;;  %v6627_v44 = vld [vmem:[#allocation7 + $0xd0] sm:$0xff] }
 0x347   :  { %v5645_v62 = vpop.eup %5644 }
 0x348   :  { %v1102_v43 = vadd.f32 1.0, %v5645_v62  ;;  %v6629_v62 = vld [vmem:[#allocation7 + $0xb8] sm:$0xff] }
 0x349   :  { %v5647_v19 = vpop.eup %5646 }
 0x34a   :  { %5648 = vrcp.f32 %v1102_v43  ;;  %v1109_v61 = vadd.f32 1.0, %v5647_v19  ;;  %v6633_v43 = vld [vmem:[#allocation7 + $0xa0] sm:$0xff]  ;;  %v6637_v19 = vld [vmem:[#allocation7 + $0x88] sm:$0xff] }
 0x34c   :  { %5650 = vrcp.f32 %v1109_v61  ;;  %v6645_v61 = vld [vmem:[#allocation7 + $0x58] sm:$0xff] }
 0x357   :  { %v5649_v16 = vpop.eup %5648 }
 0x358   :  { %v1112_v12 = vmul.f32 %v5649_v16, %v1095_v10  ;;  %v6649_v10 = vld [vmem:[#allocation7 + $0x40] sm:$0xff]  ;;  %v6653_v16 = vld [vmem:[#allocation7 + $0x28] sm:$0xff] }
 0x359   :  { %v5651_v15 = vpop.eup %5650  ;;  %8012 = vst [vmem:[#allocation24_spill] sm:$0xff] %v6649_v10  ;;  %8013 = vst [vmem:[#allocation27_spill] sm:$0xff] %v6653_v16 }
 0x35a   :  { %v1113_v13 = vadd.f32 %v1112_v12, %v6323_v11  ;;  %v1115_v17 = vsub.f32 1.0, %v5651_v15  ;;  %v1117_v40 = vmul.f32 %v5651_v15, %v6414_v49  ;;  %v6599_v11 = vld [vmem:[#allocation7 + $0x178] sm:$0xff]  ;;  %v6657_v12 = vld [vmem:[#allocation7 + $0x10] sm:$0xff] }
 0x35b   :  { %8014 = vst [vmem:[#allocation28_spill] sm:$0xff] %v6657_v12 }
 0x35c   :  { %5652 = vtanh.f32 %v1113_v13  ;;  %v1173_v13 = vld [vmem:[%s7858_s4] sm:$0x7] }
 0x35d   :  { %v1178_v15 = vrot.slane %v1173_v13, %v7998_v60 }
 0x369   :  { %v5653_v18 = vpop.eup %5652 }
 0x36a   :  { %v1116_v0 = vmul.f32 %v5653_v18, %v1115_v17 }
 0x36c   :  { %v6560_v41 = vadd.f32 %v1117_v40, %v1116_v0  ;;  %v1182_v40 = vrot.slane %v1173_v13, %v6279_v50 }
 0x36e   :  { %8011 = vst [vmem:[#allocation21_spill] sm:$0xff] %v6560_v41  ;;  %1255 = vmatmul.mubr.f32.vlgmr.msra.gmra.mxu0 %v6560_v41  ;;  %5112 = vmatmul.mubr.f32.vlgmr.msra.gmra.mxu1 %v6560_v41 }
 0x36f   :  { %1424 = vmatpush1.msra.mxu0 %v6456_v27  ;;  %1487 = vmatprep.mubr.f32.mxu0 %v7988_v42 }
 0x370   :  { %1425 = vmatprep.subr.mxu0 %v6459_v28  ;;  %5146 = vmatprep.mubr.msk.f32.mxu1 %vm5900_vm0, %v7988_v42 }
 0x371   :  { %1426 = vmatpush1.msra.mxu0 %v6462_v29  ;;  %5115 = vmatpush3.msra.mxu1 %v6599_v11 }
 0x372   :  { %1427 = vmatprep.subr.mxu0 %v6465_v30  ;;  %5116 = vmatprep.subr.mxu1 %v7988_v42 }
 0x373   :  { %1428 = vmatpush1.msra.mxu0 %v6468_v31  ;;  %5117 = vmatpush3.msra.mxu1 %v6603_v9 }
 0x374   :  { %1429 = vmatprep.subr.mxu0 %v6471_v32  ;;  %5118 = vmatprep.subr.mxu1 %v7988_v42 }
 0x375   :  { %1430 = vmatpush1.msra.mxu0 %v6474_v33  ;;  %5119 = vmatpush3.msra.mxu1 %v6607_v14 }
 0x376   :  { %1431 = vmatprep.subr.mxu0 %v6477_v34  ;;  %5120 = vmatprep.subr.mxu1 %v7988_v42 }
 0x377   :  { %1432 = vmatpush1.msra.mxu0 %v6480_v35  ;;  %5121 = vmatpush3.msra.mxu1 %v6611_v25 }
 0x378   :  { %1433 = vmatprep.subr.mxu0 %v6483_v36  ;;  %5122 = vmatprep.subr.mxu1 %v7988_v42 }
 0x379   :  { %1434 = vmatpush1.msra.mxu0 %v6486_v37  ;;  %5123 = vmatpush3.msra.mxu1 %v6615_v39 }
 0x37a   :  { %1435 = vmatprep.subr.mxu0 %v6489_v38  ;;  %5124 = vmatprep.subr.mxu1 %v7988_v42 }
 0x37b   :  { %1436 = vmatpush1.msra.mxu0 %v6492_v24  ;;  %5125 = vmatpush3.msra.mxu1 %v6619_v26 }
 0x37c   :  { %1437 = vmatprep.subr.mxu0 %v6495_v20  ;;  %5126 = vmatprep.subr.mxu1 %v7988_v42 }
 0x37d   :  { %1438 = vmatpush1.msra.mxu0 %v6498_v46  ;;  %5127 = vmatpush3.msra.mxu1 %v6623_v55 }
 0x37e   :  { %1439 = vmatprep.subr.mxu0 %v6500_v47  ;;  %5128 = vmatprep.subr.mxu1 %v7988_v42 }
 0x37f   :  { %1440 = vmatpush1.msra.mxu0 %v6502_v48  ;;  %5129 = vmatpush3.msra.mxu1 %v6627_v44 }
 0x380   :  { %1441 = vmatprep.subr.mxu0 %v6505_v51  ;;  %5130 = vmatprep.subr.mxu1 %v7988_v42 }
 0x381   :  { %1442 = vmatpush1.msra.mxu0 %v6508_v52  ;;  %5131 = vmatpush3.msra.mxu1 %v6629_v62 }
 0x382   :  { %1443 = vmatprep.subr.mxu0 %v6511_v53  ;;  %5132 = vmatprep.subr.mxu1 %v7988_v42 }
 0x383   :  { %1444 = vmatpush1.msra.mxu0 %v6514_v54  ;;  %5133 = vmatpush3.msra.mxu1 %v6633_v43 }
 0x384   :  { %1445 = vmatprep.subr.mxu0 %v6517_v57  ;;  %5134 = vmatprep.subr.mxu1 %v7988_v42 }
 0x385   :  { %1446 = vmatpush1.msra.mxu0 %v6520_v58  ;;  %5135 = vmatpush3.msra.mxu1 %v6637_v19 }
 0x386   :  { %1447 = vmatprep.subr.mxu0 %v6523_v59  ;;  %5136 = vmatprep.subr.mxu1 %v7988_v42 }
 0x387   :  { %1448 = vmatpush1.msra.mxu0 %v6526_v63  ;;  %5137 = vmatpush3.msra.mxu1 %v6641_v45 }
 0x388   :  { %1449 = vmatprep.subr.mxu0 %v6529_v1  ;;  %5138 = vmatprep.subr.mxu1 %v7988_v42 }
 0x389   :  { %1450 = vmatpush1.msra.mxu0 %v6532_v2  ;;  %5139 = vmatpush3.msra.mxu1 %v6645_v61 }
 0x38a   :  { %1451 = vmatprep.subr.mxu0 %v6535_v3  ;;  %5140 = vmatprep.subr.mxu1 %v7988_v42 }
 0x38b   :  { %1452 = vmatpush1.msra.mxu0 %v6538_v6  ;;  %5141 = vmatpush3.msra.mxu1 %v6649_v10  ;;  %v1186_v10 = vrot.slane %v1173_v13, %v6299_v5  ;;  %v1406_v13 = vld [vmem:[%s7858_s4] sm:$0x7] }
 0x38c   :  { %1453 = vmatprep.subr.mxu0 %v6541_v7  ;;  %5142 = vmatprep.subr.mxu1 %v7988_v42 }
 0x38d   :  { %1454 = vmatpush1.msra.mxu0 %v6544_v8  ;;  %5143 = vmatpush3.msra.mxu1 %v6653_v16 }
 0x38e   :  { %1656 = vmatprep.subr.mxu0 %v6453_v21  ;;  %5144 = vmatprep.subr.mxu1 %v7988_v42 }
 0x38f   :  { %5145 = vmatpush3.msra.mxu1 %v6657_v12  ;;  %v8016_v12 = vld [vmem:[#allocation32_spill] sm:$0xff] }
 0x390   :  { %5149 = vmatprep.subr.mxu1 %v7988_v42 }
 0x42e   :  { %v1256_v17 = vpop.f32.mrf.mxu0  ;;  %v1327_v18 = vpop.f32.mrf.mxu1 }
 0x42f   :  { %v1257_v0 = vadd.f32 %v1256_v17, %v1178_v15  ;;  %v1328_v17 = vadd.f32 %v1327_v18, %v1186_v10  ;;  %v8023_v10 = vld [vmem:[#allocation20_spill] sm:$0xff]  ;;  %v8026_v18 = vld [vmem:[#allocation25_spill] sm:$0xff] }
 0x430   :  { %v1258_v49 = vpop.f32.mrf.mxu0  ;;  %v5113_v23 = vpop.f32.mrf.mxu1 }
 0x431   :  { %v1331_v56 = vadd.f32 %v1257_v0, %v8015_v22  ;;  %v1259_v8 = vadd.f32 %v1258_v49, %v1182_v40  ;;  %v1411_v0 = vrot.slane %v1406_v13, %v8026_v18 }
 0x433   :  { %v4566_v21 = vmul.f32 -1.442695, %v1331_v56  ;;  %v1338_v7 = vadd.f32 %v1259_v8, %v8016_v12  ;;  %v8025_v12 = vld [vmem:[#allocation17_spill] sm:$0xff] }
 0x435   :  { %5654 = vpow2.f32 %v4566_v21  ;;  %v4567_v16 = vmul.f32 -1.442695, %v1338_v7 }
 0x437   :  { %5656 = vpow2.f32 %v4567_v16  ;;  %v8024_v16 = vld [vmem:[#allocation28_spill] sm:$0xff] }
 0x442   :  { %v5655_v6 = vpop.eup %5654 }
 0x443   :  { %v1335_v3 = vadd.f32 1.0, %v5655_v6  ;;  %v8022_v6 = vld [vmem:[#allocation23_spill] sm:$0xff] }
 0x444   :  { %v5657_v60 = vpop.eup %5656 }
 0x445   :  { %5658 = vrcp.f32 %v1335_v3  ;;  %v1342_v15 = vadd.f32 1.0, %v5657_v60  ;;  %v8019_v60 = vld [vmem:[#allocation18_spill] sm:$0xff]  ;;  %v8021_v3 = vld [vmem:[#allocation27_spill] sm:$0xff] }
 0x447   :  { %5660 = vrcp.f32 %v1342_v15 }
 0x452   :  { %v5659_v50 = vpop.eup %5658 }
 0x453   :  { %v1345_v2 = vmul.f32 %v5659_v50, %v1328_v17  ;;  %v8017_v50 = vld [vmem:[#allocation22_spill] sm:$0xff] }
 0x454   :  { %v5661_v56 = vpop.eup %5660 }
 0x455   :  { %v1346_v22 = vadd.f32 %v1345_v2, %v6321_v4  ;;  %v1348_v23 = vsub.f32 1.0, %v5661_v56  ;;  %v1350_v7 = vmul.f32 %v5661_v56, %v6560_v41  ;;  %v8018_v4 = vld [vmem:[#allocation24_spill] sm:$0xff]  ;;  %v8020_v2 = vld [vmem:[#allocation19_spill] sm:$0xff] }
 0x457   :  { %5662 = vtanh.f32 %v1346_v22  ;;  %v8027_v22 = vld [vmem:[#allocation26_spill] sm:$0xff] }
 0x458   :  { %v1415_v56 = vrot.slane %v1406_v13, %v8027_v22 }
 0x464   :  { %v5663_v49 = vpop.eup %5662 }
 0x465   :  { %v1349_v21 = vmul.f32 %v5663_v49, %v1348_v23 }
 0x467   :  { %v6673_v8 = vadd.f32 %v1350_v7, %v1349_v21  ;;  %v8028_v21 = vld [vmem:[#allocation33_spill] sm:$0xff] }
 0x469   :  { %1488 = vmatmul.mubr.f32.vlgmr.msra.gmra.mxu0 %v6673_v8  ;;  %5147 = vmatmul.mubr.f32.vlgmr.msra.gmra.mxu1 %v6673_v8 }
 0x46a   :  { %1657 = vmatpush1.msra.mxu0 %v6456_v27  ;;  %5150 = vmatpush3.msra.mxu1 %v6599_v11 }
 0x46b   :  { %1658 = vmatprep.subr.mxu0 %v6459_v28  ;;  %5151 = vmatprep.subr.mxu1 %v7988_v42 }
 0x46c   :  { %1659 = vmatpush1.msra.mxu0 %v6462_v29  ;;  %5152 = vmatpush3.msra.mxu1 %v6603_v9 }
 0x46d   :  { %1660 = vmatprep.subr.mxu0 %v6465_v30  ;;  %5153 = vmatprep.subr.mxu1 %v7988_v42 }
 0x46e   :  { %1661 = vmatpush1.msra.mxu0 %v6468_v31  ;;  %5154 = vmatpush3.msra.mxu1 %v6607_v14 }
 0x46f   :  { %1662 = vmatprep.subr.mxu0 %v6471_v32  ;;  %5155 = vmatprep.subr.mxu1 %v7988_v42 }
 0x470   :  { %1663 = vmatpush1.msra.mxu0 %v6474_v33  ;;  %5156 = vmatpush3.msra.mxu1 %v6611_v25 }
 0x471   :  { %1664 = vmatprep.subr.mxu0 %v6477_v34  ;;  %5157 = vmatprep.subr.mxu1 %v7988_v42 }
 0x472   :  { %1665 = vmatpush1.msra.mxu0 %v6480_v35  ;;  %5158 = vmatpush3.msra.mxu1 %v6615_v39 }
 0x473   :  { %1666 = vmatprep.subr.mxu0 %v6483_v36  ;;  %5159 = vmatprep.subr.mxu1 %v7988_v42 }
 0x474   :  { %1667 = vmatpush1.msra.mxu0 %v6486_v37  ;;  %5160 = vmatpush3.msra.mxu1 %v6619_v26 }
 0x475   :  { %1668 = vmatprep.subr.mxu0 %v6489_v38  ;;  %5161 = vmatprep.subr.mxu1 %v7988_v42 }
 0x476   :  { %1669 = vmatpush1.msra.mxu0 %v6492_v24  ;;  %5162 = vmatpush3.msra.mxu1 %v6623_v55 }
 0x477   :  { %1670 = vmatprep.subr.mxu0 %v6495_v20  ;;  %5163 = vmatprep.subr.mxu1 %v7988_v42 }
 0x478   :  { %1671 = vmatpush1.msra.mxu0 %v6498_v46  ;;  %5164 = vmatpush3.msra.mxu1 %v6627_v44 }
 0x479   :  { %1672 = vmatprep.subr.mxu0 %v6500_v47  ;;  %5165 = vmatprep.subr.mxu1 %v7988_v42 }
 0x47a   :  { %1673 = vmatpush1.msra.mxu0 %v6502_v48  ;;  %5166 = vmatpush3.msra.mxu1 %v6629_v62 }
 0x47b   :  { %1674 = vmatprep.subr.mxu0 %v6505_v51  ;;  %5167 = vmatprep.subr.mxu1 %v7988_v42 }
 0x47c   :  { %1675 = vmatpush1.msra.mxu0 %v6508_v52  ;;  %5168 = vmatpush3.msra.mxu1 %v6633_v43 }
 0x47d   :  { %1676 = vmatprep.subr.mxu0 %v6511_v53  ;;  %5169 = vmatprep.subr.mxu1 %v7988_v42 }
 0x47e   :  { %1677 = vmatpush1.msra.mxu0 %v6514_v54  ;;  %5170 = vmatpush3.msra.mxu1 %v6637_v19 }
 0x47f   :  { %1678 = vmatprep.subr.mxu0 %v6517_v57  ;;  %5171 = vmatprep.subr.mxu1 %v7988_v42 }
 0x480   :  { %1679 = vmatpush1.msra.mxu0 %v6520_v58  ;;  %5172 = vmatpush3.msra.mxu1 %v6641_v45 }
 0x481   :  { %1680 = vmatprep.subr.mxu0 %v6523_v59  ;;  %5173 = vmatprep.subr.mxu1 %v7988_v42 }
 0x482   :  { %1681 = vmatpush1.msra.mxu0 %v6526_v63  ;;  %5174 = vmatpush3.msra.mxu1 %v6645_v61 }
 0x483   :  { %1682 = vmatprep.subr.mxu0 %v6529_v1  ;;  %5175 = vmatprep.subr.mxu1 %v7988_v42 }
 0x484   :  { %1683 = vmatpush1.msra.mxu0 %v8017_v50  ;;  %5176 = vmatpush3.msra.mxu1 %v8018_v4 }
 0x485   :  { %1684 = vmatprep.subr.mxu0 %v8019_v60  ;;  %5177 = vmatprep.subr.mxu1 %v7988_v42  ;;  %v1419_v60 = vrot.slane %v1406_v13, %v6299_v5 }
 0x486   :  { %1685 = vmatpush1.msra.mxu0 %v8020_v2  ;;  %5178 = vmatpush3.msra.mxu1 %v8021_v3 }
 0x487   :  { %1686 = vmatprep.subr.mxu0 %v8022_v6  ;;  %5179 = vmatprep.subr.mxu1 %v7988_v42 }
 0x488   :  { %1687 = vmatpush1.msra.mxu0 %v8023_v10  ;;  %1720 = vmatprep.mubr.f32.mxu0 %v7988_v42 }
 0x489   :  { %5180 = vmatpush3.msra.mxu1 %v8024_v16  ;;  %5181 = vmatprep.mubr.msk.f32.mxu1 %vm5900_vm0, %v7988_v42 }
 0x48a   :  { %1889 = vmatprep.subr.mxu0 %v8025_v12  ;;  %5184 = vmatprep.subr.mxu1 %v7988_v42  ;;  %v8029_v12 = vld [vmem:[#allocation34_spill] sm:$0xff] }
 0x529   :  { %v1489_v40 = vpop.f32.mrf.mxu0  ;;  %v1560_v15 = vpop.f32.mrf.mxu1 }
 0x52a   :  { %v1490_v17 = vadd.f32 %v1489_v40, %v1411_v0  ;;  %v1561_v40 = vadd.f32 %v1560_v15, %v1419_v60 }
 0x52b   :  { %v1491_v23 = vpop.f32.mrf.mxu0  ;;  %v5148_v49 = vpop.f32.mrf.mxu1 }
 0x52c   :  { %v1564_v7 = vadd.f32 %v1490_v17, %v8028_v21  ;;  %v1492_v16 = vadd.f32 %v1491_v23, %v1415_v56  ;;  %v8030_v49 = vld [vmem:[#allocation43_spill] sm:$0xff] }
 0x52e   :  { %v4568_v41 = vmul.f32 -1.442695, %v1564_v7  ;;  %v1571_v10 = vadd.f32 %v1492_v16, %v8029_v12 }
 0x530   :  { %5664 = vpow2.f32 %v4568_v41  ;;  %v4569_v6 = vmul.f32 -1.442695, %v1571_v10 }
 0x532   :  { %5666 = vpow2.f32 %v4569_v6 }
 0x53d   :  { %v5665_v3 = vpop.eup %5664 }
 0x53e   :  { %v1568_v2 = vadd.f32 1.0, %v5665_v3 }
 0x53f   :  { %v5667_v18 = vpop.eup %5666 }
 0x540   :  { %5668 = vrcp.f32 %v1568_v2  ;;  %v1575_v0 = vadd.f32 1.0, %v5667_v18  ;;  %v8042_v18 = vld [vmem:[#allocation42_spill] sm:$0xff] }
 0x542   :  { %5670 = vrcp.f32 %v1575_v0 }
 0x54d   :  { %v5669_v22 = vpop.eup %5668 }
 0x54e   :  { %v1578_v4 = vmul.f32 %v5669_v22, %v1561_v40 }
 0x54f   :  { %v5671_v56 = vpop.eup %5670 }
 0x550   :  { %v1579_v17 = vadd.f32 %v1578_v4, %v8030_v49  ;;  %v1581_v41 = vsub.f32 1.0, %v5671_v56  ;;  %v1583_v6 = vmul.f32 %v5671_v56, %v6673_v8  ;;  %v2084_v49 = vld [vmem:[#allocation7 + $0xd8] sm:$0xff]  ;;  %v2081_v56 = vld [vmem:[#allocation7 + $0xc0] sm:$0xff] }
 0x552   :  { %5672 = vtanh.f32 %v1579_v17  ;;  %v2082_v17 = vld [vmem:[#allocation7 + $0xc8] sm:$0xff] }
 0x55f   :  { %v5673_v23 = vpop.eup %5672 }
 0x560   :  { %v1582_v16 = vmul.f32 %v5673_v23, %v1581_v41  ;;  %v2079_v41 = vld [vmem:[#allocation7 + $0xb0] sm:$0xff]  ;;  %v2078_v23 = vld [vmem:[#allocation7 + $0xa8] sm:$0xff] }
 0x562   :  { %v6754_v10 = vadd.f32 %v1583_v6, %v1582_v16  ;;  %v2076_v16 = vld [vmem:[#allocation7 + $0x98] sm:$0xff]  ;;  %v2075_v6 = vld [vmem:[#allocation7 + $0x90] sm:$0xff] }
 0x564   :  { %1721 = vmatmul.mubr.f32.vlgmr.msra.gmra.mxu0 %v6754_v10  ;;  %5182 = vmatmul.mubr.f32.vlgmr.msra.gmra.mxu1 %v6754_v10 }
 0x565   :  { %1890 = vmatpush1.msra.mxu0 %v6456_v27  ;;  %5185 = vmatpush3.msra.mxu1 %v6599_v11  ;;  %v8031_v27 = vld [vmem:[#allocation24_spill] sm:$0xff] }
 0x566   :  { %1891 = vmatprep.subr.mxu0 %v6459_v28  ;;  %5186 = vmatprep.subr.mxu1 %v7988_v42  ;;  %v8032_v28 = vld [vmem:[#allocation18_spill] sm:$0xff] }
 0x567   :  { %1892 = vmatpush1.msra.mxu0 %v6462_v29  ;;  %5187 = vmatpush3.msra.mxu1 %v6603_v9  ;;  %v8033_v29 = vld [vmem:[#allocation19_spill] sm:$0xff] }
 0x568   :  { %1893 = vmatprep.subr.mxu0 %v6465_v30  ;;  %5188 = vmatprep.subr.mxu1 %v7988_v42  ;;  %v8034_v30 = vld [vmem:[#allocation27_spill] sm:$0xff] }
 0x569   :  { %1894 = vmatpush1.msra.mxu0 %v6468_v31  ;;  %5189 = vmatpush3.msra.mxu1 %v6607_v14  ;;  %v8035_v31 = vld [vmem:[#allocation23_spill] sm:$0xff] }
 0x56a   :  { %1895 = vmatprep.subr.mxu0 %v6471_v32  ;;  %5190 = vmatprep.subr.mxu1 %v7988_v42  ;;  %v8036_v32 = vld [vmem:[#allocation20_spill] sm:$0xff] }
 0x56b   :  { %1896 = vmatpush1.msra.mxu0 %v6474_v33  ;;  %5191 = vmatpush3.msra.mxu1 %v6611_v25  ;;  %v8037_v33 = vld [vmem:[#allocation28_spill] sm:$0xff] }
 0x56c   :  { %1897 = vmatprep.subr.mxu0 %v6477_v34  ;;  %5192 = vmatprep.subr.mxu1 %v7988_v42  ;;  %v1639_v34 = vld [vmem:[%s7858_s4] sm:$0x7] }
 0x56d   :  { %1898 = vmatpush1.msra.mxu0 %v6480_v35  ;;  %5193 = vmatpush3.msra.mxu1 %v6615_v39  ;;  %v8038_v35 = vld [vmem:[#allocation25_spill] sm:$0xff]  ;;  %v1652_v4 = vrot.slane %v1639_v34, %v6299_v5 }
 0x56e   :  { %1899 = vmatprep.subr.mxu0 %v6483_v36  ;;  %5194 = vmatprep.subr.mxu1 %v7988_v42  ;;  %v1644_v36 = vrot.slane %v1639_v34, %v8038_v35 }
 0x56f   :  { %1900 = vmatpush1.msra.mxu0 %v6486_v37  ;;  %5195 = vmatpush3.msra.mxu1 %v6619_v26 }
 0x570   :  { %1901 = vmatprep.subr.mxu0 %v6489_v38  ;;  %5196 = vmatprep.subr.mxu1 %v7988_v42 }
 0x571   :  { %1902 = vmatpush1.msra.mxu0 %v6492_v24  ;;  %5197 = vmatpush3.msra.mxu1 %v6623_v55 }
 0x572   :  { %1903 = vmatprep.subr.mxu0 %v6495_v20  ;;  %5198 = vmatprep.subr.mxu1 %v7988_v42  ;;  %v8039_v20 = vld [vmem:[#allocation26_spill] sm:$0xff] }
 0x573   :  { %1904 = vmatpush1.msra.mxu0 %v6498_v46  ;;  %5199 = vmatpush3.msra.mxu1 %v6627_v44  ;;  %v1648_v46 = vrot.slane %v1639_v34, %v8039_v20  ;;  %v2064_v34 = vld [vmem:[#allocation7 + $0x38] sm:$0xff] }
 0x574   :  { %1905 = vmatprep.subr.mxu0 %v6500_v47  ;;  %5200 = vmatprep.subr.mxu1 %v7988_v42 }
 0x575   :  { %1906 = vmatpush1.msra.mxu0 %v6502_v48  ;;  %5201 = vmatpush3.msra.mxu1 %v6629_v62 }
 0x576   :  { %1907 = vmatprep.subr.mxu0 %v6505_v51  ;;  %5202 = vmatprep.subr.mxu1 %v7988_v42  ;;  %v8040_v51 = vld [vmem:[#allocation35_spill] sm:$0xff] }
 0x577   :  { %1908 = vmatpush1.msra.mxu0 %v6508_v52  ;;  %5203 = vmatpush3.msra.mxu1 %v6633_v43 }
 0x578   :  { %1909 = vmatprep.subr.mxu0 %v6511_v53  ;;  %5204 = vmatprep.subr.mxu1 %v7988_v42 }
 0x579   :  { %1910 = vmatpush1.msra.mxu0 %v6514_v54  ;;  %5205 = vmatpush3.msra.mxu1 %v6637_v19 }
 0x57a   :  { %1911 = vmatprep.subr.mxu0 %v6517_v57  ;;  %5206 = vmatprep.subr.mxu1 %v7988_v42  ;;  %v8041_v57 = vld [vmem:[#allocation36_spill] sm:$0xff] }
 0x57b   :  { %1912 = vmatpush1.msra.mxu0 %v6520_v58  ;;  %5207 = vmatpush3.msra.mxu1 %v6641_v45 }
 0x57c   :  { %1913 = vmatprep.subr.mxu0 %v6523_v59  ;;  %5208 = vmatprep.subr.mxu1 %v7988_v42 }
 0x57d   :  { %1914 = vmatpush1.msra.mxu0 %v6526_v63  ;;  %5209 = vmatpush3.msra.mxu1 %v6645_v61 }
 0x57e   :  { %1915 = vmatprep.subr.mxu0 %v6529_v1  ;;  %5210 = vmatprep.subr.mxu1 %v7988_v42 }
 0x57f   :  { %1916 = vmatpush1.msra.mxu0 %v8017_v50  ;;  %5211 = vmatpush3.msra.mxu1 %v8031_v27 }
 0x580   :  { %1917 = vmatprep.subr.mxu0 %v8032_v28  ;;  %5212 = vmatprep.subr.mxu1 %v7988_v42  ;;  %v2072_v28 = vld [vmem:[#allocation7 + $0x78] sm:$0xff] }
 0x581   :  { %1918 = vmatpush1.msra.mxu0 %v8033_v29  ;;  %5213 = vmatpush3.msra.mxu1 %v8034_v30  ;;  %v2070_v29 = vld [vmem:[#allocation7 + $0x68] sm:$0xff] }
 0x582   :  { %1919 = vmatprep.subr.mxu0 %v8035_v31  ;;  %5214 = vmatprep.subr.mxu1 %v7988_v42  ;;  %v2341_v31 = vld [vmem:[#allocation9 + $0x178] sm:$0xff] }
 0x583   :  { %1920 = vmatpush1.msra.mxu0 %v8036_v32  ;;  %1953 = vmatprep.mubr.f32.mxu0 %v7988_v42  ;;  %v2067_v32 = vld [vmem:[#allocation7 + $0x50] sm:$0xff] }
 0x584   :  { %5215 = vmatpush3.msra.mxu1 %v8037_v33  ;;  %5216 = vmatprep.mubr.msk.f32.mxu1 %vm5900_vm0, %v7988_v42 }
 0x585   :  { %5219 = vmatprep.subr.mxu1 %v7988_v42 }
 0x624   :  { %v1722_v37 = vpop.f32.mrf.mxu0  ;;  %v1793_v38 = vpop.f32.mrf.mxu1 }
 0x625   :  { %v1723_v24 = vadd.f32 %v1722_v37, %v1644_v36  ;;  %v1794_v2 = vadd.f32 %v1793_v38, %v1652_v4  ;;  %v2063_v36 = vld [vmem:[#allocation7 + $0x30] sm:$0xff]  ;;  %v2061_v37 = vld [vmem:[#allocation7 + $0x20] sm:$0xff]  ;;  %v2060_v38 = vld [vmem:[#allocation7 + $0x18] sm:$0xff] }
 0x626   :  { %v1724_v47 = vpop.f32.mrf.mxu0  ;;  %v5183_v48 = vpop.f32.mrf.mxu1 }
 0x627   :  { %v1797_v52 = vadd.f32 %v1723_v24, %v8040_v51  ;;  %v1725_v54 = vadd.f32 %v1724_v47, %v1648_v46  ;;  %v2058_v24 = vld [vmem:[#allocation7 + $0x8] sm:$0xff]  ;;  %v2057_v46 = vld [vmem:[#allocation7] sm:$0xff]  ;;  %v2340_v47 = vld [vmem:[#allocation9 + $0x170] sm:$0xff] }
 0x628   :  { %v1872_v48 = vld [vmem:[%s7858_s4] sm:$0x7] }
 0x629   :  { %v4570_v53 = vmul.f32 -1.442695, %v1797_v52  ;;  %v1804_v58 = vadd.f32 %v1725_v54, %v8041_v57  ;;  %v1877_v51 = vrot.slane %v1872_v48, %v8038_v35  ;;  %v1881_v57 = vrot.slane %v1872_v48, %v8039_v20 }
 0x62b   :  { %5674 = vpow2.f32 %v4570_v53  ;;  %v4571_v59 = vmul.f32 -1.442695, %v1804_v58 }
 0x62d   :  { %5676 = vpow2.f32 %v4571_v59 }
 0x638   :  { %v5675_v63 = vpop.eup %5674 }
 0x639   :  { %v1801_v1 = vadd.f32 1.0, %v5675_v63  ;;  %v8043_v63 = vld [vmem:[#allocation37_spill] sm:$0xff] }
 0x63a   :  { %v5677_v50 = vpop.eup %5676 }
 0x63b   :  { %5678 = vrcp.f32 %v1801_v1  ;;  %v1808_v60 = vadd.f32 1.0, %v5677_v50 }
 0x63d   :  { %5680 = vrcp.f32 %v1808_v60  ;;  %v8044_v60 = vld [vmem:[#allocation38_spill] sm:$0xff] }
 0x648   :  { %v5679_v3 = vpop.eup %5678 }
 0x649   :  { %v1811_v13 = vmul.f32 %v5679_v3, %v1794_v2 }
 0x64a   :  { %v5681_v22 = vpop.eup %5680 }
 0x64b   :  { %v1812_v15 = vadd.f32 %v1811_v13, %v8042_v18  ;;  %v1814_v21 = vsub.f32 1.0, %v5681_v22  ;;  %v1816_v0 = vmul.f32 %v5681_v22, %v6754_v10  ;;  %v1885_v22 = vrot.slane %v1872_v48, %v6299_v5  ;;  %v2313_v48 = vld [vmem:[#allocation9 + $0x98] sm:$0xff] }
 0x64d   :  { %5682 = vtanh.f32 %v1812_v15 }
 0x65a   :  { %v5683_v7 = vpop.eup %5682 }
 0x65b   :  { %v1815_v12 = vmul.f32 %v5683_v7, %v1814_v21 }
 0x65d   :  { %v6834_v40 = vadd.f32 %v1816_v0, %v1815_v12 }
 0x65f   :  { %1954 = vmatmul.mubr.f32.vlgmr.msra.gmra.mxu0 %v6834_v40  ;;  %5217 = vmatmul.mubr.f32.vlgmr.msra.gmra.mxu1 %v6834_v40 }
 0x660   :  { %5220 = vmatpush3.msra.mxu1 %v6599_v11  ;;  %2186 = vmatprep.mubr.f32.mxu0 %v7988_v42  ;;  %v2103_v11 = vld [vmem:[#allocation7 + $0x170] sm:$0xff] }
 0x661   :  { %5221 = vmatprep.subr.mxu1 %v7988_v42  ;;  %5251 = vmatprep.mubr.msk.f32.mxu1 %vm5900_vm0, %v7988_v42 }
 0x662   :  { %5222 = vmatpush3.msra.mxu1 %v6603_v9  ;;  %2122 = vmatprep.subr.mxu0 %v2103_v11  ;;  %v2102_v9 = vld [vmem:[#allocation7 + $0x168] sm:$0xff] }
 0x663   :  { %5223 = vmatprep.subr.mxu1 %v7988_v42  ;;  %2123 = vmatpush1.msra.mxu0 %v2102_v9  ;;  %v8045_v11 = vld [vmem:[#allocation45_spill] sm:$0xff] }
 0x664   :  { %5224 = vmatpush3.msra.mxu1 %v6607_v14  ;;  %v2100_v14 = vld [vmem:[#allocation7 + $0x158] sm:$0xff] }
 0x665   :  { %5225 = vmatprep.subr.mxu1 %v7988_v42  ;;  %2124 = vmatprep.subr.mxu0 %v2100_v14 }
 0x666   :  { %5226 = vmatpush3.msra.mxu1 %v6611_v25  ;;  %v2099_v25 = vld [vmem:[#allocation7 + $0x150] sm:$0xff] }
 0x667   :  { %5227 = vmatprep.subr.mxu1 %v7988_v42  ;;  %2125 = vmatpush1.msra.mxu0 %v2099_v25 }
 0x668   :  { %5228 = vmatpush3.msra.mxu1 %v6615_v39  ;;  %v2097_v39 = vld [vmem:[#allocation7 + $0x140] sm:$0xff] }
 0x669   :  { %5229 = vmatprep.subr.mxu1 %v7988_v42  ;;  %2126 = vmatprep.subr.mxu0 %v2097_v39 }
 0x66a   :  { %5230 = vmatpush3.msra.mxu1 %v6619_v26  ;;  %v2096_v26 = vld [vmem:[#allocation7 + $0x138] sm:$0xff] }
 0x66b   :  { %5231 = vmatprep.subr.mxu1 %v7988_v42  ;;  %2127 = vmatpush1.msra.mxu0 %v2096_v26 }
 0x66c   :  { %5232 = vmatpush3.msra.mxu1 %v6623_v55  ;;  %v2094_v55 = vld [vmem:[#allocation7 + $0x128] sm:$0xff] }
 0x66d   :  { %5233 = vmatprep.subr.mxu1 %v7988_v42  ;;  %2128 = vmatprep.subr.mxu0 %v2094_v55 }
 0x66e   :  { %5234 = vmatpush3.msra.mxu1 %v6627_v44  ;;  %v2093_v44 = vld [vmem:[#allocation7 + $0x120] sm:$0xff] }
 0x66f   :  { %5235 = vmatprep.subr.mxu1 %v7988_v42  ;;  %2129 = vmatpush1.msra.mxu0 %v2093_v44 }
 0x670   :  { %5236 = vmatpush3.msra.mxu1 %v6629_v62  ;;  %v2091_v62 = vld [vmem:[#allocation7 + $0x110] sm:$0xff] }
 0x671   :  { %5237 = vmatprep.subr.mxu1 %v7988_v42  ;;  %2130 = vmatprep.subr.mxu0 %v2091_v62  ;;  %v2339_v62 = vld [vmem:[#allocation9 + $0x168] sm:$0xff] }
 0x672   :  { %5238 = vmatpush3.msra.mxu1 %v6633_v43  ;;  %v2090_v43 = vld [vmem:[#allocation7 + $0x108] sm:$0xff] }
 0x673   :  { %5239 = vmatprep.subr.mxu1 %v7988_v42  ;;  %2131 = vmatpush1.msra.mxu0 %v2090_v43  ;;  %v2337_v43 = vld [vmem:[#allocation9 + $0x158] sm:$0xff] }
 0x674   :  { %5240 = vmatpush3.msra.mxu1 %v6637_v19  ;;  %v2088_v19 = vld [vmem:[#allocation7 + $0xf8] sm:$0xff] }
 0x675   :  { %5241 = vmatprep.subr.mxu1 %v7988_v42  ;;  %2132 = vmatprep.subr.mxu0 %v2088_v19  ;;  %v2338_v19 = vld [vmem:[#allocation9 + $0x160] sm:$0xff] }
 0x676   :  { %5242 = vmatpush3.msra.mxu1 %v6641_v45  ;;  %v2087_v45 = vld [vmem:[#allocation7 + $0xf0] sm:$0xff] }
 0x677   :  { %5243 = vmatprep.subr.mxu1 %v7988_v42  ;;  %2133 = vmatpush1.msra.mxu0 %v2087_v45  ;;  %v2336_v45 = vld [vmem:[#allocation9 + $0x150] sm:$0xff] }
 0x678   :  { %5244 = vmatpush3.msra.mxu1 %v6645_v61  ;;  %v2085_v61 = vld [vmem:[#allocation7 + $0xe0] sm:$0xff] }
 0x679   :  { %5245 = vmatprep.subr.mxu1 %v7988_v42  ;;  %2134 = vmatprep.subr.mxu0 %v2085_v61  ;;  %v2334_v61 = vld [vmem:[#allocation9 + $0x140] sm:$0xff] }
 0x67a   :  { %5246 = vmatpush3.msra.mxu1 %v8031_v27  ;;  %2135 = vmatpush1.msra.mxu0 %v2084_v49  ;;  %v2073_v27 = vld [vmem:[#allocation7 + $0x80] sm:$0xff]  ;;  %v2335_v49 = vld [vmem:[#allocation9 + $0x148] sm:$0xff] }
 0x67b   :  { %5247 = vmatprep.subr.mxu1 %v7988_v42  ;;  %2136 = vmatprep.subr.mxu0 %v2082_v17  ;;  %v2333_v17 = vld [vmem:[#allocation9 + $0x138] sm:$0xff] }
 0x67c   :  { %5248 = vmatpush3.msra.mxu1 %v8034_v30  ;;  %2137 = vmatpush1.msra.mxu0 %v2081_v56  ;;  %v2069_v30 = vld [vmem:[#allocation7 + $0x60] sm:$0xff]  ;;  %v8046_v56 = vld [vmem:[#allocation46_spill] sm:$0xff] }
 0x67d   :  { %5249 = vmatprep.subr.mxu1 %v7988_v42  ;;  %2138 = vmatprep.subr.mxu0 %v2079_v41  ;;  %v2331_v41 = vld [vmem:[#allocation9 + $0x128] sm:$0xff] }
 0x67e   :  { %5250 = vmatpush3.msra.mxu1 %v8037_v33  ;;  %2139 = vmatpush1.msra.mxu0 %v2078_v23  ;;  %v2066_v33 = vld [vmem:[#allocation7 + $0x48] sm:$0xff]  ;;  %v2332_v23 = vld [vmem:[#allocation9 + $0x130] sm:$0xff] }
 0x67f   :  { %2140 = vmatprep.subr.mxu0 %v2076_v16  ;;  %5254 = vmatprep.subr.mxu1 %v2341_v31  ;;  %v2330_v16 = vld [vmem:[#allocation9 + $0x120] sm:$0xff] }
 0x680   :  { %2141 = vmatpush1.msra.mxu0 %v2075_v6  ;;  %v2328_v6 = vld [vmem:[#allocation9 + $0x110] sm:$0xff] }
 0x681   :  { %2142 = vmatprep.subr.mxu0 %v2073_v27  ;;  %v2329_v27 = vld [vmem:[#allocation9 + $0x118] sm:$0xff] }
 0x682   :  { %2143 = vmatpush1.msra.mxu0 %v2072_v28  ;;  %v2327_v28 = vld [vmem:[#allocation9 + $0x108] sm:$0xff] }
 0x683   :  { %2144 = vmatprep.subr.mxu0 %v2070_v29  ;;  %v2325_v29 = vld [vmem:[#allocation9 + $0xf8] sm:$0xff] }
 0x684   :  { %2145 = vmatpush1.msra.mxu0 %v2069_v30  ;;  %v2326_v30 = vld [vmem:[#allocation9 + $0x100] sm:$0xff] }
 0x685   :  { %2146 = vmatprep.subr.mxu0 %v2067_v32  ;;  %v2322_v32 = vld [vmem:[#allocation9 + $0xe0] sm:$0xff] }
 0x686   :  { %2147 = vmatpush1.msra.mxu0 %v2066_v33  ;;  %v2323_v33 = vld [vmem:[#allocation9 + $0xe8] sm:$0xff] }
 0x687   :  { %2148 = vmatprep.subr.mxu0 %v2064_v34  ;;  %v2321_v34 = vld [vmem:[#allocation9 + $0xd8] sm:$0xff] }
 0x688   :  { %2149 = vmatpush1.msra.mxu0 %v2063_v36  ;;  %v2319_v36 = vld [vmem:[#allocation9 + $0xc8] sm:$0xff] }
 0x689   :  { %2150 = vmatprep.subr.mxu0 %v2061_v37  ;;  %v2320_v37 = vld [vmem:[#allocation9 + $0xd0] sm:$0xff] }
 0x68a   :  { %2151 = vmatpush1.msra.mxu0 %v2060_v38  ;;  %v2318_v38 = vld [vmem:[#allocation9 + $0xc0] sm:$0xff] }
 0x68b   :  { %2152 = vmatprep.subr.mxu0 %v2058_v24  ;;  %v2316_v24 = vld [vmem:[#allocation9 + $0xb0] sm:$0xff] }
 0x68c   :  { %2153 = vmatpush1.msra.mxu0 %v2057_v46  ;;  %v2317_v46 = vld [vmem:[#allocation9 + $0xb8] sm:$0xff] }
 0x68d   :  { %2359 = vmatprep.subr.mxu0 %v2340_v47  ;;  %v2315_v47 = vld [vmem:[#allocation9 + $0xa8] sm:$0xff] }
 0x71f   :  { %v1955_v52 = vpop.f32.mrf.mxu0  ;;  %v2026_v53 = vpop.f32.mrf.mxu1 }
 0x720   :  { %v1956_v54 = vadd.f32 %v1955_v52, %v1877_v51  ;;  %v2027_v7 = vadd.f32 %v2026_v53, %v1885_v22  ;;  %v2314_v51 = vld [vmem:[#allocation9 + $0xa0] sm:$0xff]  ;;  %v2312_v52 = vld [vmem:[#allocation9 + $0x90] sm:$0xff]  ;;  %v2295_v22 = vld [vmem:[#allocation9 + $0x8] sm:$0xff] }
 0x721   :  { %v1957_v58 = vpop.f32.mrf.mxu0  ;;  %v5218_v59 = vpop.f32.mrf.mxu1  ;;  %v2310_v53 = vld [vmem:[#allocation9 + $0x80] sm:$0xff] }
 0x722   :  { %v2030_v1 = vadd.f32 %v1956_v54, %v8043_v63  ;;  %v1958_v4 = vadd.f32 %v1957_v58, %v1881_v57  ;;  %v2311_v54 = vld [vmem:[#allocation9 + $0x88] sm:$0xff]  ;;  %v2309_v57 = vld [vmem:[#allocation9 + $0x78] sm:$0xff]  ;;  %v2308_v59 = vld [vmem:[#allocation9 + $0x70] sm:$0xff] }
 0x723   :  { %v2307_v58 = vld [vmem:[#allocation9 + $0x68] sm:$0xff]  ;;  %v2306_v63 = vld [vmem:[#allocation9 + $0x60] sm:$0xff] }
 0x724   :  { %v4572_v50 = vmul.f32 -1.442695, %v2030_v1  ;;  %v2037_v2 = vadd.f32 %v1958_v4, %v8044_v60  ;;  %v2304_v1 = vld [vmem:[#allocation9 + $0x50] sm:$0xff]  ;;  %v2303_v4 = vld [vmem:[#allocation9 + $0x48] sm:$0xff]  ;;  %v2301_v60 = vld [vmem:[#allocation9 + $0x38] sm:$0xff] }
 0x726   :  { %5684 = vpow2.f32 %v4572_v50  ;;  %v4573_v3 = vmul.f32 -1.442695, %v2037_v2  ;;  %v2305_v50 = vld [vmem:[#allocation9 + $0x58] sm:$0xff]  ;;  %v2302_v2 = vld [vmem:[#allocation9 + $0x40] sm:$0xff] }
 0x728   :  { %5686 = vpow2.f32 %v4573_v3  ;;  %v2300_v3 = vld [vmem:[#allocation9 + $0x30] sm:$0xff] }
 0x733   :  { %v5685_v13 = vpop.eup %5684 }
 0x734   :  { %v2034_v18 = vadd.f32 1.0, %v5685_v13  ;;  %v2298_v13 = vld [vmem:[#allocation9 + $0x20] sm:$0xff] }
 0x735   :  { %v5687_v15 = vpop.eup %5686 }
 0x736   :  { %5688 = vrcp.f32 %v2034_v18  ;;  %v2041_v21 = vadd.f32 1.0, %v5687_v15  ;;  %v2299_v18 = vld [vmem:[#allocation9 + $0x28] sm:$0xff]  ;;  %v2297_v15 = vld [vmem:[#allocation9 + $0x18] sm:$0xff] }
 0x738   :  { %5690 = vrcp.f32 %v2041_v21  ;;  %v2296_v21 = vld [vmem:[#allocation9 + $0x10] sm:$0xff] }
 0x743   :  { %v5689_v12 = vpop.eup %5688 }
 0x744   :  { %v2044_v0 = vmul.f32 %v5689_v12, %v2027_v7  ;;  %v2294_v7 = vld [vmem:[#allocation9] sm:$0xff] }
 0x745   :  { %v5691_v14 = vpop.eup %5690  ;;  %v8047_v12 = vld [vmem:[#allocation16_spill] sm:$0xff] }
 0x746   :  { %v2045_v9 = vadd.f32 %v2044_v0, %v8045_v11  ;;  %v2047_v25 = vsub.f32 1.0, %v5691_v14  ;;  %v2049_v55 = vmul.f32 %v5691_v14, %v6834_v40  ;;  %v8048_v0 = vld [vmem:[#allocation21_spill] sm:$0xff]  ;;  %v6909_v11 = vld [vmem:[#allocation10 + $0x170] sm:$0xff]  ;;  %v6924_v14 = vld [vmem:[#allocation10 + $0x138] sm:$0xff] }
 0x747   :  { %8049 = vst [vmem:[#allocation39_spill] sm:$0xff] %v6909_v11 }
 0x748   :  { %5692 = vtanh.f32 %v2045_v9  ;;  %v6912_v9 = vld [vmem:[#allocation10 + $0x168] sm:$0xff] }
 0x755   :  { %v5693_v39 = vpop.eup %5692 }
 0x756   :  { %v2048_v26 = vmul.f32 %v5693_v39, %v2047_v25  ;;  %v6927_v25 = vld [vmem:[#allocation10 + $0x128] sm:$0xff]  ;;  %v6930_v39 = vld [vmem:[#allocation10 + $0x120] sm:$0xff] }
 0x758   :  { %v6882_v44 = vadd.f32 %v2049_v55, %v2048_v26  ;;  %v6933_v26 = vld [vmem:[#allocation10 + $0x110] sm:$0xff]  ;;  %v6936_v55 = vld [vmem:[#allocation10 + $0x108] sm:$0xff] }
 0x75a   :  { %2187 = vmatmul.mubr.f32.vlgmr.msra.gmra.mxu0 %v6882_v44  ;;  %5252 = vmatmul.mubr.f32.vlgmr.msra.gmra.mxu1 %v6882_v44 }
 0x75b   :  { %2360 = vmatpush1.msra.mxu0 %v2339_v62  ;;  %5255 = vmatpush3.msra.mxu1 %v2341_v31  ;;  %v2324_v31 = vld [vmem:[#allocation9 + $0xf0] sm:$0xff]  ;;  %v6939_v62 = vld [vmem:[#allocation10 + $0xf8] sm:$0xff] }
 0x75c   :  { %2361 = vmatprep.subr.mxu0 %v2337_v43  ;;  %5256 = vmatprep.subr.mxu1 %v2338_v19  ;;  %v6942_v43 = vld [vmem:[#allocation10 + $0xf0] sm:$0xff] }
 0x75d   :  { %5286 = vmatprep.mubr.f32.mxu1 %v8046_v56  ;;  %2362 = vmatpush1.msra.mxu0 %v2336_v45  ;;  %v6948_v45 = vld [vmem:[#allocation10 + $0xd8] sm:$0xff] }
 0x75e   :  { %5257 = vmatpush3.msra.mxu1 %v2338_v19  ;;  %2363 = vmatprep.subr.mxu0 %v2334_v61  ;;  %v6945_v19 = vld [vmem:[#allocation10 + $0xe0] sm:$0xff]  ;;  %v6951_v61 = vld [vmem:[#allocation10 + $0xc8] sm:$0xff] }
 0x75f   :  { %5258 = vmatprep.subr.mxu1 %v2335_v49  ;;  %2364 = vmatpush1.msra.mxu0 %v2333_v17  ;;  %v6957_v17 = vld [vmem:[#allocation10 + $0xb0] sm:$0xff] }
 0x760   :  { %5259 = vmatpush3.msra.mxu1 %v2335_v49  ;;  %2365 = vmatprep.subr.mxu0 %v2331_v41  ;;  %v6954_v49 = vld [vmem:[#allocation10 + $0xc0] sm:$0xff]  ;;  %v6963_v41 = vld [vmem:[#allocation10 + $0x98] sm:$0xff] }
 0x761   :  { %5260 = vmatprep.subr.mxu1 %v2332_v23  ;;  %2366 = vmatpush1.msra.mxu0 %v2330_v16  ;;  %v6969_v16 = vld [vmem:[#allocation10 + $0x80] sm:$0xff] }
 0x762   :  { %5261 = vmatpush3.msra.mxu1 %v2332_v23  ;;  %2367 = vmatprep.subr.mxu0 %v2328_v6  ;;  %v6966_v23 = vld [vmem:[#allocation10 + $0x90] sm:$0xff]  ;;  %v6972_v6 = vld [vmem:[#allocation10 + $0x78] sm:$0xff] }
 0x763   :  { %5262 = vmatprep.subr.mxu1 %v2329_v27  ;;  %2368 = vmatpush1.msra.mxu0 %v2327_v28  ;;  %v6978_v28 = vld [vmem:[#allocation10 + $0x60] sm:$0xff] }
 0x764   :  { %5263 = vmatpush3.msra.mxu1 %v2329_v27  ;;  %2369 = vmatprep.subr.mxu0 %v2325_v29  ;;  %v6975_v27 = vld [vmem:[#allocation10 + $0x68] sm:$0xff]  ;;  %v6981_v29 = vld [vmem:[#allocation10 + $0x50] sm:$0xff] }
 0x765   :  { %5264 = vmatprep.subr.mxu1 %v2326_v30  ;;  %2370 = vmatpush1.msra.mxu0 %v2324_v31  ;;  %v6987_v31 = vld [vmem:[#allocation10 + $0x38] sm:$0xff] }
 0x766   :  { %5265 = vmatpush3.msra.mxu1 %v2326_v30  ;;  %2371 = vmatprep.subr.mxu0 %v2322_v32  ;;  %v6984_v30 = vld [vmem:[#allocation10 + $0x48] sm:$0xff]  ;;  %8050 = vst [vmem:[#allocation29_spill] sm:$0xff] %v6987_v31  ;;  %v6990_v32 = vld [vmem:[#allocation10 + $0x30] sm:$0xff] }
 0x767   :  { %5266 = vmatprep.subr.mxu1 %v2323_v33  ;;  %2372 = vmatpush1.msra.mxu0 %v2321_v34  ;;  %8051 = vst [vmem:[#allocation30_spill] sm:$0xff] %v6990_v32  ;;  %v6995_v34 = vld [vmem:[#allocation10 + $0x18] sm:$0xff] }
 0x768   :  { %5267 = vmatpush3.msra.mxu1 %v2323_v33  ;;  %2373 = vmatprep.subr.mxu0 %v2319_v36  ;;  %v6993_v33 = vld [vmem:[#allocation10 + $0x20] sm:$0xff]  ;;  %8053 = vst [vmem:[#allocation32_spill] sm:$0xff] %v6995_v34  ;;  %v6997_v36 = vld [vmem:[#allocation10 + $0x8] sm:$0xff] }
 0x769   :  { %5268 = vmatprep.subr.mxu1 %v2320_v37  ;;  %2374 = vmatpush1.msra.mxu0 %v2318_v38  ;;  %8052 = vst [vmem:[#allocation31_spill] sm:$0xff] %v6993_v33  ;;  %8054 = vst [vmem:[#allocation22_spill] sm:$0xff] %v6997_v36  ;;  %v7004_v38 = vld [vmem:[#allocation10 + $0x178] sm:$0xff] }
 0x76a   :  { %5269 = vmatpush3.msra.mxu1 %v2320_v37  ;;  %2375 = vmatprep.subr.mxu0 %v2316_v24  ;;  %v7000_v37 = vld [vmem:[#allocation10] sm:$0xff] }
 0x76b   :  { %5270 = vmatprep.subr.mxu1 %v2317_v46  ;;  %2376 = vmatpush1.msra.mxu0 %v2315_v47  ;;  %8055 = vst [vmem:[#allocation17_spill] sm:$0xff] %v7000_v37  ;;  %v7006_v24 = vld [vmem:[#allocation10 + $0x160] sm:$0xff]  ;;  %v7016_v47 = vld [vmem:[#allocation10 + $0x130] sm:$0xff] }
 0x76c   :  { %5271 = vmatpush3.msra.mxu1 %v2317_v46  ;;  %2377 = vmatprep.subr.mxu0 %v2313_v48  ;;  %v7011_v46 = vld [vmem:[#allocation10 + $0x148] sm:$0xff]  ;;  %v7020_v48 = vld [vmem:[#allocation10 + $0x118] sm:$0xff] }
 0x76d   :  { %5272 = vmatprep.subr.mxu1 %v2314_v51  ;;  %2378 = vmatpush1.msra.mxu0 %v2312_v52  ;;  %v7028_v52 = vld [vmem:[#allocation10 + $0xe8] sm:$0xff] }
 0x76e   :  { %5273 = vmatpush3.msra.mxu1 %v2314_v51  ;;  %2379 = vmatprep.subr.mxu0 %v2310_v53  ;;  %v7024_v51 = vld [vmem:[#allocation10 + $0x100] sm:$0xff]  ;;  %v7032_v53 = vld [vmem:[#allocation10 + $0xd0] sm:$0xff] }
 0x76f   :  { %5274 = vmatprep.subr.mxu1 %v2311_v54  ;;  %2380 = vmatpush1.msra.mxu0 %v2309_v57  ;;  %v7040_v57 = vld [vmem:[#allocation10 + $0xa0] sm:$0xff] }
 0x770   :  { %5275 = vmatpush3.msra.mxu1 %v2311_v54  ;;  %2381 = vmatprep.subr.mxu0 %v2307_v58  ;;  %v7036_v54 = vld [vmem:[#allocation10 + $0xb8] sm:$0xff]  ;;  %v7044_v58 = vld [vmem:[#allocation10 + $0x88] sm:$0xff] }
 0x771   :  { %5276 = vmatprep.subr.mxu1 %v2308_v59  ;;  %2382 = vmatpush1.msra.mxu0 %v2306_v63  ;;  %v7052_v63 = vld [vmem:[#allocation10 + $0x58] sm:$0xff] }
 0x772   :  { %5277 = vmatpush3.msra.mxu1 %v2308_v59  ;;  %2383 = vmatprep.subr.mxu0 %v2304_v1  ;;  %v7048_v59 = vld [vmem:[#allocation10 + $0x70] sm:$0xff]  ;;  %8056 = vst [vmem:[#allocation33_spill] sm:$0xff] %v7052_v63  ;;  %v7056_v1 = vld [vmem:[#allocation10 + $0x40] sm:$0xff] }
 0x773   :  { %5278 = vmatprep.subr.mxu1 %v2305_v50  ;;  %2384 = vmatpush1.msra.mxu0 %v2303_v4  ;;  %8057 = vst [vmem:[#allocation34_spill] sm:$0xff] %v7056_v1  ;;  %v7064_v4 = vld [vmem:[#allocation10 + $0x10] sm:$0xff] }
 0x774   :  { %5279 = vmatpush3.msra.mxu1 %v2305_v50  ;;  %2385 = vmatprep.subr.mxu0 %v2301_v60  ;;  %v7060_v50 = vld [vmem:[#allocation10 + $0x28] sm:$0xff]  ;;  %8059 = vst [vmem:[#allocation24_spill] sm:$0xff] %v7064_v4  ;;  %v2105_v60 = vld [vmem:[%s7858_s4] sm:$0x7] }
 0x775   :  { %5280 = vmatprep.subr.mxu1 %v2302_v2  ;;  %2386 = vmatpush1.msra.mxu0 %v2300_v3  ;;  %8058 = vst [vmem:[#allocation43_spill] sm:$0xff] %v7060_v50 }
 0x776   :  { %5281 = vmatpush3.msra.mxu1 %v2302_v2  ;;  %2387 = vmatprep.subr.mxu0 %v2298_v13  ;;  %v2110_v2 = vrot.slane %v2105_v60, %v8038_v35 }
 0x777   :  { %5282 = vmatprep.subr.mxu1 %v2299_v18  ;;  %2388 = vmatpush1.msra.mxu0 %v2297_v15  ;;  %v2114_v15 = vrot.slane %v2105_v60, %v8039_v20 }
 0x778   :  { %5283 = vmatpush3.msra.mxu1 %v2299_v18  ;;  %2389 = vmatprep.subr.mxu0 %v2295_v22 }
 0x779   :  { %5284 = vmatprep.subr.mxu1 %v2296_v21  ;;  %2390 = vmatpush1.msra.mxu0 %v2294_v7  ;;  %v8060_v7 = vld [vmem:[#allocation40_spill] sm:$0xff] }
 0x77a   :  { %2423 = vmatprep.mubr.f32.mxu0 %v7988_v42  ;;  %5285 = vmatpush3.msra.mxu1 %v2296_v21 }
 0x77b   :  { %2424 = vmatmul.mubr.f32.vlgmr.msra.gmra.mxu0 %v8046_v56  ;;  %5287 = vmatmul.mubr.f32.vlgmr.msra.gmra.mxu1 %v8047_v12  ;;  %v6960_v56 = vld [vmem:[#allocation10 + $0xa8] sm:$0xff] }
 0x77c   :  { %5289 = vmatprep.mubr.f32.mxu1 %v8048_v0  ;;  %2429 = vmatprep.mubr.f32.mxu0 %v7988_v42 }
 0x77d   :  { %5298 = vmatprep.subr.mxu1 %v7988_v42  ;;  %2671 = vmatprep.subr.mxu0 %v6909_v11 }
 0x77e   :  { %2672 = vmatpush1.msra.mxu0 %v6912_v9  ;;  %5299 = vmatpush3.msra.mxu1 %v7004_v38 }
 0x77f   :  { %2430 = vmatmul.mubr.f32.gmra.mxu0 %v8047_v12  ;;  %5290 = vmatmul.mubr.f32.gmra.mxu1 %v6673_v8 }
 0x780   :  { %5292 = vmatprep.mubr.f32.mxu1 %v6754_v10  ;;  %2435 = vmatprep.mubr.f32.mxu0 %v7988_v42 }
 0x781   :  { %5300 = vmatprep.subr.mxu1 %v7988_v42 }
 0x782   :  { %5301 = vmatpush3.msra.mxu1 %v7006_v24 }
 0x783   :  { %2436 = vmatmul.mubr.f32.gmra.mxu0 %v8048_v0  ;;  %5293 = vmatmul.mubr.f32.gmra.mxu1 %v6834_v40 }
 0x784   :  { %5295 = vmatprep.mubr.f32.mxu1 %v6882_v44  ;;  %2441 = vmatprep.mubr.f32.mxu0 %v7988_v42 }
 0x785   :  { %5302 = vmatprep.subr.mxu1 %v7988_v42 }
 0x786   :  { %5303 = vmatpush3.msra.mxu1 %v7011_v46 }
 0x787   :  { %2442 = vmatmul.mubr.f32.gmra.mxu0 %v6673_v8  ;;  %v6915_v8 = vld [vmem:[#allocation10 + $0x158] sm:$0xff]  ;;  %5304 = vmatprep.subr.mxu1 %v7988_v42 }
 0x788   :  { %2447 = vmatprep.mubr.f32.mxu0 %v7988_v42  ;;  %2673 = vmatprep.subr.mxu0 %v6915_v8 }
 0x789   :  { %5305 = vmatpush3.msra.mxu1 %v7016_v47 }
 0x78a   :  { %5306 = vmatprep.subr.mxu1 %v7988_v42 }
 0x78b   :  { %2448 = vmatmul.mubr.f32.gmra.mxu0 %v6754_v10  ;;  %v6918_v10 = vld [vmem:[#allocation10 + $0x150] sm:$0xff]  ;;  %5307 = vmatpush3.msra.mxu1 %v7020_v48 }
 0x78c   :  { %2453 = vmatprep.mubr.f32.mxu0 %v7988_v42  ;;  %2674 = vmatpush1.msra.mxu0 %v6918_v10 }
 0x78d   :  { %5308 = vmatprep.subr.mxu1 %v7988_v42 }
 0x78e   :  { %5309 = vmatpush3.msra.mxu1 %v7024_v51 }
 0x78f   :  { %2454 = vmatmul.mubr.f32.gmra.mxu0 %v6834_v40  ;;  %v6921_v40 = vld [vmem:[#allocation10 + $0x140] sm:$0xff]  ;;  %5310 = vmatprep.subr.mxu1 %v7988_v42 }
 0x790   :  { %2459 = vmatprep.mubr.f32.mxu0 %v7988_v42  ;;  %2675 = vmatprep.subr.mxu0 %v6921_v40 }
 0x791   :  { %2676 = vmatpush1.msra.mxu0 %v6924_v14  ;;  %5311 = vmatpush3.msra.mxu1 %v7028_v52 }
 0x792   :  { %2677 = vmatprep.subr.mxu0 %v6927_v25  ;;  %5312 = vmatprep.subr.mxu1 %v7988_v42 }
 0x793   :  { %2460 = vmatmul.mubr.f32.gmra.mxu0 %v6882_v44  ;;  %5313 = vmatpush3.msra.mxu1 %v7032_v53 }
 0x794   :  { %2465 = vmatprep.mubr.f32.mxu0 %v7988_v42  ;;  %2678 = vmatpush1.msra.mxu0 %v6930_v39 }
 0x795   :  { %2679 = vmatprep.subr.mxu0 %v6933_v26  ;;  %5314 = vmatprep.subr.mxu1 %v7988_v42 }
 0x796   :  { %2680 = vmatpush1.msra.mxu0 %v6936_v55  ;;  %5315 = vmatpush3.msra.mxu1 %v7036_v54 }
 0x797   :  { %2681 = vmatprep.subr.mxu0 %v6939_v62  ;;  %5316 = vmatprep.subr.mxu1 %v7988_v42 }
 0x798   :  { %2682 = vmatpush1.msra.mxu0 %v6942_v43  ;;  %5317 = vmatpush3.msra.mxu1 %v7040_v57 }
 0x799   :  { %2683 = vmatprep.subr.mxu0 %v6945_v19  ;;  %5318 = vmatprep.subr.mxu1 %v7988_v42 }
 0x79a   :  { %2684 = vmatpush1.msra.mxu0 %v6948_v45  ;;  %5319 = vmatpush3.msra.mxu1 %v7044_v58 }
 0x79b   :  { %2685 = vmatprep.subr.mxu0 %v6951_v61  ;;  %5320 = vmatprep.subr.mxu1 %v7988_v42 }
 0x79c   :  { %2686 = vmatpush1.msra.mxu0 %v6954_v49  ;;  %5321 = vmatpush3.msra.mxu1 %v7048_v59 }
 0x79d   :  { %2687 = vmatprep.subr.mxu0 %v6957_v17  ;;  %5322 = vmatprep.subr.mxu1 %v7988_v42 }
 0x79e   :  { %2688 = vmatpush1.msra.mxu0 %v6960_v56  ;;  %5323 = vmatpush3.msra.mxu1 %v7052_v63 }
 0x79f   :  { %2689 = vmatprep.subr.mxu0 %v6963_v41  ;;  %5324 = vmatprep.subr.mxu1 %v7988_v42 }
 0x7a0   :  { %2690 = vmatpush1.msra.mxu0 %v6966_v23  ;;  %5325 = vmatpush3.msra.mxu1 %v7056_v1 }
 0x7a1   :  { %2691 = vmatprep.subr.mxu0 %v6969_v16  ;;  %5326 = vmatprep.subr.mxu1 %v7988_v42 }
 0x7a2   :  { %2692 = vmatpush1.msra.mxu0 %v6972_v6  ;;  %5327 = vmatpush3.msra.mxu1 %v7060_v50 }
 0x7a3   :  { %2693 = vmatprep.subr.mxu0 %v6975_v27  ;;  %5328 = vmatprep.subr.mxu1 %v7988_v42 }
 0x7a4   :  { %2694 = vmatpush1.msra.mxu0 %v6978_v28  ;;  %5329 = vmatpush3.msra.mxu1 %v7064_v4  ;;  %v8061_v4 = vld [vmem:[#allocation41_spill] sm:$0xff] }
 0x7a5   :  { %2695 = vmatprep.subr.mxu0 %v6981_v29  ;;  %5333 = vmatprep.subr.mxu1 %v7988_v42 }
 0x7a6   :  { %2696 = vmatpush1.msra.mxu0 %v6984_v30 }
 0x7a7   :  { %2697 = vmatprep.subr.mxu0 %v6987_v31 }
 0x7a8   :  { %2698 = vmatpush1.msra.mxu0 %v6990_v32 }
 0x7a9   :  { %2699 = vmatprep.subr.mxu0 %v6993_v33  ;;  %v2118_v33 = vrot.slane %v2105_v60, %v6299_v5 }
 0x7aa   :  { %2700 = vmatpush1.msra.mxu0 %v6995_v34 }
 0x7ab   :  { %2701 = vmatprep.subr.mxu0 %v6997_v36 }
 0x7ac   :  { %2702 = vmatpush1.msra.mxu0 %v7000_v37 }
 0x7ad   :  { %2903 = vmatprep.subr.mxu0 %v6909_v11 }
 0x81a   :  { %v2188_v3 = vpop.f32.mrf.mxu0  ;;  %v2259_v13 = vpop.f32.mrf.mxu1 }
 0x81b   :  { %v2189_v18 = vadd.f32 %v2188_v3, %v2110_v2  ;;  %v2260_v3 = vadd.f32 %v2259_v13, %v2118_v33  ;;  %v8066_v33 = vld [vmem:[#allocation43_spill] sm:$0xff] }
 0x81c   :  { %v2190_v22 = vpop.f32.mrf.mxu0  ;;  %v5253_v21 = vpop.f32.mrf.mxu1 }
 0x81d   :  { %v2263_v12 = vadd.f32 %v2189_v18, %v8060_v7  ;;  %v2191_v11 = vadd.f32 %v2190_v22, %v2114_v15  ;;  %v8062_v21 = vld [vmem:[#allocation44_spill] sm:$0xff] }
 0x81f   :  { %v4574_v0 = vmul.f32 -1.442695, %v2263_v12  ;;  %v2270_v37 = vadd.f32 %v2191_v11, %v8061_v4  ;;  %v8070_v4 = vld [vmem:[#allocation39_spill] sm:$0xff] }
 0x821   :  { %5694 = vpow2.f32 %v4574_v0  ;;  %v4575_v36 = vmul.f32 -1.442695, %v2270_v37 }
 0x823   :  { %5696 = vpow2.f32 %v4575_v36 }
 0x82e   :  { %v5695_v50 = vpop.eup %5694 }
 0x82f   :  { %v2267_v34 = vadd.f32 1.0, %v5695_v50  ;;  %v8069_v50 = vld [vmem:[#allocation24_spill] sm:$0xff] }
 0x830   :  { %v5697_v35 = vpop.eup %5696 }
 0x831   :  { %5698 = vrcp.f32 %v2267_v34  ;;  %v2274_v2 = vadd.f32 1.0, %v5697_v35  ;;  %v8063_v35 = vld [vmem:[#allocation34_spill] sm:$0xff] }
 0x832   :  { %v8067_v34 = vld [vmem:[#allocation22_spill] sm:$0xff] }
 0x833   :  { %5700 = vrcp.f32 %v2274_v2 }
 0x83b   :  { %v2425_v60 = vpop.f32.mrf.mxu0 }
 0x83d   :  { %v2427_v13 = vpop.f32.mrf.mxu0 }
 0x83e   :  { %v5699_v20 = vpop.eup %5698 }
 0x83f   :  { %v2277_v1 = vmul.f32 %v5699_v20, %v2260_v3  ;;  %v8064_v20 = vld [vmem:[#allocation31_spill] sm:$0xff]  ;;  %v7152_v12 = vpop.f32.mrf.mxu0 }
 0x840   :  { %v5701_v15 = vpop.eup %5700  ;;  %8071 = vst [vmem:[#allocation18_spill] sm:$0xff] %v7152_v12 }
 0x841   :  { %v2278_v18 = vadd.f32 %v2277_v1, %v8062_v21  ;;  %v2280_v22 = vsub.f32 1.0, %v5701_v15  ;;  %v2282_v36 = vmul.f32 %v5701_v15, %v6882_v44  ;;  %v8065_v44 = vld [vmem:[#allocation32_spill] sm:$0xff]  ;;  %v8068_v1 = vld [vmem:[#allocation17_spill] sm:$0xff]  ;;  %v7154_v0 = vpop.f32.mrf.mxu0  ;;  %v7164_v15 = vpop.f32.mrf.mxu1 }
 0x842   :  { %8072 = vst [vmem:[#allocation19_spill] sm:$0xff] %v7154_v0  ;;  %8077 = vst [vmem:[#allocation35_spill] sm:$0xff] %v7164_v15 }
 0x843   :  { %5702 = vtanh.f32 %v2278_v18  ;;  %v7156_v2 = vpop.f32.mrf.mxu0 }
 0x844   :  { %8073 = vst [vmem:[#allocation27_spill] sm:$0xff] %v7156_v2 }
 0x845   :  { %v7158_v3 = vpop.f32.mrf.mxu0 }
 0x846   :  { %8074 = vst [vmem:[#allocation23_spill] sm:$0xff] %v7158_v3 }
 0x847   :  { %v7160_v21 = vpop.f32.mrf.mxu0 }
 0x848   :  { %8075 = vst [vmem:[#allocation20_spill] sm:$0xff] %v7160_v21 }
 0x849   :  { %v7162_v18 = vpop.f32.mrf.mxu0 }
 0x84a   :  { %8076 = vst [vmem:[#allocation28_spill] sm:$0xff] %v7162_v18  ;;  %v2342_v18 = vld [vmem:[%s7861_s7] sm:$0x7] }
 0x850   :  { %v5703_v7 = vpop.eup %5702 }
 0x851   :  { %v2281_v11 = vmul.f32 %v5703_v7, %v2280_v22  ;;  %v7166_v22 = vpop.f32.mrf.mxu0  ;;  %v2538_v7 = vpop.f32.mrf.mxu1 }
 0x852   :  { %8078 = vst [vmem:[#allocation36_spill] sm:$0xff] %v7166_v22 }
 0x853   :  { %v2283_v37 = vadd.f32 %v2282_v36, %v2281_v11  ;;  %v7168_v11 = vpop.f32.mrf.mxu0  ;;  %v7170_v36 = vpop.f32.mrf.mxu1 }
 0x854   :  { %8079 = vst [vmem:[#allocation42_spill] sm:$0xff] %v7168_v11  ;;  %8080 = vst [vmem:[#allocation37_spill] sm:$0xff] %v7170_v36 }
 0x855   :  { %2466 = vmatmul.mubr.f32.gmra.mxu0 %v2283_v37  ;;  %5296 = vmatmul.mubr.f32.gmra.mxu1 %v2283_v37  ;;  %v7172_v37 = vpop.f32.mrf.mxu0  ;;  %v7174_v0 = vpop.f32.mrf.mxu1 }
 0x856   :  { %2735 = vmatprep.mubr.f32.mxu0 %v7988_v42  ;;  %5330 = vmatprep.mubr.msk.f32.mxu1 %vm5900_vm0, %v7988_v42  ;;  %8081 = vst [vmem:[#allocation38_spill] sm:$0xff] %v7172_v37  ;;  %8082 = vst [vmem:[#allocation45_spill] sm:$0xff] %v7174_v0  ;;  %v2654_v37 = vld [vmem:[%s7862_s8] sm:$0x7] }
 0x857   :  { %v7176_v2 = vpop.f32.mrf.mxu0  ;;  %v7178_v3 = vpop.f32.mrf.mxu1 }
 0x858   :  { %8083 = vst [vmem:[#allocation46_spill] sm:$0xff] %v7176_v2  ;;  %8084 = vst [vmem:[#allocation16_spill] sm:$0xff] %v7178_v3  ;;  %v8090_v2 = vld [vmem:[#allocation25_spill] sm:$0xff] }
 0x859   :  { %2736 = vmatmul.mubr.f32.vlgmr.msra.gmra.mxu0 %v7988_v42  ;;  %5331 = vmatmul.mubr.f32.vlgmr.msra.gmra.mxu1 %v7988_v42  ;;  %v7180_v21 = vpop.f32.mrf.mxu0  ;;  %v7185_v22 = vpop.f32.mrf.mxu1  ;;  %v7197_v3 = vrot.slane %v2342_v18, %v8090_v2 }
 0x85a   :  { %2904 = vmatpush1.msra.mxu0 %v6912_v9  ;;  %5334 = vmatpush3.msra.mxu1 %v7004_v38  ;;  %8085 = vst [vmem:[#allocation21_spill] sm:$0xff] %v7180_v21  ;;  %8086 = vst [vmem:[#allocation40_spill] sm:$0xff] %v7185_v22  ;;  %v2659_v21 = vrot.slane %v2654_v37, %v8090_v2 }
 0x85b   :  { %2905 = vmatprep.subr.mxu0 %v6915_v8  ;;  %5335 = vmatprep.subr.mxu1 %v7988_v42  ;;  %v7187_v15 = vpop.f32.mrf.mxu0 }
 0x85c   :  { %2906 = vmatpush1.msra.mxu0 %v6918_v10  ;;  %5336 = vmatpush3.msra.mxu1 %v7006_v24  ;;  %8087 = vst [vmem:[#allocation41_spill] sm:$0xff] %v7187_v15  ;;  %v2426_v15 = vadd.f32 %v2425_v60, %v7197_v3  ;;  %v2667_v60 = vrot.slane %v2654_v37, %v6299_v5 }
 0x85d   :  { %2907 = vmatprep.subr.mxu0 %v6921_v40  ;;  %5337 = vmatprep.subr.mxu1 %v7988_v42 }
 0x85e   :  { %2908 = vmatpush1.msra.mxu0 %v6924_v14  ;;  %5338 = vmatpush3.msra.mxu1 %v7011_v46 }
 0x85f   :  { %2909 = vmatprep.subr.mxu0 %v6927_v25  ;;  %5339 = vmatprep.subr.mxu1 %v7988_v42 }
 0x860   :  { %2910 = vmatpush1.msra.mxu0 %v6930_v39  ;;  %5340 = vmatpush3.msra.mxu1 %v7016_v47 }
 0x861   :  { %2911 = vmatprep.subr.mxu0 %v6933_v26  ;;  %5341 = vmatprep.subr.mxu1 %v7988_v42 }
 0x862   :  { %2912 = vmatpush1.msra.mxu0 %v6936_v55  ;;  %5342 = vmatpush3.msra.mxu1 %v7020_v48 }
 0x863   :  { %2913 = vmatprep.subr.mxu0 %v6939_v62  ;;  %5343 = vmatprep.subr.mxu1 %v7988_v42 }
 0x864   :  { %2914 = vmatpush1.msra.mxu0 %v6942_v43  ;;  %5344 = vmatpush3.msra.mxu1 %v7024_v51 }
 0x865   :  { %2915 = vmatprep.subr.mxu0 %v6945_v19  ;;  %5345 = vmatprep.subr.mxu1 %v7988_v42 }
 0x866   :  { %2916 = vmatpush1.msra.mxu0 %v6948_v45  ;;  %5346 = vmatpush3.msra.mxu1 %v7028_v52 }
 0x867   :  { %2917 = vmatprep.subr.mxu0 %v6951_v61  ;;  %5347 = vmatprep.subr.mxu1 %v7988_v42 }
 0x868   :  { %2918 = vmatpush1.msra.mxu0 %v6954_v49  ;;  %5348 = vmatpush3.msra.mxu1 %v7032_v53 }
 0x869   :  { %2919 = vmatprep.subr.mxu0 %v6957_v17  ;;  %5349 = vmatprep.subr.mxu1 %v7988_v42 }
 0x86a   :  { %2920 = vmatpush1.msra.mxu0 %v6960_v56  ;;  %5350 = vmatpush3.msra.mxu1 %v7036_v54 }
 0x86b   :  { %2921 = vmatprep.subr.mxu0 %v6963_v41  ;;  %5351 = vmatprep.subr.mxu1 %v7988_v42 }
 0x86c   :  { %2922 = vmatpush1.msra.mxu0 %v6966_v23  ;;  %5352 = vmatpush3.msra.mxu1 %v7040_v57 }
 0x86d   :  { %2923 = vmatprep.subr.mxu0 %v6969_v16  ;;  %5353 = vmatprep.subr.mxu1 %v7988_v42 }
 0x86e   :  { %2924 = vmatpush1.msra.mxu0 %v6972_v6  ;;  %5354 = vmatpush3.msra.mxu1 %v7044_v58 }
 0x86f   :  { %2925 = vmatprep.subr.mxu0 %v6975_v27  ;;  %5355 = vmatprep.subr.mxu1 %v7988_v42 }
 0x870   :  { %2926 = vmatpush1.msra.mxu0 %v6978_v28  ;;  %5356 = vmatpush3.msra.mxu1 %v7048_v59 }
 0x871   :  { %2927 = vmatprep.subr.mxu0 %v6981_v29  ;;  %5357 = vmatprep.subr.mxu1 %v7988_v42 }
 0x872   :  { %2928 = vmatpush1.msra.mxu0 %v6984_v30  ;;  %5358 = vmatpush3.msra.mxu1 %v7052_v63 }
 0x873   :  { %2929 = vmatprep.subr.mxu0 %v6987_v31  ;;  %5359 = vmatprep.subr.mxu1 %v7988_v42 }
 0x874   :  { %2930 = vmatpush1.msra.mxu0 %v6990_v32  ;;  %5360 = vmatpush3.msra.mxu1 %v8063_v35 }
 0x875   :  { %2931 = vmatprep.subr.mxu0 %v8064_v20  ;;  %5361 = vmatprep.subr.mxu1 %v7988_v42 }
 0x876   :  { %2932 = vmatpush1.msra.mxu0 %v8065_v44  ;;  %5362 = vmatpush3.msra.mxu1 %v8066_v33 }
 0x877   :  { %2933 = vmatprep.subr.mxu0 %v8067_v34  ;;  %5363 = vmatprep.subr.mxu1 %v7988_v42 }
 0x878   :  { %2934 = vmatpush1.msra.mxu0 %v8068_v1  ;;  %2967 = vmatprep.mubr.f32.mxu0 %v7988_v42  ;;  %v8093_v1 = vld [vmem:[#allocation26_spill] sm:$0xff] }
 0x879   :  { %5364 = vmatpush3.msra.mxu1 %v8069_v50  ;;  %5365 = vmatprep.mubr.msk.f32.mxu1 %vm5900_vm0, %v7988_v42  ;;  %v2663_v34 = vrot.slane %v2654_v37, %v8093_v1  ;;  %v8100_v37 = vld [vmem:[#allocation22_spill] sm:$0xff] }
 0x87a   :  { %3135 = vmatprep.subr.mxu0 %v8070_v4  ;;  %5368 = vmatprep.subr.mxu1 %v7988_v42 }
 0x915   :  { %v7192_v11 = vpop.f32.mrf.mxu0  ;;  %v7194_v36 = vpop.f32.mrf.mxu1 }
 0x916   :  { %8088 = vst [vmem:[#allocation44_spill] sm:$0xff] %v7192_v11  ;;  %8089 = vst [vmem:[#allocation47_spill] sm:$0xff] %v7194_v36  ;;  %v7207_v36 = vrot.slane %v2342_v18, %v8093_v1  ;;  %v7212_v1 = vrot.slane %v2342_v18, %v6299_v5  ;;  %v8097_v18 = vld [vmem:[#allocation31_spill] sm:$0xff] }
 0x917   :  { %v7200_v0 = vpop.f32.mrf.mxu0  ;;  %v7202_v12 = vpop.f32.mrf.mxu1 }
 0x918   :  { %8091 = vst [vmem:[#allocation48_spill] sm:$0xff] %v7200_v0  ;;  %8092 = vst [vmem:[#allocation49_spill] sm:$0xff] %v7202_v12  ;;  %v2428_v2 = vadd.f32 %v2427_v13, %v7207_v36 }
 0x919   :  { %v2737_v22 = vpop.f32.mrf.mxu0  ;;  %v2808_v4 = vpop.f32.mrf.mxu1 }
 0x91a   :  { %v2738_v50 = vadd.f32 %v2737_v22, %v2659_v21 }
 0x91b   :  { %v2739_v33 = vpop.f32.mrf.mxu0  ;;  %v5332_v11 = vpop.f32.mrf.mxu1 }
 0x91c   :  { %v2812_v44 = vadd.f32 %v2738_v50, %v2426_v15  ;;  %v2740_v35 = vadd.f32 %v2739_v33, %v2663_v34  ;;  %v2809_v11 = vadd.f32 %v2808_v4, %v2667_v60  ;;  %v8094_v4 = vld [vmem:[#allocation29_spill] sm:$0xff]  ;;  %v8098_v15 = vld [vmem:[#allocation32_spill] sm:$0xff] }
 0x91d   :  { %v8101_v60 = vld [vmem:[#allocation17_spill] sm:$0xff] }
 0x91e   :  { %v4576_v20 = vmul.f32 -1.442695, %v2812_v44  ;;  %v2819_v0 = vadd.f32 %v2740_v35, %v2428_v2  ;;  %v2539_v44 = vadd.f32 %v2538_v7, %v7212_v1  ;;  %v8096_v2 = vld [vmem:[#allocation34_spill] sm:$0xff]  ;;  %v8099_v7 = vld [vmem:[#allocation43_spill] sm:$0xff] }
 0x920   :  { %5704 = vpow2.f32 %v4576_v20  ;;  %v4577_v12 = vmul.f32 -1.442695, %v2819_v0  ;;  %v8095_v0 = vld [vmem:[#allocation30_spill] sm:$0xff] }
 0x922   :  { %5706 = vpow2.f32 %v4577_v12 }
 0x92d   :  { %v5705_v32 = vpop.eup %5704 }
 0x92e   :  { %v2816_v31 = vadd.f32 1.0, %v5705_v32 }
 0x92f   :  { %v5707_v21 = vpop.eup %5706 }
 0x930   :  { %5708 = vrcp.f32 %v2816_v31  ;;  %v2823_v22 = vadd.f32 1.0, %v5707_v21  ;;  %v8102_v21 = vld [vmem:[#allocation24_spill] sm:$0xff] }
 0x932   :  { %5710 = vrcp.f32 %v2823_v22  ;;  %v8103_v22 = vld [vmem:[#allocation39_spill] sm:$0xff] }
 0x93d   :  { %v5709_v50 = vpop.eup %5708 }
 0x93e   :  { %v2826_v33 = vmul.f32 %v5709_v50, %v2809_v11  ;;  %v2886_v11 = vld [vmem:[%s7862_s8] sm:$0x7]  ;;  %v8104_v50 = vld [vmem:[#allocation25_spill] sm:$0xff] }
 0x93f   :  { %v5711_v35 = vpop.eup %5710 }
 0x940   :  { %v2827_v20 = vadd.f32 %v2826_v33, %v2539_v44  ;;  %v2829_v34 = vsub.f32 1.0, %v5711_v35  ;;  %v2831_v31 = vmul.f32 0.0, %v5711_v35  ;;  %v2891_v44 = vrot.slane %v2886_v11, %v8104_v50  ;;  %v8105_v35 = vld [vmem:[#allocation18_spill] sm:$0xff] }
 0x942   :  { %5712 = vtanh.f32 %v2827_v20 }
 0x94f   :  { %v5713_v13 = vpop.eup %5712 }
 0x950   :  { %v2830_v32 = vmul.f32 %v5713_v13, %v2829_v34  ;;  %v2432_v34 = vadd.f32 %v8105_v35, %v7197_v3 }
 0x952   :  { %v7215_v12 = vadd.f32 %v2831_v31, %v2830_v32  ;;  %v8106_v32 = vld [vmem:[#allocation26_spill] sm:$0xff] }
 0x953   :  { %v2895_v31 = vrot.slane %v2886_v11, %v8106_v32 }
 0x954   :  { %2968 = vmatmul.mubr.f32.vlgmr.msra.gmra.mxu0 %v7215_v12  ;;  %5366 = vmatmul.mubr.f32.vlgmr.msra.gmra.mxu1 %v7215_v12 }
 0x955   :  { %3136 = vmatpush1.msra.mxu0 %v6912_v9  ;;  %5369 = vmatpush3.msra.mxu1 %v7004_v38 }
 0x956   :  { %3137 = vmatprep.subr.mxu0 %v6915_v8  ;;  %5370 = vmatprep.subr.mxu1 %v7988_v42 }
 0x957   :  { %3138 = vmatpush1.msra.mxu0 %v6918_v10  ;;  %5371 = vmatpush3.msra.mxu1 %v7006_v24 }
 0x958   :  { %3139 = vmatprep.subr.mxu0 %v6921_v40  ;;  %5372 = vmatprep.subr.mxu1 %v7988_v42 }
 0x959   :  { %3140 = vmatpush1.msra.mxu0 %v6924_v14  ;;  %5373 = vmatpush3.msra.mxu1 %v7011_v46 }
 0x95a   :  { %3141 = vmatprep.subr.mxu0 %v6927_v25  ;;  %5374 = vmatprep.subr.mxu1 %v7988_v42 }
 0x95b   :  { %3142 = vmatpush1.msra.mxu0 %v6930_v39  ;;  %5375 = vmatpush3.msra.mxu1 %v7016_v47 }
 0x95c   :  { %3143 = vmatprep.subr.mxu0 %v6933_v26  ;;  %5376 = vmatprep.subr.mxu1 %v7988_v42 }
 0x95d   :  { %3144 = vmatpush1.msra.mxu0 %v6936_v55  ;;  %5377 = vmatpush3.msra.mxu1 %v7020_v48 }
 0x95e   :  { %3145 = vmatprep.subr.mxu0 %v6939_v62  ;;  %5378 = vmatprep.subr.mxu1 %v7988_v42 }
 0x95f   :  { %3146 = vmatpush1.msra.mxu0 %v6942_v43  ;;  %5379 = vmatpush3.msra.mxu1 %v7024_v51 }
 0x960   :  { %3147 = vmatprep.subr.mxu0 %v6945_v19  ;;  %5380 = vmatprep.subr.mxu1 %v7988_v42 }
 0x961   :  { %3148 = vmatpush1.msra.mxu0 %v6948_v45  ;;  %5381 = vmatpush3.msra.mxu1 %v7028_v52 }
 0x962   :  { %3149 = vmatprep.subr.mxu0 %v6951_v61  ;;  %5382 = vmatprep.subr.mxu1 %v7988_v42 }
 0x963   :  { %3150 = vmatpush1.msra.mxu0 %v6954_v49  ;;  %5383 = vmatpush3.msra.mxu1 %v7032_v53 }
 0x964   :  { %3151 = vmatprep.subr.mxu0 %v6957_v17  ;;  %5384 = vmatprep.subr.mxu1 %v7988_v42 }
 0x965   :  { %3152 = vmatpush1.msra.mxu0 %v6960_v56  ;;  %5385 = vmatpush3.msra.mxu1 %v7036_v54 }
 0x966   :  { %3153 = vmatprep.subr.mxu0 %v6963_v41  ;;  %5386 = vmatprep.subr.mxu1 %v7988_v42 }
 0x967   :  { %3154 = vmatpush1.msra.mxu0 %v6966_v23  ;;  %5387 = vmatpush3.msra.mxu1 %v7040_v57 }
 0x968   :  { %3155 = vmatprep.subr.mxu0 %v6969_v16  ;;  %5388 = vmatprep.subr.mxu1 %v7988_v42 }
 0x969   :  { %3156 = vmatpush1.msra.mxu0 %v6972_v6  ;;  %5389 = vmatpush3.msra.mxu1 %v7044_v58 }
 0x96a   :  { %3157 = vmatprep.subr.mxu0 %v6975_v27  ;;  %5390 = vmatprep.subr.mxu1 %v7988_v42 }
 0x96b   :  { %3158 = vmatpush1.msra.mxu0 %v6978_v28  ;;  %5391 = vmatpush3.msra.mxu1 %v7048_v59 }
 0x96c   :  { %3159 = vmatprep.subr.mxu0 %v6981_v29  ;;  %5392 = vmatprep.subr.mxu1 %v7988_v42 }
 0x96d   :  { %3160 = vmatpush1.msra.mxu0 %v6984_v30  ;;  %5393 = vmatpush3.msra.mxu1 %v7052_v63 }
 0x96e   :  { %3161 = vmatprep.subr.mxu0 %v8094_v4  ;;  %5394 = vmatprep.subr.mxu1 %v7988_v42 }
 0x96f   :  { %3162 = vmatpush1.msra.mxu0 %v8095_v0  ;;  %5395 = vmatpush3.msra.mxu1 %v8096_v2 }
 0x970   :  { %3163 = vmatprep.subr.mxu0 %v8097_v18  ;;  %5396 = vmatprep.subr.mxu1 %v7988_v42 }
 0x971   :  { %3164 = vmatpush1.msra.mxu0 %v8098_v15  ;;  %5397 = vmatpush3.msra.mxu1 %v8099_v7  ;;  %v8107_v15 = vld [vmem:[#allocation19_spill] sm:$0xff] }
 0x972   :  { %3165 = vmatprep.subr.mxu0 %v8100_v37  ;;  %5398 = vmatprep.subr.mxu1 %v7988_v42  ;;  %v2434_v18 = vadd.f32 %v8107_v15, %v7207_v36 }
 0x973   :  { %3166 = vmatpush1.msra.mxu0 %v8101_v60  ;;  %3199 = vmatprep.mubr.f32.mxu0 %v7988_v42 }
 0x974   :  { %5399 = vmatpush3.msra.mxu1 %v8102_v21  ;;  %5400 = vmatprep.mubr.msk.f32.mxu1 %vm5900_vm0, %v7988_v42 }
 0x975   :  { %3367 = vmatprep.subr.mxu0 %v8103_v22  ;;  %5403 = vmatprep.subr.mxu1 %v7988_v42 }
 0xa14   :  { %v2969_v33 = vpop.f32.mrf.mxu0  ;;  %v3040_v20 = vpop.f32.mrf.mxu1 }
 0xa15   :  { %v2970_v13 = vadd.f32 %v2969_v33, %v2891_v44  ;;  %v2899_v44 = vrot.slane %v2886_v11, %v6299_v5 }
 0xa16   :  { %v2971_v21 = vpop.f32.mrf.mxu0  ;;  %v5367_v60 = vpop.f32.mrf.mxu1 }
 0xa17   :  { %v3044_v37 = vadd.f32 %v2970_v13, %v2432_v34  ;;  %v2972_v7 = vadd.f32 %v2971_v21, %v2895_v31  ;;  %v3041_v35 = vadd.f32 %v3040_v20, %v2899_v44  ;;  %v8108_v60 = vld [vmem:[#allocation35_spill] sm:$0xff]  ;;  %v7389_v44 = vld [vmem:[#allocation10 + $0x170] sm:$0xff] }
 0xa18   :  { %8124 = vst [vmem:[#allocation39_spill] sm:$0xff] %v7389_v44 }
 0xa19   :  { %v4578_v22 = vmul.f32 -1.442695, %v3044_v37  ;;  %v3051_v2 = vadd.f32 %v2972_v7, %v2434_v18  ;;  %v2544_v37 = vadd.f32 %v8108_v60, %v7212_v1  ;;  %v7398_v60 = vld [vmem:[#allocation10 + $0x158] sm:$0xff] }
 0xa1b   :  { %5714 = vpow2.f32 %v4578_v22  ;;  %v4579_v0 = vmul.f32 -1.442695, %v3051_v2 }
 0xa1d   :  { %5716 = vpow2.f32 %v4579_v0 }
 0xa28   :  { %v5715_v50 = vpop.eup %5714 }
 0xa29   :  { %v3048_v4 = vadd.f32 1.0, %v5715_v50 }
 0xa2a   :  { %v5717_v63 = vpop.eup %5716 }
 0xa2b   :  { %5718 = vrcp.f32 %v3048_v4  ;;  %v3055_v33 = vadd.f32 1.0, %v5717_v63 }
 0xa2d   :  { %5720 = vrcp.f32 %v3055_v33  ;;  %v7392_v33 = vld [vmem:[#allocation10 + $0x168] sm:$0xff] }
 0xa38   :  { %v5719_v32 = vpop.eup %5718 }
 0xa39   :  { %v3058_v21 = vmul.f32 %v5719_v32, %v3041_v35  ;;  %v7394_v35 = vld [vmem:[#allocation10 + $0x178] sm:$0xff] }
 0xa3a   :  { %v5721_v15 = vpop.eup %5720 }
 0xa3b   :  { %v3059_v34 = vadd.f32 %v3058_v21, %v2544_v37  ;;  %v3061_v18 = vsub.f32 1.0, %v5721_v15  ;;  %v3063_v7 = vmul.f32 %v5721_v15, %v7215_v12  ;;  %v7402_v37 = vld [vmem:[#allocation10 + $0x150] sm:$0xff]  ;;  %v7404_v21 = vld [vmem:[#allocation10 + $0x160] sm:$0xff]  ;;  %v7412_v15 = vld [vmem:[#allocation10 + $0x138] sm:$0xff] }
 0xa3d   :  { %5722 = vtanh.f32 %v3059_v34  ;;  %v7408_v34 = vld [vmem:[#allocation10 + $0x140] sm:$0xff] }
 0xa4a   :  { %v5723_v2 = vpop.eup %5722 }
 0xa4b   :  { %v3062_v0 = vmul.f32 %v5723_v2, %v3061_v18  ;;  %v7414_v18 = vld [vmem:[#allocation10 + $0x148] sm:$0xff] }
 0xa4c   :  { %v7418_v2 = vld [vmem:[#allocation10 + $0x128] sm:$0xff] }
 0xa4d   :  { %v7299_v4 = vadd.f32 %v3063_v7, %v3062_v0  ;;  %v7422_v0 = vld [vmem:[#allocation10 + $0x120] sm:$0xff]  ;;  %v7424_v7 = vld [vmem:[#allocation10 + $0x130] sm:$0xff] }
 0xa4f   :  { %3200 = vmatmul.mubr.f32.vlgmr.msra.gmra.mxu0 %v7299_v4  ;;  %5401 = vmatmul.mubr.f32.vlgmr.msra.gmra.mxu1 %v7299_v4 }
 0xa50   :  { %3368 = vmatpush1.msra.mxu0 %v6912_v9  ;;  %5404 = vmatpush3.msra.mxu1 %v7004_v38  ;;  %v8109_v9 = vld [vmem:[#allocation33_spill] sm:$0xff]  ;;  %v8122_v38 = vld [vmem:[#allocation23_spill] sm:$0xff] }
 0xa51   :  { %3369 = vmatprep.subr.mxu0 %v6915_v8  ;;  %5405 = vmatprep.subr.mxu1 %v7988_v42  ;;  %v8110_v8 = vld [vmem:[#allocation29_spill] sm:$0xff] }
 0xa52   :  { %3370 = vmatpush1.msra.mxu0 %v6918_v10  ;;  %5406 = vmatpush3.msra.mxu1 %v7006_v24  ;;  %v8111_v10 = vld [vmem:[#allocation30_spill] sm:$0xff]  ;;  %v2440_v24 = vadd.f32 %v8122_v38, %v7207_v36 }
 0xa53   :  { %3371 = vmatprep.subr.mxu0 %v6921_v40  ;;  %5407 = vmatprep.subr.mxu1 %v7988_v42  ;;  %v8112_v40 = vld [vmem:[#allocation34_spill] sm:$0xff] }
 0xa54   :  { %3372 = vmatpush1.msra.mxu0 %v6924_v14  ;;  %5408 = vmatpush3.msra.mxu1 %v7011_v46  ;;  %v8113_v14 = vld [vmem:[#allocation31_spill] sm:$0xff]  ;;  %v7504_v38 = vld [vmem:[#allocation10 + $0x50] sm:$0xff] }
 0xa55   :  { %3373 = vmatprep.subr.mxu0 %v6927_v25  ;;  %5409 = vmatprep.subr.mxu1 %v7988_v42  ;;  %v8114_v25 = vld [vmem:[#allocation32_spill] sm:$0xff] }
 0xa56   :  { %3374 = vmatpush1.msra.mxu0 %v6930_v39  ;;  %5410 = vmatpush3.msra.mxu1 %v7016_v47  ;;  %v8115_v39 = vld [vmem:[#allocation43_spill] sm:$0xff] }
 0xa57   :  { %3375 = vmatprep.subr.mxu0 %v6933_v26  ;;  %5411 = vmatprep.subr.mxu1 %v7988_v42  ;;  %v8116_v26 = vld [vmem:[#allocation22_spill] sm:$0xff] }
 0xa58   :  { %3376 = vmatpush1.msra.mxu0 %v6936_v55  ;;  %5412 = vmatpush3.msra.mxu1 %v7020_v48  ;;  %v8117_v55 = vld [vmem:[#allocation17_spill] sm:$0xff] }
 0xa59   :  { %3377 = vmatprep.subr.mxu0 %v6939_v62  ;;  %5413 = vmatprep.subr.mxu1 %v7988_v42  ;;  %v8118_v62 = vld [vmem:[#allocation24_spill] sm:$0xff] }
 0xa5a   :  { %3378 = vmatpush1.msra.mxu0 %v6942_v43  ;;  %5414 = vmatpush3.msra.mxu1 %v7024_v51  ;;  %v3118_v43 = vld [vmem:[%s7862_s8] sm:$0x7] }
 0xa5b   :  { %3379 = vmatprep.subr.mxu0 %v6945_v19  ;;  %5415 = vmatprep.subr.mxu1 %v7988_v42  ;;  %v8119_v19 = vld [vmem:[#allocation25_spill] sm:$0xff] }
 0xa5c   :  { %3380 = vmatpush1.msra.mxu0 %v6948_v45  ;;  %5416 = vmatpush3.msra.mxu1 %v7028_v52  ;;  %v3123_v45 = vrot.slane %v3118_v43, %v8119_v19 }
 0xa5d   :  { %3381 = vmatprep.subr.mxu0 %v6951_v61  ;;  %5417 = vmatprep.subr.mxu1 %v7988_v42 }
 0xa5e   :  { %3382 = vmatpush1.msra.mxu0 %v6954_v49  ;;  %5418 = vmatpush3.msra.mxu1 %v7032_v53  ;;  %v3131_v53 = vrot.slane %v3118_v43, %v6299_v5 }
 0xa5f   :  { %3383 = vmatprep.subr.mxu0 %v6957_v17  ;;  %5419 = vmatprep.subr.mxu1 %v7988_v42  ;;  %v8120_v17 = vld [vmem:[#allocation27_spill] sm:$0xff] }
 0xa60   :  { %3384 = vmatpush1.msra.mxu0 %v6960_v56  ;;  %5420 = vmatpush3.msra.mxu1 %v7036_v54  ;;  %v2438_v56 = vadd.f32 %v8120_v17, %v7197_v3  ;;  %v7474_v17 = vld [vmem:[#allocation10 + $0x98] sm:$0xff] }
 0xa61   :  { %3385 = vmatprep.subr.mxu0 %v6963_v41  ;;  %5421 = vmatprep.subr.mxu1 %v7988_v42 }
 0xa62   :  { %3386 = vmatpush1.msra.mxu0 %v6966_v23  ;;  %5422 = vmatpush3.msra.mxu1 %v7040_v57  ;;  %v8121_v23 = vld [vmem:[#allocation26_spill] sm:$0xff] }
 0xa63   :  { %3387 = vmatprep.subr.mxu0 %v6969_v16  ;;  %5423 = vmatprep.subr.mxu1 %v7988_v42  ;;  %v3127_v16 = vrot.slane %v3118_v43, %v8121_v23  ;;  %v7462_v43 = vld [vmem:[#allocation10 + $0xd0] sm:$0xff] }
 0xa64   :  { %3388 = vmatpush1.msra.mxu0 %v6972_v6  ;;  %5424 = vmatpush3.msra.mxu1 %v7044_v58 }
 0xa65   :  { %3389 = vmatprep.subr.mxu0 %v6975_v27  ;;  %5425 = vmatprep.subr.mxu1 %v7988_v42 }
 0xa66   :  { %3390 = vmatpush1.msra.mxu0 %v6978_v28  ;;  %5426 = vmatpush3.msra.mxu1 %v7048_v59  ;;  %v8123_v59 = vld [vmem:[#allocation45_spill] sm:$0xff] }
 0xa67   :  { %3391 = vmatprep.subr.mxu0 %v6981_v29  ;;  %5427 = vmatprep.subr.mxu1 %v7988_v42  ;;  %v2549_v63 = vadd.f32 %v8123_v59, %v7212_v1  ;;  %v7540_v59 = vld [vmem:[#allocation10 + $0x10] sm:$0xff] }
 0xa68   :  { %3392 = vmatpush1.msra.mxu0 %v6984_v30  ;;  %5428 = vmatpush3.msra.mxu1 %v8109_v9  ;;  %v7432_v9 = vld [vmem:[#allocation10 + $0x108] sm:$0xff]  ;;  %8134 = vst [vmem:[#allocation43_spill] sm:$0xff] %v7540_v59 }
 0xa69   :  { %3393 = vmatprep.subr.mxu0 %v8110_v8  ;;  %5429 = vmatprep.subr.mxu1 %v7988_v42  ;;  %v7434_v8 = vld [vmem:[#allocation10 + $0x118] sm:$0xff] }
 0xa6a   :  { %3394 = vmatpush1.msra.mxu0 %v8111_v10  ;;  %5430 = vmatpush3.msra.mxu1 %v8112_v40  ;;  %v7438_v10 = vld [vmem:[#allocation10 + $0xf8] sm:$0xff]  ;;  %v7442_v40 = vld [vmem:[#allocation10 + $0xf0] sm:$0xff] }
 0xa6b   :  { %3395 = vmatprep.subr.mxu0 %v8113_v14  ;;  %5431 = vmatprep.subr.mxu1 %v7988_v42  ;;  %v7444_v14 = vld [vmem:[#allocation10 + $0x100] sm:$0xff] }
 0xa6c   :  { %3396 = vmatpush1.msra.mxu0 %v8114_v25  ;;  %5432 = vmatpush3.msra.mxu1 %v8115_v39  ;;  %v7448_v25 = vld [vmem:[#allocation10 + $0xe0] sm:$0xff]  ;;  %v7452_v39 = vld [vmem:[#allocation10 + $0xd8] sm:$0xff] }
 0xa6d   :  { %3397 = vmatprep.subr.mxu0 %v8116_v26  ;;  %5433 = vmatprep.subr.mxu1 %v7988_v42  ;;  %v7454_v26 = vld [vmem:[#allocation10 + $0xe8] sm:$0xff] }
 0xa6e   :  { %3398 = vmatpush1.msra.mxu0 %v8117_v55  ;;  %3431 = vmatprep.mubr.f32.mxu0 %v7988_v42  ;;  %v7456_v55 = vld [vmem:[#allocation10 + $0xc8] sm:$0xff] }
 0xa6f   :  { %5434 = vmatpush3.msra.mxu1 %v8118_v62  ;;  %5435 = vmatprep.mubr.msk.f32.mxu1 %vm5900_vm0, %v7988_v42  ;;  %v7460_v62 = vld [vmem:[#allocation10 + $0xc0] sm:$0xff] }
 0xa70   :  { %5438 = vmatprep.subr.mxu1 %v7988_v42  ;;  %3599 = vmatprep.subr.mxu0 %v7389_v44 }
 0xb0f   :  { %v3201_v61 = vpop.f32.mrf.mxu0  ;;  %v3272_v49 = vpop.f32.mrf.mxu1 }
 0xb10   :  { %v3202_v41 = vadd.f32 %v3201_v61, %v3123_v45  ;;  %v3273_v57 = vadd.f32 %v3272_v49, %v3131_v53  ;;  %v7464_v45 = vld [vmem:[#allocation10 + $0xb0] sm:$0xff]  ;;  %v7468_v61 = vld [vmem:[#allocation10 + $0xa8] sm:$0xff]  ;;  %v7470_v49 = vld [vmem:[#allocation10 + $0xb8] sm:$0xff] }
 0xb11   :  { %v3203_v6 = vpop.f32.mrf.mxu0  ;;  %v5402_v27 = vpop.f32.mrf.mxu1  ;;  %v7528_v53 = vld [vmem:[#allocation10 + $0x18] sm:$0xff] }
 0xb12   :  { %v3276_v28 = vadd.f32 %v3202_v41, %v2438_v56  ;;  %v3204_v30 = vadd.f32 %v3203_v6, %v3127_v16  ;;  %v7478_v56 = vld [vmem:[#allocation10 + $0x90] sm:$0xff]  ;;  %v7480_v41 = vld [vmem:[#allocation10 + $0xa0] sm:$0xff]  ;;  %v7488_v6 = vld [vmem:[#allocation10 + $0x78] sm:$0xff]  ;;  %8130 = vst [vmem:[#allocation30_spill] sm:$0xff] %v7528_v53 }
 0xb13   :  { %v7484_v16 = vld [vmem:[#allocation10 + $0x80] sm:$0xff]  ;;  %v7490_v27 = vld [vmem:[#allocation10 + $0x88] sm:$0xff] }
 0xb14   :  { %v4580_v29 = vmul.f32 -1.442695, %v3276_v28  ;;  %v3283_v46 = vadd.f32 %v3204_v30, %v2440_v24  ;;  %v7494_v28 = vld [vmem:[#allocation10 + $0x68] sm:$0xff]  ;;  %v7500_v30 = vld [vmem:[#allocation10 + $0x70] sm:$0xff] }
 0xb15   :  { %v7508_v24 = vld [vmem:[#allocation10 + $0x48] sm:$0xff] }
 0xb16   :  { %5724 = vpow2.f32 %v4580_v29  ;;  %v4581_v47 = vmul.f32 -1.442695, %v3283_v46  ;;  %v7498_v29 = vld [vmem:[#allocation10 + $0x60] sm:$0xff]  ;;  %v7510_v46 = vld [vmem:[#allocation10 + $0x58] sm:$0xff] }
 0xb17   :  { %8125 = vst [vmem:[#allocation18_spill] sm:$0xff] %v7510_v46 }
 0xb18   :  { %5726 = vpow2.f32 %v4581_v47  ;;  %v7514_v47 = vld [vmem:[#allocation10 + $0x38] sm:$0xff] }
 0xb19   :  { %8126 = vst [vmem:[#allocation19_spill] sm:$0xff] %v7514_v47 }
 0xb23   :  { %v5725_v48 = vpop.eup %5724 }
 0xb24   :  { %v3280_v51 = vadd.f32 1.0, %v5725_v48  ;;  %v7518_v48 = vld [vmem:[#allocation10 + $0x30] sm:$0xff] }
 0xb25   :  { %v5727_v52 = vpop.eup %5726  ;;  %8127 = vst [vmem:[#allocation35_spill] sm:$0xff] %v7518_v48 }
 0xb26   :  { %5728 = vrcp.f32 %v3280_v51  ;;  %v3287_v54 = vadd.f32 1.0, %v5727_v52  ;;  %v7520_v51 = vld [vmem:[#allocation10 + $0x40] sm:$0xff] }
 0xb27   :  { %8128 = vst [vmem:[#allocation33_spill] sm:$0xff] %v7520_v51  ;;  %v7524_v52 = vld [vmem:[#allocation10 + $0x20] sm:$0xff] }
 0xb28   :  { %5730 = vrcp.f32 %v3287_v54  ;;  %8129 = vst [vmem:[#allocation29_spill] sm:$0xff] %v7524_v52  ;;  %v7530_v54 = vld [vmem:[#allocation10 + $0x28] sm:$0xff] }
 0xb29   :  { %8131 = vst [vmem:[#allocation34_spill] sm:$0xff] %v7530_v54 }
 0xb33   :  { %v5729_v58 = vpop.eup %5728 }
 0xb34   :  { %v3290_v12 = vmul.f32 %v5729_v58, %v3273_v57  ;;  %v7534_v57 = vld [vmem:[#allocation10 + $0x8] sm:$0xff]  ;;  %v7538_v58 = vld [vmem:[#allocation10] sm:$0xff] }
 0xb35   :  { %v5731_v50 = vpop.eup %5730  ;;  %8132 = vst [vmem:[#allocation31_spill] sm:$0xff] %v7534_v57  ;;  %8133 = vst [vmem:[#allocation32_spill] sm:$0xff] %v7538_v58 }
 0xb36   :  { %v3291_v11 = vadd.f32 %v3290_v12, %v2549_v63  ;;  %v3293_v20 = vsub.f32 1.0, %v5731_v50  ;;  %v3295_v31 = vmul.f32 %v5731_v50, %v7299_v4  ;;  %v7428_v4 = vld [vmem:[#allocation10 + $0x110] sm:$0xff]  ;;  %v3350_v63 = vld [vmem:[%s7862_s8] sm:$0x7] }
 0xb37   :  { %v3355_v12 = vrot.slane %v3350_v63, %v8119_v19 }
 0xb38   :  { %5732 = vtanh.f32 %v3291_v11 }
 0xb45   :  { %v5733_v13 = vpop.eup %5732 }
 0xb46   :  { %v3294_v32 = vmul.f32 %v5733_v13, %v3293_v20  ;;  %v8135_v20 = vld [vmem:[#allocation20_spill] sm:$0xff] }
 0xb47   :  { %v2444_v13 = vadd.f32 %v8135_v20, %v7197_v3 }
 0xb48   :  { %v7382_v22 = vadd.f32 %v3295_v31, %v3294_v32  ;;  %v3359_v31 = vrot.slane %v3350_v63, %v8121_v23 }
 0xb4a   :  { %3432 = vmatmul.mubr.f32.vlgmr.msra.gmra.mxu0 %v7382_v22  ;;  %5436 = vmatmul.mubr.f32.vlgmr.msra.gmra.mxu1 %v7382_v22 }
 0xb4b   :  { %3663 = vmatprep.mubr.f32.mxu0 %v7988_v42  ;;  %5470 = vmatprep.mubr.msk.f32.mxu1 %vm5900_vm0, %v7988_v42 }
 0xb4c   :  { %3600 = vmatpush1.msra.mxu0 %v7392_v33  ;;  %5439 = vmatpush3.msra.mxu1 %v7394_v35 }
 0xb4d   :  { %3601 = vmatprep.subr.mxu0 %v7398_v60  ;;  %5440 = vmatprep.subr.mxu1 %v7988_v42 }
 0xb4e   :  { %3602 = vmatpush1.msra.mxu0 %v7402_v37  ;;  %5441 = vmatpush3.msra.mxu1 %v7404_v21 }
 0xb4f   :  { %3603 = vmatprep.subr.mxu0 %v7408_v34  ;;  %5442 = vmatprep.subr.mxu1 %v7988_v42 }
 0xb50   :  { %3604 = vmatpush1.msra.mxu0 %v7412_v15  ;;  %5443 = vmatpush3.msra.mxu1 %v7414_v18 }
 0xb51   :  { %3605 = vmatprep.subr.mxu0 %v7418_v2  ;;  %5444 = vmatprep.subr.mxu1 %v7988_v42 }
 0xb52   :  { %3606 = vmatpush1.msra.mxu0 %v7422_v0  ;;  %5445 = vmatpush3.msra.mxu1 %v7424_v7 }
 0xb53   :  { %3607 = vmatprep.subr.mxu0 %v7428_v4  ;;  %5446 = vmatprep.subr.mxu1 %v7988_v42 }
 0xb54   :  { %3608 = vmatpush1.msra.mxu0 %v7432_v9  ;;  %5447 = vmatpush3.msra.mxu1 %v7434_v8 }
 0xb55   :  { %3609 = vmatprep.subr.mxu0 %v7438_v10  ;;  %5448 = vmatprep.subr.mxu1 %v7988_v42 }
 0xb56   :  { %3610 = vmatpush1.msra.mxu0 %v7442_v40  ;;  %5449 = vmatpush3.msra.mxu1 %v7444_v14 }
 0xb57   :  { %3611 = vmatprep.subr.mxu0 %v7448_v25  ;;  %5450 = vmatprep.subr.mxu1 %v7988_v42 }
 0xb58   :  { %3612 = vmatpush1.msra.mxu0 %v7452_v39  ;;  %5451 = vmatpush3.msra.mxu1 %v7454_v26 }
 0xb59   :  { %3613 = vmatprep.subr.mxu0 %v7456_v55  ;;  %5452 = vmatprep.subr.mxu1 %v7988_v42 }
 0xb5a   :  { %3614 = vmatpush1.msra.mxu0 %v7460_v62  ;;  %5453 = vmatpush3.msra.mxu1 %v7462_v43 }
 0xb5b   :  { %3615 = vmatprep.subr.mxu0 %v7464_v45  ;;  %5454 = vmatprep.subr.mxu1 %v7988_v42 }
 0xb5c   :  { %3616 = vmatpush1.msra.mxu0 %v7468_v61  ;;  %5455 = vmatpush3.msra.mxu1 %v7470_v49 }
 0xb5d   :  { %3617 = vmatprep.subr.mxu0 %v7474_v17  ;;  %5456 = vmatprep.subr.mxu1 %v7988_v42 }
 0xb5e   :  { %3618 = vmatpush1.msra.mxu0 %v7478_v56  ;;  %5457 = vmatpush3.msra.mxu1 %v7480_v41 }
 0xb5f   :  { %3619 = vmatprep.subr.mxu0 %v7484_v16  ;;  %5458 = vmatprep.subr.mxu1 %v7988_v42 }
 0xb60   :  { %3620 = vmatpush1.msra.mxu0 %v7488_v6  ;;  %5459 = vmatpush3.msra.mxu1 %v7490_v27 }
 0xb61   :  { %3621 = vmatprep.subr.mxu0 %v7494_v28  ;;  %5460 = vmatprep.subr.mxu1 %v7988_v42 }
 0xb62   :  { %3622 = vmatpush1.msra.mxu0 %v7498_v29  ;;  %5461 = vmatpush3.msra.mxu1 %v7500_v30 }
 0xb63   :  { %3623 = vmatprep.subr.mxu0 %v7504_v38  ;;  %5462 = vmatprep.subr.mxu1 %v7988_v42 }
 0xb64   :  { %3624 = vmatpush1.msra.mxu0 %v7508_v24  ;;  %5463 = vmatpush3.msra.mxu1 %v7510_v46 }
 0xb65   :  { %3625 = vmatprep.subr.mxu0 %v7514_v47  ;;  %5464 = vmatprep.subr.mxu1 %v7988_v42 }
 0xb66   :  { %3626 = vmatpush1.msra.mxu0 %v7518_v48  ;;  %5465 = vmatpush3.msra.mxu1 %v7520_v51 }
 0xb67   :  { %3627 = vmatprep.subr.mxu0 %v7524_v52  ;;  %5466 = vmatprep.subr.mxu1 %v7988_v42 }
 0xb68   :  { %3628 = vmatpush1.msra.mxu0 %v7528_v53  ;;  %5467 = vmatpush3.msra.mxu1 %v7530_v54  ;;  %v8136_v53 = vld [vmem:[#allocation28_spill] sm:$0xff] }
 0xb69   :  { %3629 = vmatprep.subr.mxu0 %v7534_v57  ;;  %5468 = vmatprep.subr.mxu1 %v7988_v42  ;;  %v2446_v52 = vadd.f32 %v8136_v53, %v7207_v36  ;;  %v8141_v53 = vld [vmem:[#allocation33_spill] sm:$0xff] }
 0xb6a   :  { %3630 = vmatpush1.msra.mxu0 %v7538_v58  ;;  %5469 = vmatpush3.msra.mxu1 %v7540_v59 }
 0xb6b   :  { %3831 = vmatprep.subr.mxu0 %v7389_v44  ;;  %5473 = vmatprep.subr.mxu1 %v7988_v42 }
 0xc0a   :  { %v3433_v11 = vpop.f32.mrf.mxu0  ;;  %v3504_v50 = vpop.f32.mrf.mxu1 }
 0xc0b   :  { %v3434_v32 = vadd.f32 %v3433_v11, %v3355_v12  ;;  %v3363_v12 = vrot.slane %v3350_v63, %v6299_v5  ;;  %v8143_v63 = vld [vmem:[#allocation30_spill] sm:$0xff] }
 0xc0c   :  { %v3435_v58 = vpop.f32.mrf.mxu0  ;;  %v5437_v59 = vpop.f32.mrf.mxu1 }
 0xc0d   :  { %v3508_v57 = vadd.f32 %v3434_v32, %v2444_v13  ;;  %v3436_v54 = vadd.f32 %v3435_v58, %v3359_v31  ;;  %v3505_v20 = vadd.f32 %v3504_v50, %v3363_v12  ;;  %v8137_v59 = vld [vmem:[#allocation37_spill] sm:$0xff]  ;;  %v8144_v50 = vld [vmem:[#allocation34_spill] sm:$0xff]  ;;  %v8145_v32 = vld [vmem:[#allocation31_spill] sm:$0xff] }
 0xc0e   :  { %v8146_v31 = vld [vmem:[#allocation32_spill] sm:$0xff]  ;;  %v8147_v12 = vld [vmem:[#allocation43_spill] sm:$0xff] }
 0xc0f   :  { %v4582_v44 = vmul.f32 -1.442695, %v3508_v57  ;;  %v3515_v51 = vadd.f32 %v3436_v54, %v2446_v52  ;;  %v2554_v57 = vadd.f32 %v8137_v59, %v7212_v1  ;;  %v8142_v54 = vld [vmem:[#allocation29_spill] sm:$0xff] }
 0xc10   :  { %v8149_v59 = vld [vmem:[#allocation25_spill] sm:$0xff] }
 0xc11   :  { %5734 = vpow2.f32 %v4582_v44  ;;  %v4583_v48 = vmul.f32 -1.442695, %v3515_v51 }
 0xc13   :  { %5736 = vpow2.f32 %v4583_v48 }
 0xc1e   :  { %v5735_v19 = vpop.eup %5734 }
 0xc1f   :  { %v3512_v47 = vadd.f32 1.0, %v5735_v19 }
 0xc20   :  { %v5737_v46 = vpop.eup %5736 }
 0xc21   :  { %5738 = vrcp.f32 %v3512_v47  ;;  %v3519_v11 = vadd.f32 1.0, %v5737_v46  ;;  %v8140_v46 = vld [vmem:[#allocation35_spill] sm:$0xff] }
 0xc23   :  { %5740 = vrcp.f32 %v3519_v11  ;;  %v8148_v11 = vld [vmem:[#allocation39_spill] sm:$0xff] }
 0xc2e   :  { %v5739_v23 = vpop.eup %5738 }
 0xc2f   :  { %v3522_v58 = vmul.f32 %v5739_v23, %v3505_v20  ;;  %v8138_v23 = vld [vmem:[#allocation18_spill] sm:$0xff]  ;;  %v3582_v20 = vld [vmem:[%s7862_s8] sm:$0x7] }
 0xc30   :  { %v5741_v44 = vpop.eup %5740 }
 0xc31   :  { %v3523_v13 = vadd.f32 %v3522_v58, %v2554_v57  ;;  %v3525_v52 = vsub.f32 1.0, %v5741_v44  ;;  %v3527_v19 = vmul.f32 %v5741_v44, %v7382_v22  ;;  %v8139_v22 = vld [vmem:[#allocation19_spill] sm:$0xff]  ;;  %v3587_v57 = vrot.slane %v3582_v20, %v8149_v59  ;;  %v8150_v44 = vld [vmem:[#allocation36_spill] sm:$0xff] }
 0xc33   :  { %5742 = vtanh.f32 %v3523_v13 }
 0xc40   :  { %v5743_v51 = vpop.eup %5742 }
 0xc41   :  { %v3526_v48 = vmul.f32 %v5743_v51, %v3525_v52  ;;  %v2450_v52 = vadd.f32 %v8150_v44, %v7197_v3 }
 0xc43   :  { %v7563_v47 = vadd.f32 %v3527_v19, %v3526_v48  ;;  %v8151_v48 = vld [vmem:[#allocation26_spill] sm:$0xff] }
 0xc44   :  { %v3591_v19 = vrot.slane %v3582_v20, %v8151_v48 }
 0xc45   :  { %3664 = vmatmul.mubr.f32.vlgmr.msra.gmra.mxu0 %v7563_v47  ;;  %5471 = vmatmul.mubr.f32.vlgmr.msra.gmra.mxu1 %v7563_v47 }
 0xc46   :  { %3832 = vmatpush1.msra.mxu0 %v7392_v33  ;;  %5474 = vmatpush3.msra.mxu1 %v7394_v35 }
 0xc47   :  { %3833 = vmatprep.subr.mxu0 %v7398_v60  ;;  %5475 = vmatprep.subr.mxu1 %v7988_v42 }
 0xc48   :  { %3834 = vmatpush1.msra.mxu0 %v7402_v37  ;;  %5476 = vmatpush3.msra.mxu1 %v7404_v21 }
 0xc49   :  { %3835 = vmatprep.subr.mxu0 %v7408_v34  ;;  %5477 = vmatprep.subr.mxu1 %v7988_v42 }
 0xc4a   :  { %3836 = vmatpush1.msra.mxu0 %v7412_v15  ;;  %5478 = vmatpush3.msra.mxu1 %v7414_v18 }
 0xc4b   :  { %3837 = vmatprep.subr.mxu0 %v7418_v2  ;;  %5479 = vmatprep.subr.mxu1 %v7988_v42 }
 0xc4c   :  { %3838 = vmatpush1.msra.mxu0 %v7422_v0  ;;  %5480 = vmatpush3.msra.mxu1 %v7424_v7 }
 0xc4d   :  { %3839 = vmatprep.subr.mxu0 %v7428_v4  ;;  %5481 = vmatprep.subr.mxu1 %v7988_v42 }
 0xc4e   :  { %3840 = vmatpush1.msra.mxu0 %v7432_v9  ;;  %5482 = vmatpush3.msra.mxu1 %v7434_v8 }
 0xc4f   :  { %3841 = vmatprep.subr.mxu0 %v7438_v10  ;;  %5483 = vmatprep.subr.mxu1 %v7988_v42 }
 0xc50   :  { %3842 = vmatpush1.msra.mxu0 %v7442_v40  ;;  %5484 = vmatpush3.msra.mxu1 %v7444_v14 }
 0xc51   :  { %3843 = vmatprep.subr.mxu0 %v7448_v25  ;;  %5485 = vmatprep.subr.mxu1 %v7988_v42 }
 0xc52   :  { %3844 = vmatpush1.msra.mxu0 %v7452_v39  ;;  %5486 = vmatpush3.msra.mxu1 %v7454_v26 }
 0xc53   :  { %3845 = vmatprep.subr.mxu0 %v7456_v55  ;;  %5487 = vmatprep.subr.mxu1 %v7988_v42 }
 0xc54   :  { %3846 = vmatpush1.msra.mxu0 %v7460_v62  ;;  %5488 = vmatpush3.msra.mxu1 %v7462_v43 }
 0xc55   :  { %3847 = vmatprep.subr.mxu0 %v7464_v45  ;;  %5489 = vmatprep.subr.mxu1 %v7988_v42 }
 0xc56   :  { %3848 = vmatpush1.msra.mxu0 %v7468_v61  ;;  %5490 = vmatpush3.msra.mxu1 %v7470_v49 }
 0xc57   :  { %3849 = vmatprep.subr.mxu0 %v7474_v17  ;;  %5491 = vmatprep.subr.mxu1 %v7988_v42 }
 0xc58   :  { %3850 = vmatpush1.msra.mxu0 %v7478_v56  ;;  %5492 = vmatpush3.msra.mxu1 %v7480_v41 }
 0xc59   :  { %3851 = vmatprep.subr.mxu0 %v7484_v16  ;;  %5493 = vmatprep.subr.mxu1 %v7988_v42 }
 0xc5a   :  { %3852 = vmatpush1.msra.mxu0 %v7488_v6  ;;  %5494 = vmatpush3.msra.mxu1 %v7490_v27 }
 0xc5b   :  { %3853 = vmatprep.subr.mxu0 %v7494_v28  ;;  %5495 = vmatprep.subr.mxu1 %v7988_v42 }
 0xc5c   :  { %3854 = vmatpush1.msra.mxu0 %v7498_v29  ;;  %5496 = vmatpush3.msra.mxu1 %v7500_v30 }
 0xc5d   :  { %3855 = vmatprep.subr.mxu0 %v7504_v38  ;;  %5497 = vmatprep.subr.mxu1 %v7988_v42 }
 0xc5e   :  { %3856 = vmatpush1.msra.mxu0 %v7508_v24  ;;  %5498 = vmatpush3.msra.mxu1 %v8138_v23 }
 0xc5f   :  { %3857 = vmatprep.subr.mxu0 %v8139_v22  ;;  %5499 = vmatprep.subr.mxu1 %v7988_v42 }
 0xc60   :  { %3858 = vmatpush1.msra.mxu0 %v8140_v46  ;;  %5500 = vmatpush3.msra.mxu1 %v8141_v53 }
 0xc61   :  { %3859 = vmatprep.subr.mxu0 %v8142_v54  ;;  %5501 = vmatprep.subr.mxu1 %v7988_v42 }
 0xc62   :  { %3860 = vmatpush1.msra.mxu0 %v8143_v63  ;;  %5502 = vmatpush3.msra.mxu1 %v8144_v50  ;;  %v8152_v63 = vld [vmem:[#allocation42_spill] sm:$0xff] }
 0xc63   :  { %3861 = vmatprep.subr.mxu0 %v8145_v32  ;;  %5503 = vmatprep.subr.mxu1 %v7988_v42  ;;  %v2452_v54 = vadd.f32 %v8152_v63, %v7207_v36 }
 0xc64   :  { %3862 = vmatpush1.msra.mxu0 %v8146_v31  ;;  %3895 = vmatprep.mubr.f32.mxu0 %v7988_v42 }
 0xc65   :  { %5504 = vmatpush3.msra.mxu1 %v8147_v12  ;;  %5505 = vmatprep.mubr.msk.f32.mxu1 %vm5900_vm0, %v7988_v42 }
 0xc66   :  { %4063 = vmatprep.subr.mxu0 %v8148_v11  ;;  %5508 = vmatprep.subr.mxu1 %v7988_v42 }
 0xd05   :  { %v3665_v58 = vpop.f32.mrf.mxu0  ;;  %v3736_v13 = vpop.f32.mrf.mxu1 }
 0xd06   :  { %v3666_v51 = vadd.f32 %v3665_v58, %v3587_v57  ;;  %v3595_v57 = vrot.slane %v3582_v20, %v6299_v5  ;;  %v8157_v20 = vld [vmem:[#allocation33_spill] sm:$0xff] }
 0xd07   :  { %v3667_v12 = vpop.f32.mrf.mxu0  ;;  %v5472_v31 = vpop.f32.mrf.mxu1 }
 0xd08   :  { %v3740_v32 = vadd.f32 %v3666_v51, %v2450_v52  ;;  %v3668_v50 = vadd.f32 %v3667_v12, %v3591_v19  ;;  %v3737_v44 = vadd.f32 %v3736_v13, %v3595_v57  ;;  %v8153_v31 = vld [vmem:[#allocation40_spill] sm:$0xff]  ;;  %v8159_v13 = vld [vmem:[#allocation30_spill] sm:$0xff]  ;;  %v8163_v57 = vld [vmem:[#allocation43_spill] sm:$0xff] }
 0xd09   :  { %v8160_v51 = vld [vmem:[#allocation34_spill] sm:$0xff]  ;;  %v8162_v19 = vld [vmem:[#allocation32_spill] sm:$0xff] }
 0xd0a   :  { %v4584_v11 = vmul.f32 -1.442695, %v3740_v32  ;;  %v3747_v53 = vadd.f32 %v3668_v50, %v2452_v54  ;;  %v2559_v32 = vadd.f32 %v8153_v31, %v7212_v1  ;;  %v8165_v31 = vld [vmem:[#allocation25_spill] sm:$0xff] }
 0xd0c   :  { %5744 = vpow2.f32 %v4584_v11  ;;  %v4585_v46 = vmul.f32 -1.442695, %v3747_v53  ;;  %v8156_v11 = vld [vmem:[#allocation35_spill] sm:$0xff] }
 0xd0e   :  { %5746 = vpow2.f32 %v4585_v46 }
 0xd19   :  { %v5745_v59 = vpop.eup %5744 }
 0xd1a   :  { %v3744_v22 = vadd.f32 1.0, %v5745_v59  ;;  %v8158_v59 = vld [vmem:[#allocation29_spill] sm:$0xff] }
 0xd1b   :  { %v5747_v23 = vpop.eup %5746 }
 0xd1c   :  { %5748 = vrcp.f32 %v3744_v22  ;;  %v3751_v58 = vadd.f32 1.0, %v5747_v23  ;;  %v8155_v23 = vld [vmem:[#allocation19_spill] sm:$0xff] }
 0xd1e   :  { %5750 = vrcp.f32 %v3751_v58  ;;  %v8164_v58 = vld [vmem:[#allocation39_spill] sm:$0xff] }
 0xd29   :  { %v5749_v48 = vpop.eup %5748 }
 0xd2a   :  { %v3754_v12 = vmul.f32 %v5749_v48, %v3737_v44  ;;  %v8161_v48 = vld [vmem:[#allocation31_spill] sm:$0xff]  ;;  %v3814_v44 = vld [vmem:[%s7862_s8] sm:$0x7] }
 0xd2b   :  { %v5751_v63 = vpop.eup %5750 }
 0xd2c   :  { %v3755_v52 = vadd.f32 %v3754_v12, %v2559_v32  ;;  %v3757_v54 = vsub.f32 1.0, %v5751_v63  ;;  %v3759_v50 = vmul.f32 %v5751_v63, %v7563_v47  ;;  %v8154_v47 = vld [vmem:[#allocation18_spill] sm:$0xff]  ;;  %v3819_v32 = vrot.slane %v3814_v44, %v8165_v31 }
 0xd2d   :  { %v8166_v63 = vld [vmem:[#allocation38_spill] sm:$0xff] }
 0xd2e   :  { %5752 = vtanh.f32 %v3755_v52 }
 0xd3b   :  { %v5753_v53 = vpop.eup %5752 }
 0xd3c   :  { %v3758_v46 = vmul.f32 %v5753_v53, %v3757_v54  ;;  %v2456_v54 = vadd.f32 %v8166_v63, %v7197_v3 }
 0xd3e   :  { %v7647_v22 = vadd.f32 %v3759_v50, %v3758_v46  ;;  %v8167_v46 = vld [vmem:[#allocation26_spill] sm:$0xff] }
 0xd3f   :  { %v3823_v50 = vrot.slane %v3814_v44, %v8167_v46 }
 0xd40   :  { %3896 = vmatmul.mubr.f32.vlgmr.msra.gmra.mxu0 %v7647_v22  ;;  %5506 = vmatmul.mubr.f32.vlgmr.msra.gmra.mxu1 %v7647_v22 }
 0xd41   :  { %4064 = vmatpush1.msra.mxu0 %v7392_v33  ;;  %5509 = vmatpush3.msra.mxu1 %v7394_v35 }
 0xd42   :  { %4065 = vmatprep.subr.mxu0 %v7398_v60  ;;  %5510 = vmatprep.subr.mxu1 %v7988_v42 }
 0xd43   :  { %4066 = vmatpush1.msra.mxu0 %v7402_v37  ;;  %5511 = vmatpush3.msra.mxu1 %v7404_v21 }
 0xd44   :  { %4067 = vmatprep.subr.mxu0 %v7408_v34  ;;  %5512 = vmatprep.subr.mxu1 %v7988_v42 }
 0xd45   :  { %4068 = vmatpush1.msra.mxu0 %v7412_v15  ;;  %5513 = vmatpush3.msra.mxu1 %v7414_v18 }
 0xd46   :  { %4069 = vmatprep.subr.mxu0 %v7418_v2  ;;  %5514 = vmatprep.subr.mxu1 %v7988_v42 }
 0xd47   :  { %4070 = vmatpush1.msra.mxu0 %v7422_v0  ;;  %5515 = vmatpush3.msra.mxu1 %v7424_v7 }
 0xd48   :  { %4071 = vmatprep.subr.mxu0 %v7428_v4  ;;  %5516 = vmatprep.subr.mxu1 %v7988_v42 }
 0xd49   :  { %4072 = vmatpush1.msra.mxu0 %v7432_v9  ;;  %5517 = vmatpush3.msra.mxu1 %v7434_v8 }
 0xd4a   :  { %4073 = vmatprep.subr.mxu0 %v7438_v10  ;;  %5518 = vmatprep.subr.mxu1 %v7988_v42 }
 0xd4b   :  { %4074 = vmatpush1.msra.mxu0 %v7442_v40  ;;  %5519 = vmatpush3.msra.mxu1 %v7444_v14 }
 0xd4c   :  { %4075 = vmatprep.subr.mxu0 %v7448_v25  ;;  %5520 = vmatprep.subr.mxu1 %v7988_v42 }
 0xd4d   :  { %4076 = vmatpush1.msra.mxu0 %v7452_v39  ;;  %5521 = vmatpush3.msra.mxu1 %v7454_v26 }
 0xd4e   :  { %4077 = vmatprep.subr.mxu0 %v7456_v55  ;;  %5522 = vmatprep.subr.mxu1 %v7988_v42 }
 0xd4f   :  { %4078 = vmatpush1.msra.mxu0 %v7460_v62  ;;  %5523 = vmatpush3.msra.mxu1 %v7462_v43 }
 0xd50   :  { %4079 = vmatprep.subr.mxu0 %v7464_v45  ;;  %5524 = vmatprep.subr.mxu1 %v7988_v42 }
 0xd51   :  { %4080 = vmatpush1.msra.mxu0 %v7468_v61  ;;  %5525 = vmatpush3.msra.mxu1 %v7470_v49 }
 0xd52   :  { %4081 = vmatprep.subr.mxu0 %v7474_v17  ;;  %5526 = vmatprep.subr.mxu1 %v7988_v42 }
 0xd53   :  { %4082 = vmatpush1.msra.mxu0 %v7478_v56  ;;  %5527 = vmatpush3.msra.mxu1 %v7480_v41 }
 0xd54   :  { %4083 = vmatprep.subr.mxu0 %v7484_v16  ;;  %5528 = vmatprep.subr.mxu1 %v7988_v42 }
 0xd55   :  { %4084 = vmatpush1.msra.mxu0 %v7488_v6  ;;  %5529 = vmatpush3.msra.mxu1 %v7490_v27 }
 0xd56   :  { %4085 = vmatprep.subr.mxu0 %v7494_v28  ;;  %5530 = vmatprep.subr.mxu1 %v7988_v42 }
 0xd57   :  { %4086 = vmatpush1.msra.mxu0 %v7498_v29  ;;  %5531 = vmatpush3.msra.mxu1 %v7500_v30 }
 0xd58   :  { %4087 = vmatprep.subr.mxu0 %v7504_v38  ;;  %5532 = vmatprep.subr.mxu1 %v7988_v42 }
 0xd59   :  { %4088 = vmatpush1.msra.mxu0 %v7508_v24  ;;  %5533 = vmatpush3.msra.mxu1 %v8154_v47 }
 0xd5a   :  { %4089 = vmatprep.subr.mxu0 %v8155_v23  ;;  %5534 = vmatprep.subr.mxu1 %v7988_v42 }
 0xd5b   :  { %4090 = vmatpush1.msra.mxu0 %v8156_v11  ;;  %5535 = vmatpush3.msra.mxu1 %v8157_v20 }
 0xd5c   :  { %4091 = vmatprep.subr.mxu0 %v8158_v59  ;;  %5536 = vmatprep.subr.mxu1 %v7988_v42 }
 0xd5d   :  { %4092 = vmatpush1.msra.mxu0 %v8159_v13  ;;  %5537 = vmatpush3.msra.mxu1 %v8160_v51  ;;  %v8168_v13 = vld [vmem:[#allocation46_spill] sm:$0xff] }
 0xd5e   :  { %4093 = vmatprep.subr.mxu0 %v8161_v48  ;;  %5538 = vmatprep.subr.mxu1 %v7988_v42  ;;  %v2458_v59 = vadd.f32 %v8168_v13, %v7207_v36 }
 0xd5f   :  { %4094 = vmatpush1.msra.mxu0 %v8162_v19  ;;  %4127 = vmatprep.mubr.f32.mxu0 %v7988_v42 }
 0xd60   :  { %5539 = vmatpush3.msra.mxu1 %v8163_v57  ;;  %5540 = vmatprep.mubr.msk.f32.mxu1 %vm5900_vm0, %v7988_v42 }
 0xd61   :  { %4295 = vmatprep.subr.mxu0 %v8164_v58  ;;  %5543 = vmatprep.subr.mxu1 %v7988_v42 }
 0xe00   :  { %v3897_v12 = vpop.f32.mrf.mxu0  ;;  %v3968_v52 = vpop.f32.mrf.mxu1 }
 0xe01   :  { %v3898_v53 = vadd.f32 %v3897_v12, %v3819_v32  ;;  %v3827_v32 = vrot.slane %v3814_v44, %v6299_v5 }
 0xe02   :  { %v3899_v57 = vpop.f32.mrf.mxu0  ;;  %v5507_v19 = vpop.f32.mrf.mxu1 }
 0xe03   :  { %v3972_v48 = vadd.f32 %v3898_v53, %v2456_v54  ;;  %v3900_v51 = vadd.f32 %v3899_v57, %v3823_v50  ;;  %v3969_v63 = vadd.f32 %v3968_v52, %v3827_v32  ;;  %v8169_v19 = vld [vmem:[#allocation16_spill] sm:$0xff]  ;;  %v4474_v32 = vld [vmem:[#allocation12 + $0x78] sm:$0xff] }
 0xe05   :  { %v4586_v58 = vmul.f32 -1.442695, %v3972_v48  ;;  %v3979_v20 = vadd.f32 %v3900_v51, %v2458_v59  ;;  %v2564_v48 = vadd.f32 %v8169_v19, %v7212_v1  ;;  %v4471_v19 = vld [vmem:[#allocation12 + $0x60] sm:$0xff] }
 0xe07   :  { %5754 = vpow2.f32 %v4586_v58  ;;  %v4587_v11 = vmul.f32 -1.442695, %v3979_v20 }
 0xe09   :  { %5756 = vpow2.f32 %v4587_v11 }
 0xe14   :  { %v5755_v31 = vpop.eup %5754 }
 0xe15   :  { %v3976_v23 = vadd.f32 1.0, %v5755_v31 }
 0xe16   :  { %v5757_v47 = vpop.eup %5756 }
 0xe17   :  { %5758 = vrcp.f32 %v3976_v23  ;;  %v3983_v12 = vadd.f32 1.0, %v5757_v47 }
 0xe19   :  { %5760 = vrcp.f32 %v3983_v12  ;;  %v4473_v12 = vld [vmem:[#allocation12 + $0x70] sm:$0xff] }
 0xe24   :  { %v5759_v46 = vpop.eup %5758 }
 0xe25   :  { %v3986_v57 = vmul.f32 %v5759_v46, %v3969_v63  ;;  %v4472_v63 = vld [vmem:[#allocation12 + $0x68] sm:$0xff] }
 0xe26   :  { %v5761_v13 = vpop.eup %5760 }
 0xe27   :  { %v3987_v54 = vadd.f32 %v3986_v57, %v2564_v48  ;;  %v3989_v59 = vsub.f32 1.0, %v5761_v13  ;;  %v3991_v51 = vmul.f32 %v5761_v13, %v7647_v22  ;;  %v4470_v48 = vld [vmem:[#allocation12 + $0x58] sm:$0xff]  ;;  %v4469_v57 = vld [vmem:[#allocation12 + $0x50] sm:$0xff]  ;;  %v4467_v13 = vld [vmem:[#allocation12 + $0x40] sm:$0xff] }
 0xe29   :  { %5762 = vtanh.f32 %v3987_v54  ;;  %v4468_v54 = vld [vmem:[#allocation12 + $0x48] sm:$0xff] }
 0xe36   :  { %v5763_v20 = vpop.eup %5762 }
 0xe37   :  { %v3990_v11 = vmul.f32 %v5763_v20, %v3989_v59  ;;  %v4466_v59 = vld [vmem:[#allocation12 + $0x38] sm:$0xff]  ;;  %v4465_v20 = vld [vmem:[#allocation12 + $0x30] sm:$0xff] }
 0xe39   :  { %v7731_v23 = vadd.f32 %v3991_v51, %v3990_v11  ;;  %v4464_v11 = vld [vmem:[#allocation12 + $0x28] sm:$0xff]  ;;  %v4463_v51 = vld [vmem:[#allocation12 + $0x20] sm:$0xff] }
 0xe3b   :  { %4128 = vmatmul.mubr.f32.vlgmr.msra.gmra.mxu0 %v7731_v23  ;;  %5541 = vmatmul.mubr.f32.vlgmr.msra.gmra.mxu1 %v7731_v23 }
 0xe3c   :  { %4296 = vmatpush1.msra.mxu0 %v7392_v33  ;;  %5544 = vmatpush3.msra.mxu1 %v7394_v35  ;;  %v8170_v33 = vld [vmem:[#allocation18_spill] sm:$0xff]  ;;  %v8171_v35 = vld [vmem:[#allocation19_spill] sm:$0xff] }
 0xe3d   :  { %4297 = vmatprep.subr.mxu0 %v7398_v60  ;;  %5545 = vmatprep.subr.mxu1 %v7988_v42  ;;  %v8172_v60 = vld [vmem:[#allocation35_spill] sm:$0xff] }
 0xe3e   :  { %4298 = vmatpush1.msra.mxu0 %v7402_v37  ;;  %5546 = vmatpush3.msra.mxu1 %v7404_v21  ;;  %v8173_v37 = vld [vmem:[#allocation33_spill] sm:$0xff] }
 0xe3f   :  { %4299 = vmatprep.subr.mxu0 %v7408_v34  ;;  %5547 = vmatprep.subr.mxu1 %v7988_v42  ;;  %v8174_v21 = vld [vmem:[#allocation29_spill] sm:$0xff]  ;;  %v8175_v34 = vld [vmem:[#allocation30_spill] sm:$0xff] }
 0xe40   :  { %4300 = vmatpush1.msra.mxu0 %v7412_v15  ;;  %5548 = vmatpush3.msra.mxu1 %v7414_v18  ;;  %v8176_v15 = vld [vmem:[#allocation34_spill] sm:$0xff]  ;;  %v8177_v18 = vld [vmem:[#allocation31_spill] sm:$0xff] }
 0xe41   :  { %4301 = vmatprep.subr.mxu0 %v7418_v2  ;;  %5549 = vmatprep.subr.mxu1 %v7988_v42  ;;  %v8178_v2 = vld [vmem:[#allocation32_spill] sm:$0xff] }
 0xe42   :  { %4302 = vmatpush1.msra.mxu0 %v7422_v0  ;;  %5550 = vmatpush3.msra.mxu1 %v7424_v7  ;;  %v8179_v0 = vld [vmem:[#allocation43_spill] sm:$0xff]  ;;  %v4046_v7 = vld [vmem:[%s7862_s8] sm:$0x7] }
 0xe43   :  { %4303 = vmatprep.subr.mxu0 %v7428_v4  ;;  %5551 = vmatprep.subr.mxu1 %v7988_v42  ;;  %v8180_v4 = vld [vmem:[#allocation25_spill] sm:$0xff] }
 0xe44   :  { %4304 = vmatpush1.msra.mxu0 %v7432_v9  ;;  %5552 = vmatpush3.msra.mxu1 %v7434_v8  ;;  %v4051_v9 = vrot.slane %v4046_v7, %v8180_v4 }
 0xe45   :  { %4305 = vmatprep.subr.mxu0 %v7438_v10  ;;  %5553 = vmatprep.subr.mxu1 %v7988_v42 }
 0xe46   :  { %4306 = vmatpush1.msra.mxu0 %v7442_v40  ;;  %5554 = vmatpush3.msra.mxu1 %v7444_v14  ;;  %v8181_v40 = vld [vmem:[#allocation21_spill] sm:$0xff] }
 0xe47   :  { %4307 = vmatprep.subr.mxu0 %v7448_v25  ;;  %5555 = vmatprep.subr.mxu1 %v7988_v42  ;;  %v2462_v14 = vadd.f32 %v8181_v40, %v7197_v3 }
 0xe48   :  { %4308 = vmatpush1.msra.mxu0 %v7452_v39  ;;  %5556 = vmatpush3.msra.mxu1 %v7454_v26  ;;  %v8182_v39 = vld [vmem:[#allocation26_spill] sm:$0xff] }
 0xe49   :  { %4309 = vmatprep.subr.mxu0 %v7456_v55  ;;  %5557 = vmatprep.subr.mxu1 %v7988_v42  ;;  %v4055_v26 = vrot.slane %v4046_v7, %v8182_v39 }
 0xe4a   :  { %4310 = vmatpush1.msra.mxu0 %v7460_v62  ;;  %5558 = vmatpush3.msra.mxu1 %v7462_v43 }
 0xe4b   :  { %4311 = vmatprep.subr.mxu0 %v7464_v45  ;;  %5559 = vmatprep.subr.mxu1 %v7988_v42 }
 0xe4c   :  { %4312 = vmatpush1.msra.mxu0 %v7468_v61  ;;  %5560 = vmatpush3.msra.mxu1 %v7470_v49  ;;  %v8183_v49 = vld [vmem:[#allocation41_spill] sm:$0xff] }
 0xe4d   :  { %4313 = vmatprep.subr.mxu0 %v7474_v17  ;;  %5561 = vmatprep.subr.mxu1 %v7988_v42  ;;  %v2464_v17 = vadd.f32 %v8183_v49, %v7207_v36  ;;  %v8187_v49 = vld [vmem:[#allocation47_spill] sm:$0xff] }
 0xe4e   :  { %4314 = vmatpush1.msra.mxu0 %v7478_v56  ;;  %5562 = vmatpush3.msra.mxu1 %v7480_v41 }
 0xe4f   :  { %4315 = vmatprep.subr.mxu0 %v7484_v16  ;;  %5563 = vmatprep.subr.mxu1 %v7988_v42 }
 0xe50   :  { %4316 = vmatpush1.msra.mxu0 %v7488_v6  ;;  %5564 = vmatpush3.msra.mxu1 %v7490_v27 }
 0xe51   :  { %4317 = vmatprep.subr.mxu0 %v7494_v28  ;;  %5565 = vmatprep.subr.mxu1 %v7988_v42  ;;  %v4059_v28 = vrot.slane %v4046_v7, %v6299_v5 }
 0xe52   :  { %4318 = vmatpush1.msra.mxu0 %v7498_v29  ;;  %5566 = vmatpush3.msra.mxu1 %v7500_v30 }
 0xe53   :  { %4319 = vmatprep.subr.mxu0 %v7504_v38  ;;  %5567 = vmatprep.subr.mxu1 %v7988_v42 }
 0xe54   :  { %4320 = vmatpush1.msra.mxu0 %v7508_v24  ;;  %5568 = vmatpush3.msra.mxu1 %v8170_v33  ;;  %v8184_v24 = vld [vmem:[#allocation49_spill] sm:$0xff]  ;;  %v4461_v33 = vld [vmem:[#allocation12 + $0x10] sm:$0xff] }
 0xe55   :  { %4321 = vmatprep.subr.mxu0 %v8171_v35  ;;  %5569 = vmatprep.subr.mxu1 %v7988_v42  ;;  %v2569_v22 = vadd.f32 %v8184_v24, %v7212_v1  ;;  %v4460_v35 = vld [vmem:[#allocation12 + $0x8] sm:$0xff] }
 0xe56   :  { %4322 = vmatpush1.msra.mxu0 %v8172_v60  ;;  %5570 = vmatpush3.msra.mxu1 %v8173_v37  ;;  %v4459_v60 = vld [vmem:[#allocation12] sm:$0xff] }
 0xe57   :  { %4323 = vmatprep.subr.mxu0 %v8174_v21  ;;  %5571 = vmatprep.subr.mxu1 %v7988_v42  ;;  %v4278_v37 = vld [vmem:[%s7862_s8] sm:$0x7] }
 0xe58   :  { %4324 = vmatpush1.msra.mxu0 %v8175_v34  ;;  %5572 = vmatpush3.msra.mxu1 %v8176_v15  ;;  %v4283_v21 = vrot.slane %v4278_v37, %v8180_v4  ;;  %v4287_v7 = vrot.slane %v4278_v37, %v8182_v39 }
 0xe59   :  { %4325 = vmatprep.subr.mxu0 %v8177_v18  ;;  %5573 = vmatprep.subr.mxu1 %v7988_v42  ;;  %v8185_v18 = vld [vmem:[#allocation44_spill] sm:$0xff] }
 0xe5a   :  { %4326 = vmatpush1.msra.mxu0 %v8178_v2  ;;  %4359 = vmatprep.mubr.f32.mxu0 %v7988_v42  ;;  %v2468_v2 = vadd.f32 %v8185_v18, %v7197_v3  ;;  %v4291_v3 = vrot.slane %v4278_v37, %v6299_v5  ;;  %v4592_v5 = vld [vmem:[%s7864_s10] ss:$0 sm:$0xff] }
 0xe5b   :  { %5574 = vmatpush3.msra.mxu1 %v8179_v0  ;;  %5575 = vmatprep.mubr.msk.f32.mxu1 %vm5900_vm0, %v7988_v42 }
 0xe5c   :  { %5578 = vmatprep.subr.mxu0 %v7988_v42 }
 0xefb   :  { %v4129_v8 = vpop.f32.mrf.mxu0  ;;  %v4200_v10 = vpop.f32.mrf.mxu1 }
 0xefc   :  { %v4130_v25 = vadd.f32 %v4129_v8, %v4051_v9  ;;  %v4201_v30 = vadd.f32 %v4200_v10, %v4059_v28 }
 0xefd   :  { %v4131_v55 = vpop.f32.mrf.mxu0  ;;  %v5542_v62 = vpop.f32.mrf.mxu1 }
 0xefe   :  { %v4204_v43 = vadd.f32 %v4130_v25, %v2462_v14  ;;  %v4132_v61 = vadd.f32 %v4131_v55, %v4055_v26  ;;  %v8186_v14 = vld [vmem:[#allocation48_spill] sm:$0xff] }
 0xeff   :  { %v2470_v25 = vadd.f32 %v8186_v14, %v7207_v36 }
 0xf00   :  { %v4588_v45 = vmul.f32 -1.442695, %v4204_v43  ;;  %v4211_v56 = vadd.f32 %v4132_v61, %v2464_v17  ;;  %v2574_v17 = vadd.f32 %v8187_v49, %v7212_v1 }
 0xf02   :  { %5764 = vpow2.f32 %v4588_v45  ;;  %v4589_v41 = vmul.f32 -1.442695, %v4211_v56 }
 0xf04   :  { %5766 = vpow2.f32 %v4589_v41 }
 0xf0f   :  { %v5765_v16 = vpop.eup %5764 }
 0xf10   :  { %v4208_v6 = vadd.f32 1.0, %v5765_v16 }
 0xf11   :  { %v5767_v27 = vpop.eup %5766 }
 0xf12   :  { %5768 = vrcp.f32 %v4208_v6  ;;  %v4215_v29 = vadd.f32 1.0, %v5767_v27 }
 0xf14   :  { %5770 = vrcp.f32 %v4215_v29 }
 0xf1f   :  { %v5769_v38 = vpop.eup %5768 }
 0xf20   :  { %v4218_v47 = vmul.f32 %v5769_v38, %v4201_v30 }
 0xf21   :  { %v5771_v31 = vpop.eup %5770 }
 0xf22   :  { %v4219_v44 = vadd.f32 %v4218_v47, %v2569_v22  ;;  %v4221_v52 = vsub.f32 1.0, %v5771_v31  ;;  %v4223_v50 = vmul.f32 %v5771_v31, %v7731_v23  ;;  %v4462_v23 = vld [vmem:[#allocation12 + $0x18] sm:$0xff] }
 0xf24   :  { %5772 = vtanh.f32 %v4219_v44 }
 0xf31   :  { %v5773_v53 = vpop.eup %5772 }
 0xf32   :  { %v4222_v46 = vmul.f32 %v5773_v53, %v4221_v52 }
 0xf34   :  { %v7814_v58 = vadd.f32 %v4223_v50, %v4222_v46 }
 0xf36   :  { %4360 = vmatmul.mubr.f32.vlgmr.msra.gmra.mxu0 %v7814_v58  ;;  %5576 = vmatmul.mubr.f32.vlgmr.msra.gmra.mxu1 %v7814_v58 }
 0xf37   :  { %5610 = vmatprep.mubr.msk.f32.mxu0 %vm5900_vm0, %v7988_v42  ;;  %5579 = vmatpush3.msra.mxu0 %v4474_v32 }
 0xf38   :  { %5580 = vmatprep.subr.mxu0 %v7988_v42 }
 0xf39   :  { %5581 = vmatpush3.msra.mxu0 %v4473_v12 }
 0xf3a   :  { %5582 = vmatprep.subr.mxu0 %v7988_v42 }
 0xf3b   :  { %5583 = vmatpush3.msra.mxu0 %v4472_v63 }
 0xf3c   :  { %5584 = vmatprep.subr.mxu0 %v7988_v42 }
 0xf3d   :  { %5585 = vmatpush3.msra.mxu0 %v4471_v19 }
 0xf3e   :  { %5586 = vmatprep.subr.mxu0 %v7988_v42 }
 0xf3f   :  { %5587 = vmatpush3.msra.mxu0 %v4470_v48 }
 0xf40   :  { %5588 = vmatprep.subr.mxu0 %v7988_v42 }
 0xf41   :  { %5589 = vmatpush3.msra.mxu0 %v4469_v57 }
 0xf42   :  { %5590 = vmatprep.subr.mxu0 %v7988_v42 }
 0xf43   :  { %5591 = vmatpush3.msra.mxu0 %v4468_v54 }
 0xf44   :  { %5592 = vmatprep.subr.mxu0 %v7988_v42 }
 0xf45   :  { %5593 = vmatpush3.msra.mxu0 %v4467_v13 }
 0xf46   :  { %5594 = vmatprep.subr.mxu0 %v7988_v42 }
 0xf47   :  { %5595 = vmatpush3.msra.mxu0 %v4466_v59 }
 0xf48   :  { %5596 = vmatprep.subr.mxu0 %v7988_v42 }
 0xf49   :  { %5597 = vmatpush3.msra.mxu0 %v4465_v20 }
 0xf4a   :  { %5598 = vmatprep.subr.mxu0 %v7988_v42 }
 0xf4b   :  { %5599 = vmatpush3.msra.mxu0 %v4464_v11 }
 0xf4c   :  { %5600 = vmatprep.subr.mxu0 %v7988_v42 }
 0xf4d   :  { %5601 = vmatpush3.msra.mxu0 %v4463_v51 }
 0xf4e   :  { %5602 = vmatprep.subr.mxu0 %v7988_v42 }
 0xf4f   :  { %5603 = vmatpush3.msra.mxu0 %v4462_v23 }
 0xf50   :  { %5604 = vmatprep.subr.mxu0 %v7988_v42 }
 0xf51   :  { %5605 = vmatpush3.msra.mxu0 %v4461_v33 }
 0xf52   :  { %5606 = vmatprep.subr.mxu0 %v7988_v42 }
 0xf53   :  { %5607 = vmatpush3.msra.mxu0 %v4460_v35 }
 0xf54   :  { %5608 = vmatprep.subr.mxu0 %v7988_v42 }
 0xf55   :  { %5609 = vmatpush3.msra.mxu0 %v4459_v60 }
 0xff6   :  { %v4361_v34 = vpop.f32.mrf.mxu0  ;;  %v4432_v15 = vpop.f32.mrf.mxu1 }
 0xff7   :  { %v4362_v0 = vadd.f32 %v4361_v34, %v4283_v21  ;;  %v4433_v39 = vadd.f32 %v4432_v15, %v4291_v3 }
 0xff8   :  { %v4363_v9 = vpop.f32.mrf.mxu0  ;;  %v5577_v8 = vpop.f32.mrf.mxu1 }
 0xff9   :  { %v4436_v10 = vadd.f32 %v4362_v0, %v2468_v2  ;;  %v4364_v42 = vadd.f32 %v4363_v9, %v4287_v7 }
 0xffb   :  { %v4590_v40 = vmul.f32 -1.442695, %v4436_v10  ;;  %v4443_v26 = vadd.f32 %v4364_v42, %v2470_v25 }
 0xffd   :  { %5774 = vpow2.f32 %v4590_v40  ;;  %v4591_v55 = vmul.f32 -1.442695, %v4443_v26 }
 0xfff   :  { %5776 = vpow2.f32 %v4591_v55 }
0x100a   :  { %v5775_v4 = vpop.eup %5774 }
0x100b   :  { %v4440_v62 = vadd.f32 1.0, %v5775_v4 }
0x100c   :  { %v5777_v43 = vpop.eup %5776 }
0x100d   :  { %5778 = vrcp.f32 %v4440_v62  ;;  %v4447_v45 = vadd.f32 1.0, %v5777_v43 }
0x100f   :  { %5780 = vrcp.f32 %v4447_v45 }
0x101a   :  { %v5779_v61 = vpop.eup %5778 }
0x101b   :  { %v4450_v56 = vmul.f32 %v5779_v61, %v4433_v39 }
0x101c   :  { %v5781_v36 = vpop.eup %5780 }
0x101d   :  { %v4451_v41 = vadd.f32 %v4450_v56, %v2574_v17  ;;  %v4453_v16 = vsub.f32 1.0, %v5781_v36  ;;  %v4455_v28 = vmul.f32 %v5781_v36, %v7814_v58 }
0x101f   :  { %5782 = vtanh.f32 %v4451_v41 }
0x102c   :  { %v5783_v6 = vpop.eup %5782 }
0x102d   :  { %v4454_v27 = vmul.f32 %v5783_v6, %v4453_v16 }
0x102f   :  { %v4456_v29 = vadd.f32 %v4455_v28, %v4454_v27 }
0x1031   :  { %5611 = vmatmul.mubr.f32.vlgmr.msra.gmra.mxu0 %v4456_v29 }
0x10f1   :  { %v4548_v30 = vpop.f32.mrf.mxu0 }
0x10f2   :  { %v4549_v38 = vadd.f32 %v4592_v5, %v4548_v30 }
0x10f3   :  { %v5612_v24 = vpop.f32.mrf.mxu0 }
0x10f4   :  { %4552 = vst [vmem:[%s7865_s11] sm:$0xff] %v4549_v38 }
0x10f5   :  { %4557 = vsyncpa [#allocation6], 1 }
0x10f6   :  { %4558 = vsyncpa [#allocation8], 1 }
0x10f7   :  { %4559 = vsyncpa [#allocation11], 1 }

</bundles_post_ra>
